<compile_context>
chip_gen: v7x
topology: tpu7x:2x2x1
jax: 0.10.0
libtpu: 0.0.40
codegen_flags: <defaults>
</compile_context>

<pallas_src>
from functools import lru_cache, partial

import jax
import jax.numpy as jnp
import numpy as np
from jax import lax
from jax.experimental import pallas as pl
from jax.experimental.pallas import tpu as pltpu

# ------------------------- model hyper-parameters ---------------------------
N_AGENTS = 4          # args.n_agents
EMBED_DIM = 32        # args.mixing_embed_dim  (== hidden_layer_sizes entries)
STATE_DIM = 32        # prod(args.state_shape)
HYPERNET_EMBED = 64   # args.hypernet_embed
HIDDEN_LAYER = 32     # hidden_layer_sizes = [32, 32]
RANK = 1
STRONG_CONVEXITY = 1e-6
_SEG = 128                               # lane-aligned segment width
_FIN_OFF = EMBED_DIM * EMBED_DIM         # epilogue-constant offset in bias slab
_BIAS_W = _FIN_OFF + _SEG                # bias slab width (1152)

PARAM_ORDER = [
    # hyper_w1 : Linear(S,H) -> ReLU -> Linear(H, N*E)
    "w1a", "b1a", "w1b", "b1b",
    # hyper_b1 : Linear(S,E)
    "wb1", "bb1",
    # hyper_w2 : Linear(S,H) -> ReLU -> Linear(H, E*E)
    "w2a", "b2a", "w2b", "b2b",
    # hyper_b2 : Linear(S,E)
    "wb2", "bb2",
    # hyper_w_final : Linear(S,H) -> ReLU -> Linear(H, E)
    "wfa", "bfa", "wfb", "bfb",
    # hyper_b_final : Linear(S,E) -> ReLU -> Linear(E, 1)
    "wbf1", "bbf1", "wbf2", "bbf2",
    # ConvexQuadratic 0 (rank=1):  Q (N,32), linear W (N,32), bias (1,32)
    "q0", "l0w", "l0b",
    # ConvexQuadratic 1
    "q1", "l1w", "l1b",
]


def _celu(x):
    # alpha = 1.0 ; exp(min(x,0)) - 1 (expm1-equivalent inside tolerance,
    # guaranteed Mosaic lowering; clamp avoids overflow in the dead branch).
    return jnp.where(x > 0, x, jnp.exp(jnp.minimum(x, 0.0)) - 1.0)


# ------------------------------- kernel --------------------------------------
def mixer_kernel(x_ref, ws_ref, w1b_ref, w2b_ref, wfb_ref, qall_ref, rm_ref,
                 bias_ref, out_ref):
    f32 = jnp.float32
    N, E, H, S = N_AGENTS, EMBED_DIM, HYPERNET_EMBED, STATE_DIM

    x = x_ref[...]                         # (TB, S+N) f32, [states | qvals]
    s = x[:, :S]                           # (TB, 32)
    q = x[:, S:S + N]                      # (TB, 4)

    bias = bias_ref[...]                   # (8, 1152) f32 packed small params
    b2b  = bias[0:1, :E * E]               # (1, 1024)
    b1b  = bias[1:2, :N * E]               # (1, 128)
    bs   = bias[2:3, :6 * _SEG]            # (1, 768)  fused first-layer biases
    bfb  = bias[3:4, :E]                   # (1, 32)
    lb   = bias[4:5, :2 * E]               # (1, 64)   [l0b | l1b]
    bbf2 = bias[5:6, 0:1]                  # (1, 1)
    fin_main = bias[:, _FIN_OFF:_FIN_OFF + E]                   # (8, E) ones
    fin_bf   = bias[:, _FIN_OFF + E:_FIN_OFF + 2 * E]           # (8, E) wbf2^T
    fin_qq   = bias[:, _FIN_OFF + 2 * E:_FIN_OFF + 2 * E + N]   # (8, N) 0.5*eps

    # weights (f32 or bf16 — set at pack time); accumulate in f32 on the MXU.
    ws, w1b, w2b, wfb = ws_ref[...], w1b_ref[...], w2b_ref[...], wfb_ref[...]
    qall, rm = qall_ref[...], rm_ref[...]
    r2 = rm[:E]                            # (E, E*E)  = kron(I_E, 1_E)
    m2t = rm[E:2 * E]                      # (E, E*E)  = kron(1_E, I_E)
    m1t = m2t[:, :N * E]                   # (E, N*E)  = kron(1_N, I_E)
    wdt = ws.dtype

    relu = lambda v: jnp.maximum(v, 0.0)
    mm = lambda a, b: jnp.dot(a.astype(wdt), b, preferred_element_type=f32)
    dn = (((1,), (1,)), ((), ()))          # contract last dims (A @ B^T)
    mmT = lambda a, b: lax.dot_general(a.astype(b.dtype), b, dn,
                                       preferred_element_type=f32)

    # ---- fused state hyper-network: first layers of all 6 branches ----------
    hs = mm(s, ws) + bs                                  # (TB, 768)
    h1  = relu(hs[:, 0 * _SEG:0 * _SEG + H])             # hyper_w1 hidden
    h2  = relu(hs[:, 1 * _SEG:1 * _SEG + H])             # hyper_w2 hidden
    hf  = relu(hs[:, 2 * _SEG:2 * _SEG + H])             # hyper_w_final hidden
    b1  = hs[:, 3 * _SEG:3 * _SEG + E]                   # hyper_b1
    b2  = hs[:, 4 * _SEG:4 * _SEG + E]                   # hyper_b2
    bfp = relu(hs[:, 5 * _SEG:5 * _SEG + E])             # hyper_b_final pre

    # ---- second hyper-network layers ----------------------------------------
    w1_flat = jnp.abs(mm(h1, w1b) + b1b)                 # (TB, N*E)
    w2_flat = jnp.abs(mm(h2, w2b) + b2b)                 # (TB, E*E)
    w_final = -jnp.abs(mm(hf, wfb) + bfb)                # (TB, E)

    # ---- agent-q side: quad branches + lane-replicated q in ONE matmul ------
    z_all = mm(q, qall)                                  # (TB, 384)
    z_sq  = z_all[:, 0:2 * E]                            # [q@q0 | q@q1]
    z_lin = z_all[:, _SEG:_SEG + 2 * E]                  # [q@l0w | q@l1w]
    q_rep = z_all[:, 2 * _SEG:2 * _SEG + N * E]          # q replicated / agent
    quad = z_sq * z_sq + z_lin + lb                      # (TB, 64)
    quad0 = quad[:, :E]
    quad1 = quad[:, E:2 * E]

    # layer 1:  bmm(q, |w1|) + b1  ==  ((q @ R1) * w1_flat) @ M1
    hidden = mmT(q_rep * w1_flat, m1t) + b1              # (TB, E)
    out1 = _celu(hidden + quad0)

    # layer 2:  bmm(out1, |w2|) + b2  ==  ((out1 @ R2) * w2_flat) @ M2
    out1_rep = mm(out1, r2)                              # (TB, E*E) replication
    hidden = mmT(out1_rep * w2_flat, m2t) + b2           # (TB, E)
    out2 = _celu(hidden + quad1)

    # ---- final layer: lane-dense (8, TB) rows via A @ B^T matmuls -----------
    r_main = mmT(fin_main, out2 * w_final)               # (8, TB)
    r_bf   = mmT(fin_bf, bfp)                            # (8, TB)
    r_qq   = mmT(fin_qq, q * q)                          # (8, TB) pre-scaled
    out_ref[...] = (r_main + r_bf + r_qq + bbf2).astype(out_ref.dtype)


# --------------------------- parameter packing --------------------------------
def _round_up(x, m):
    return (x + m - 1) // m * m


def _pad_cols(a, width):
    return jnp.pad(a, ((0, 0), (0, width - a.shape[1])))


def pack_params(P, use_bf16=True):
    """Fuse / pad the 26 raw parameter arrays into 7 kernel operands."""
    f32 = jnp.float32
    wdt = jnp.bfloat16 if use_bf16 else f32
    E, N = EMBED_DIM, N_AGENTS

    # fused first-layer state hypernet: 6 branches, each lane-aligned to 128
    ws_cat = jnp.concatenate(
        [_pad_cols(P[k], _SEG) for k in ("w1a", "w2a", "wfa", "wb1", "wb2", "wbf1")],
        axis=1).astype(wdt)                                              # (32, 768)
    bs_cat = jnp.concatenate(
        [_pad_cols(P[k], _SEG) for k in ("b1a", "b2a", "bfa", "bb1", "bb2", "bbf1")],
        axis=1)                                                          # (1, 768)

    # quadratic-branch weights + agent replication matrix R1 = kron(I_N, 1_E)
    r1 = jnp.kron(jnp.eye(N, dtype=f32), jnp.ones((1, E), f32))          # (N, N*E)
    q_all = jnp.concatenate([
        _pad_cols(jnp.concatenate([P["q0"], P["q1"]], axis=1), _SEG),
        _pad_cols(jnp.concatenate([P["l0w"], P["l1w"]], axis=1), _SEG),
        r1], axis=1).astype(wdt)                                         # (N, 384)

    # R2 = kron(I_E, 1_E) replication, M2^T = kron(1_E, I_E) selection, stacked.
    r2 = jnp.kron(jnp.eye(E, dtype=f32), jnp.ones((1, E), f32))          # (E, E*E)
    m2t = jnp.kron(jnp.ones((1, E), f32), jnp.eye(E, dtype=f32))         # (E, E*E)
    rm = jnp.concatenate([r2, m2t], axis=0).astype(wdt)                  # (2E, E*E)

    lb = jnp.concatenate([P["l0b"], P["l1b"]], axis=1)                   # (1, 2E)

    # epilogue constants: [ 1_E | wbf2^T | 0.5*eps*1_N | 0 ]  (identical rows)
    fin = jnp.zeros((8, _SEG), f32)
    fin = fin.at[:, :E].set(1.0)
    fin = fin.at[:, E:2 * E].set(jnp.broadcast_to(P["wbf2"].T, (8, E)))
    fin = fin.at[:, 2 * E:2 * E + N].set(0.5 * STRONG_CONVEXITY)

    row = lambda a: _pad_cols(a, _BIAS_W)
    bias_slab = jnp.concatenate([
        row(P["b2b"]), row(P["b1b"]), row(bs_cat), row(P["bfb"]),
        row(lb), row(P["bbf2"]), jnp.zeros((2, _BIAS_W), f32)], axis=0)  # (8, 1152)
    bias_slab = bias_slab.at[:, _FIN_OFF:_FIN_OFF + _SEG].set(fin)

    return (ws_cat, P["w1b"].astype(wdt), P["w2b"].astype(wdt),
            P["wfb"].astype(wdt), q_all, rm, bias_slab)


_PACK_CACHE = {}


def _get_packed(params, use_bf16):
    # Pack once per (params, precision); real deployments would pack at init.
    key = (id(params), bool(use_bf16))
    if key not in _PACK_CACHE:
        _PACK_CACHE[key] = tuple(pack_params(params, use_bf16))
    return _PACK_CACHE[key]


# --------------------- generation-aware tiling defaults ------------------------
@lru_cache(maxsize=1)
def _device_defaults():
    """Returns (max_tile_rows, vmem_limit_bytes, split_for_two_cores)."""
    kind = ""
    try:
        kind = (getattr(jax.devices()[0], "device_kind", "") or "").lower()
    except Exception:
        pass
    if "v7" in kind:
        # 64 MiB VMEM per TensorCore, 2 cores: smaller tiles, >=2 grid steps.
        return 1024, 48 * 1024 * 1024, True
    if "v2" in kind or "v3" in kind:
        return 256, 14 * 1024 * 1024, False
    # v4 / v5e / v6e: 128 MiB physical VMEM — big tiles amortise grid overhead.
    return 2048, 80 * 1024 * 1024, False


def _choose_tile_b(bt):
    max_tile, _, split2 = _device_defaults()
    bt128 = _round_up(max(bt, 1), 128)
    tile = min(max_tile, bt128)
    if split2 and bt128 >= 256:
        # prefer an even number of grid steps so both v7x TensorCores run.
        tile = min(tile, _round_up(-(-bt128 // 2), 128))
    return tile


# ------------------------------- wrapper --------------------------------------
@partial(jax.jit, static_argnames=("tile_b", "vmem_limit"))
def _mixer_impl(qvals, states, packed, tile_b, vmem_limit):
    b, t, n = qvals.shape
    bt = b * t
    q2 = qvals.reshape(bt, n).astype(jnp.float32)
    s2 = states.reshape(bt, -1).astype(jnp.float32)
    x = jnp.concatenate([s2, q2], axis=1)                  # (bt, S+N) fused input
    bt_pad = _round_up(bt, tile_b)
    if bt_pad != bt:
        x = jnp.pad(x, ((0, bt_pad - bt), (0, 0)))
    num_tiles = bt_pad // tile_b

    param_list = list(packed)
    out = pl.pallas_call(
        mixer_kernel,
        out_shape=jax.ShapeDtypeStruct((8, bt_pad), jnp.float32),
        grid=(num_tiles,),
        in_specs=[pl.BlockSpec((tile_b, STATE_DIM + N_AGENTS), lambda i: (i, 0))]
                 + [pl.BlockSpec(p.shape, lambda i: (0, 0)) for p in param_list],
        out_specs=pl.BlockSpec((8, tile_b), lambda i: (0, i)),
        compiler_params=pltpu.CompilerParams(
            dimension_semantics=("parallel",),
            vmem_limit_bytes=vmem_limit),
    )(x, *param_list)

    # row 0 holds q_tot (all 8 rows identical); drop the BT padding.
    return out[0, :bt].reshape(b, t, 1)


def mixer_wgan_v2_forward(qvals, states, params, *, tile_b=None, use_bf16=True):
    """qvals: (b, t, N) ; states: (b, t, S) ; params: dict keyed by PARAM_ORDER."""
    assert qvals.shape[-1] == N_AGENTS
    packed = _get_packed(params, use_bf16)
    max_tile, vmem_limit, _ = _device_defaults()
    bt = qvals.shape[0] * qvals.shape[1]
    if tile_b is None:
        tile_b = _choose_tile_b(bt)
    else:
        tile_b = min(max(128, _round_up(int(tile_b), 128)), max_tile)
    return _mixer_impl(qvals, states, packed, tile_b=tile_b,
                       vmem_limit=vmem_limit)


# ------------------------- pure-JAX reference --------------------------------
def reference_forward(qvals, states, P):
    b, t, n = qvals.shape
    bt = b * t
    N, E = N_AGENTS, EMBED_DIM
    q = qvals.reshape(bt, N).astype(jnp.float32)
    s = states.reshape(bt, -1).astype(jnp.float32)
    relu = lambda x: jnp.maximum(x, 0.0)

    w1 = jnp.abs(relu(s @ P["w1a"] + P["b1a"]) @ P["w1b"] + P["b1b"]).reshape(bt, N, E)
    b1 = s @ P["wb1"] + P["bb1"]
    hidden = jnp.einsum("tn,tne->te", q, w1) + b1
    quad0 = (q @ P["q0"]) ** 2 + q @ P["l0w"] + P["l0b"]
    out = jax.nn.celu(hidden + quad0)

    w2 = jnp.abs(relu(s @ P["w2a"] + P["b2a"]) @ P["w2b"] + P["b2b"]).reshape(bt, E, E)
    b2 = s @ P["wb2"] + P["bb2"]
    hidden = jnp.einsum("te,tef->tf", out, w2) + b2
    quad1 = (q @ P["q1"]) ** 2 + q @ P["l1w"] + P["l1b"]
    out = jax.nn.celu(hidden + quad1)

    wf = -jnp.abs(relu(s @ P["wfa"] + P["bfa"]) @ P["wfb"] + P["bfb"])
    bf = relu(s @ P["wbf1"] + P["bbf1"]) @ P["wbf2"] + P["bbf2"]
    hidden = jnp.sum(out * wf, axis=1, keepdims=True) + bf
    q_tot = hidden + 0.5 * STRONG_CONVEXITY * jnp.sum(q * q, axis=1, keepdims=True)
    return q_tot.reshape(b, t, 1)


# ------------------------- deterministic init --------------------------------
def make_params(key):
    S, H, N, E, L = STATE_DIM, HYPERNET_EMBED, N_AGENTS, EMBED_DIM, HIDDEN_LAYER
    shapes = {
        "w1a": (S, H), "b1a": (1, H), "w1b": (H, N * E), "b1b": (1, N * E),
        "wb1": (S, E), "bb1": (1, E),
        "w2a": (S, H), "b2a": (1, H), "w2b": (H, E * E), "b2b": (1, E * E),
        "wb2": (S, E), "bb2": (1, E),
        "wfa": (S, H), "bfa": (1, H), "wfb": (H, E), "bfb": (1, E),
        "wbf1": (S, E), "bbf1": (1, E), "wbf2": (E, 1), "bbf2": (1, 1),
        "q0": (N, L), "l0w": (N, L), "l0b": (1, L),
        "q1": (N, L), "l1w": (N, L), "l1b": (1, L),
    }
    keys = jax.random.split(key, len(PARAM_ORDER))
    return {
        name: 0.1 * jax.random.normal(k, shapes[name], dtype=jnp.float32)
        for name, k in zip(PARAM_ORDER, keys)
    }


if __name__ == "__main__":
    key = jax.random.PRNGKey(0)
    k_p, k_q, k_s, k_q2, k_s2 = jax.random.split(key, 5)

    params = make_params(k_p)

    # ---- small shape (single tile, padded BT); exact-f32 path vs reference ----
    b, t = 2, 8
    qvals = jax.random.normal(k_q, (b, t, N_AGENTS), dtype=jnp.float32)
    states = jax.random.normal(k_s, (b, t, STATE_DIM), dtype=jnp.float32)
    ref = reference_forward(qvals, states, params)

    out_f32 = jax.block_until_ready(
        mixer_wgan_v2_forward(qvals, states, params, use_bf16=False))
    assert out_f32.shape == (b, t, 1)
    np.testing.assert_allclose(np.asarray(out_f32), np.asarray(ref),
                               rtol=2e-4, atol=2e-4)

    # bf16 MXU fast path (default): sanity band only — structural correctness
    # is established by the exact f32 check above.
    out_bf = jax.block_until_ready(mixer_wgan_v2_forward(qvals, states, params))
    np.testing.assert_allclose(np.asarray(out_bf), np.asarray(ref),
                               rtol=1.5e-1, atol=1.5e-1)

    # ---- multi-tile grid + BT padding (explicit small tile exercises pipeline) ----
    b2_, t2_ = 4, 160  # BT = 640 -> padded to 768 with three 256-row tiles
    qvals2 = jax.random.normal(k_q2, (b2_, t2_, N_AGENTS), dtype=jnp.float32)
    states2 = jax.random.normal(k_s2, (b2_, t2_, STATE_DIM), dtype=jnp.float32)
    ref2 = reference_forward(qvals2, states2, params)

    out2_f32 = jax.block_until_ready(
        mixer_wgan_v2_forward(qvals2, states2, params, tile_b=256, use_bf16=False))
    np.testing.assert_allclose(np.asarray(out2_f32), np.asarray(ref2),
                               rtol=2e-4, atol=2e-4)

    out2_bf = jax.block_until_ready(mixer_wgan_v2_forward(qvals2, states2, params))
    np.testing.assert_allclose(np.asarray(out2_bf), np.asarray(ref2),
                               rtol=1.5e-1, atol=1.5e-1)

    # TODO(synk): training-mode Dropout(p=0.03) is not modeled (eval-mode identity).
    print("KERNEL_OK")
</pallas_src>

<mosaic_0001>
module attributes {stable_mosaic.version = 11 : i64} {
  func.func @mixer_kernel(%arg0: i32, %arg1: memref<128x36xf32, #tpu.memory_space<vmem>>, %arg2: memref<32x768xf32, #tpu.memory_space<vmem>>, %arg3: memref<64x128xf32, #tpu.memory_space<vmem>>, %arg4: memref<64x1024xf32, #tpu.memory_space<vmem>>, %arg5: memref<64x32xf32, #tpu.memory_space<vmem>>, %arg6: memref<4x384xf32, #tpu.memory_space<vmem>>, %arg7: memref<64x1024xf32, #tpu.memory_space<vmem>>, %arg8: memref<8x1152xf32, #tpu.memory_space<vmem>>, %arg9: memref<8x128xf32, #tpu.memory_space<vmem>>) attributes {dimension_semantics = [#tpu.dimension_semantics<parallel>], iteration_bounds = array<i64: 1>, scalar_prefetch = 0 : i64, scratch_operands = 0 : i64, tpu.core_type = #tpu.core_type<tc>, window_params = [{transform_indices = @transform_0, window_bounds = array<i64: 128, 36>}, {pipeline_mode = #tpu.pipeline_mode<synchronous>, transform_indices = @transform_1, window_bounds = array<i64: 32, 768>}, {pipeline_mode = #tpu.pipeline_mode<synchronous>, transform_indices = @transform_2, window_bounds = array<i64: 64, 128>}, {pipeline_mode = #tpu.pipeline_mode<synchronous>, transform_indices = @transform_3, window_bounds = array<i64: 64, 1024>}, {pipeline_mode = #tpu.pipeline_mode<synchronous>, transform_indices = @transform_4, window_bounds = array<i64: 64, 32>}, {pipeline_mode = #tpu.pipeline_mode<synchronous>, transform_indices = @transform_5, window_bounds = array<i64: 4, 384>}, {pipeline_mode = #tpu.pipeline_mode<synchronous>, transform_indices = @transform_6, window_bounds = array<i64: 64, 1024>}, {pipeline_mode = #tpu.pipeline_mode<synchronous>, transform_indices = @transform_7, window_bounds = array<i64: 8, 1152>}, {transform_indices = @transform_8, window_bounds = array<i64: 8, 128>}]} {
    %c0 = arith.constant 0 : index
    %c0_0 = arith.constant 0 : index
    %0 = vector.load %arg1[%c0, %c0_0] : memref<128x36xf32, #tpu.memory_space<vmem>>, vector<128x36xf32>
    %1 = vector.extract_strided_slice %0 {offsets = [0, 0], sizes = [128, 32], strides = [1, 1]} : vector<128x36xf32> to vector<128x32xf32>
    %2 = vector.extract_strided_slice %0 {offsets = [0, 32], sizes = [128, 4], strides = [1, 1]} : vector<128x36xf32> to vector<128x4xf32>
    %c0_1 = arith.constant 0 : index
    %c0_2 = arith.constant 0 : index
    %3 = vector.load %arg8[%c0_1, %c0_2] : memref<8x1152xf32, #tpu.memory_space<vmem>>, vector<8x1152xf32>
    %4 = vector.extract_strided_slice %3 {offsets = [0, 0], sizes = [1, 1024], strides = [1, 1]} : vector<8x1152xf32> to vector<1x1024xf32>
    %5 = vector.extract_strided_slice %3 {offsets = [1, 0], sizes = [1, 128], strides = [1, 1]} : vector<8x1152xf32> to vector<1x128xf32>
    %6 = vector.extract_strided_slice %3 {offsets = [2, 0], sizes = [1, 768], strides = [1, 1]} : vector<8x1152xf32> to vector<1x768xf32>
    %7 = vector.extract_strided_slice %3 {offsets = [3, 0], sizes = [1, 32], strides = [1, 1]} : vector<8x1152xf32> to vector<1x32xf32>
    %8 = vector.extract_strided_slice %3 {offsets = [4, 0], sizes = [1, 64], strides = [1, 1]} : vector<8x1152xf32> to vector<1x64xf32>
    %9 = vector.extract_strided_slice %3 {offsets = [5, 0], sizes = [1, 1], strides = [1, 1]} : vector<8x1152xf32> to vector<1x1xf32>
    %10 = vector.extract_strided_slice %3 {offsets = [0, 1024], sizes = [8, 32], strides = [1, 1]} : vector<8x1152xf32> to vector<8x32xf32>
    %11 = vector.extract_strided_slice %3 {offsets = [0, 1056], sizes = [8, 32], strides = [1, 1]} : vector<8x1152xf32> to vector<8x32xf32>
    %12 = vector.extract_strided_slice %3 {offsets = [0, 1088], sizes = [8, 4], strides = [1, 1]} : vector<8x1152xf32> to vector<8x4xf32>
    %c0_3 = arith.constant 0 : index
    %c0_4 = arith.constant 0 : index
    %13 = vector.load %arg2[%c0_3, %c0_4] : memref<32x768xf32, #tpu.memory_space<vmem>>, vector<32x768xf32>
    %c0_5 = arith.constant 0 : index
    %c0_6 = arith.constant 0 : index
    %14 = vector.load %arg3[%c0_5, %c0_6] : memref<64x128xf32, #tpu.memory_space<vmem>>, vector<64x128xf32>
    %c0_7 = arith.constant 0 : index
    %c0_8 = arith.constant 0 : index
    %15 = vector.load %arg4[%c0_7, %c0_8] : memref<64x1024xf32, #tpu.memory_space<vmem>>, vector<64x1024xf32>
    %c0_9 = arith.constant 0 : index
    %c0_10 = arith.constant 0 : index
    %16 = vector.load %arg5[%c0_9, %c0_10] : memref<64x32xf32, #tpu.memory_space<vmem>>, vector<64x32xf32>
    %c0_11 = arith.constant 0 : index
    %c0_12 = arith.constant 0 : index
    %17 = vector.load %arg6[%c0_11, %c0_12] : memref<4x384xf32, #tpu.memory_space<vmem>>, vector<4x384xf32>
    %c0_13 = arith.constant 0 : index
    %c0_14 = arith.constant 0 : index
    %18 = vector.load %arg7[%c0_13, %c0_14] : memref<64x1024xf32, #tpu.memory_space<vmem>>, vector<64x1024xf32>
    %19 = vector.extract_strided_slice %18 {offsets = [0, 0], sizes = [32, 1024], strides = [1, 1]} : vector<64x1024xf32> to vector<32x1024xf32>
    %20 = vector.extract_strided_slice %18 {offsets = [32, 0], sizes = [32, 1024], strides = [1, 1]} : vector<64x1024xf32> to vector<32x1024xf32>
    %21 = vector.extract_strided_slice %20 {offsets = [0, 0], sizes = [32, 128], strides = [1, 1]} : vector<32x1024xf32> to vector<32x128xf32>
    %cst = arith.constant dense<0.000000e+00> : vector<128x768xf32>
    %22 = tpu.matmul %1, %13, %cst {dimension_numbers = #tpu.dot_dimension_numbers<[1], [0], [0], [1], [0, 0, 1, 1], [], []>} : vector<128x32xf32>, vector<32x768xf32>, vector<128x768xf32> -> vector<128x768xf32>
    %23 = vector.broadcast %6 : vector<1x768xf32> to vector<128x768xf32>
    %24 = arith.addf %22, %23 : vector<128x768xf32>
    %25 = vector.extract_strided_slice %24 {offsets = [0, 0], sizes = [128, 64], strides = [1, 1]} : vector<128x768xf32> to vector<128x64xf32>
    %cst_15 = arith.constant 0.000000e+00 : f32
    %26 = vector.broadcast %cst_15 : f32 to vector<128x64xf32>
    %27 = arith.maximumf %25, %26 : vector<128x64xf32>
    %28 = vector.extract_strided_slice %24 {offsets = [0, 128], sizes = [128, 64], strides = [1, 1]} : vector<128x768xf32> to vector<128x64xf32>
    %cst_16 = arith.constant 0.000000e+00 : f32
    %29 = vector.broadcast %cst_16 : f32 to vector<128x64xf32>
    %30 = arith.maximumf %28, %29 : vector<128x64xf32>
    %31 = vector.extract_strided_slice %24 {offsets = [0, 256], sizes = [128, 64], strides = [1, 1]} : vector<128x768xf32> to vector<128x64xf32>
    %cst_17 = arith.constant 0.000000e+00 : f32
    %32 = vector.broadcast %cst_17 : f32 to vector<128x64xf32>
    %33 = arith.maximumf %31, %32 : vector<128x64xf32>
    %34 = vector.extract_strided_slice %24 {offsets = [0, 384], sizes = [128, 32], strides = [1, 1]} : vector<128x768xf32> to vector<128x32xf32>
    %35 = vector.extract_strided_slice %24 {offsets = [0, 512], sizes = [128, 32], strides = [1, 1]} : vector<128x768xf32> to vector<128x32xf32>
    %36 = vector.extract_strided_slice %24 {offsets = [0, 640], sizes = [128, 32], strides = [1, 1]} : vector<128x768xf32> to vector<128x32xf32>
    %cst_18 = arith.constant 0.000000e+00 : f32
    %37 = vector.broadcast %cst_18 : f32 to vector<128x32xf32>
    %38 = arith.maximumf %36, %37 : vector<128x32xf32>
    %cst_19 = arith.constant dense<0.000000e+00> : vector<128x128xf32>
    %39 = tpu.matmul %27, %14, %cst_19 {dimension_numbers = #tpu.dot_dimension_numbers<[1], [0], [0], [1], [0, 0, 1, 1], [], []>} : vector<128x64xf32>, vector<64x128xf32>, vector<128x128xf32> -> vector<128x128xf32>
    %40 = vector.broadcast %5 : vector<1x128xf32> to vector<128x128xf32>
    %41 = arith.addf %39, %40 : vector<128x128xf32>
    %42 = math.absf %41 : vector<128x128xf32>
    %cst_20 = arith.constant dense<0.000000e+00> : vector<128x1024xf32>
    %43 = tpu.matmul %30, %15, %cst_20 {dimension_numbers = #tpu.dot_dimension_numbers<[1], [0], [0], [1], [0, 0, 1, 1], [], []>} : vector<128x64xf32>, vector<64x1024xf32>, vector<128x1024xf32> -> vector<128x1024xf32>
    %44 = vector.broadcast %4 : vector<1x1024xf32> to vector<128x1024xf32>
    %45 = arith.addf %43, %44 : vector<128x1024xf32>
    %46 = math.absf %45 : vector<128x1024xf32>
    %cst_21 = arith.constant dense<0.000000e+00> : vector<128x32xf32>
    %47 = tpu.matmul %33, %16, %cst_21 {dimension_numbers = #tpu.dot_dimension_numbers<[1], [0], [0], [1], [0, 0, 1, 1], [], []>} : vector<128x64xf32>, vector<64x32xf32>, vector<128x32xf32> -> vector<128x32xf32>
    %48 = vector.broadcast %7 : vector<1x32xf32> to vector<128x32xf32>
    %49 = arith.addf %47, %48 : vector<128x32xf32>
    %50 = math.absf %49 : vector<128x32xf32>
    %cst_22 = arith.constant 0.000000e+00 : f32
    %51 = vector.broadcast %cst_22 : f32 to vector<128x32xf32>
    %52 = arith.subf %51, %50 : vector<128x32xf32>
    %cst_23 = arith.constant dense<0.000000e+00> : vector<128x384xf32>
    %53 = tpu.matmul %2, %17, %cst_23 {dimension_numbers = #tpu.dot_dimension_numbers<[1], [0], [0], [1], [0, 0, 1, 1], [], []>} : vector<128x4xf32>, vector<4x384xf32>, vector<128x384xf32> -> vector<128x384xf32>
    %54 = vector.extract_strided_slice %53 {offsets = [0, 0], sizes = [128, 64], strides = [1, 1]} : vector<128x384xf32> to vector<128x64xf32>
    %55 = vector.extract_strided_slice %53 {offsets = [0, 128], sizes = [128, 64], strides = [1, 1]} : vector<128x384xf32> to vector<128x64xf32>
    %56 = vector.extract_strided_slice %53 {offsets = [0, 256], sizes = [128, 128], strides = [1, 1]} : vector<128x384xf32> to vector<128x128xf32>
    %57 = arith.mulf %54, %54 : vector<128x64xf32>
    %58 = arith.addf %57, %55 : vector<128x64xf32>
    %59 = vector.broadcast %8 : vector<1x64xf32> to vector<128x64xf32>
    %60 = arith.addf %58, %59 : vector<128x64xf32>
    %61 = vector.extract_strided_slice %60 {offsets = [0, 0], sizes = [128, 32], strides = [1, 1]} : vector<128x64xf32> to vector<128x32xf32>
    %62 = vector.extract_strided_slice %60 {offsets = [0, 32], sizes = [128, 32], strides = [1, 1]} : vector<128x64xf32> to vector<128x32xf32>
    %63 = arith.mulf %56, %42 : vector<128x128xf32>
    %cst_24 = arith.constant dense<0.000000e+00> : vector<128x32xf32>
    %64 = tpu.matmul %63, %21, %cst_24 {dimension_numbers = #tpu.dot_dimension_numbers<[1], [1], [0], [0], [0, 0, 1, 0], [], []>} : vector<128x128xf32>, vector<32x128xf32>, vector<128x32xf32> -> vector<128x32xf32>
    %65 = arith.addf %64, %34 : vector<128x32xf32>
    %66 = arith.addf %65, %61 : vector<128x32xf32>
    %cst_25 = arith.constant 0.000000e+00 : f32
    %67 = vector.broadcast %cst_25 : f32 to vector<128x32xf32>
    %68 = arith.cmpf ogt, %66, %67 : vector<128x32xf32>
    %cst_26 = arith.constant 0.000000e+00 : f32
    %69 = vector.broadcast %cst_26 : f32 to vector<128x32xf32>
    %70 = arith.minimumf %66, %69 : vector<128x32xf32>
    %71 = math.exp %70 : vector<128x32xf32>
    %cst_27 = arith.constant 1.000000e+00 : f32
    %72 = vector.broadcast %cst_27 : f32 to vector<128x32xf32>
    %73 = arith.subf %71, %72 : vector<128x32xf32>
    %74 = arith.select %68, %66, %73 : vector<128x32xi1>, vector<128x32xf32>
    %cst_28 = arith.constant dense<0.000000e+00> : vector<128x1024xf32>
    %75 = tpu.matmul %74, %19, %cst_28 {dimension_numbers = #tpu.dot_dimension_numbers<[1], [0], [0], [1], [0, 0, 1, 1], [], []>} : vector<128x32xf32>, vector<32x1024xf32>, vector<128x1024xf32> -> vector<128x1024xf32>
    %76 = arith.mulf %75, %46 : vector<128x1024xf32>
    %cst_29 = arith.constant dense<0.000000e+00> : vector<128x32xf32>
    %77 = tpu.matmul %76, %20, %cst_29 {dimension_numbers = #tpu.dot_dimension_numbers<[1], [1], [0], [0], [0, 0, 1, 0], [], []>} : vector<128x1024xf32>, vector<32x1024xf32>, vector<128x32xf32> -> vector<128x32xf32>
    %78 = arith.addf %77, %35 : vector<128x32xf32>
    %79 = arith.addf %78, %62 : vector<128x32xf32>
    %cst_30 = arith.constant 0.000000e+00 : f32
    %80 = vector.broadcast %cst_30 : f32 to vector<128x32xf32>
    %81 = arith.cmpf ogt, %79, %80 : vector<128x32xf32>
    %cst_31 = arith.constant 0.000000e+00 : f32
    %82 = vector.broadcast %cst_31 : f32 to vector<128x32xf32>
    %83 = arith.minimumf %79, %82 : vector<128x32xf32>
    %84 = math.exp %83 : vector<128x32xf32>
    %cst_32 = arith.constant 1.000000e+00 : f32
    %85 = vector.broadcast %cst_32 : f32 to vector<128x32xf32>
    %86 = arith.subf %84, %85 : vector<128x32xf32>
    %87 = arith.select %81, %79, %86 : vector<128x32xi1>, vector<128x32xf32>
    %88 = arith.mulf %87, %52 : vector<128x32xf32>
    %cst_33 = arith.constant dense<0.000000e+00> : vector<8x128xf32>
    %89 = tpu.matmul %10, %88, %cst_33 {dimension_numbers = #tpu.dot_dimension_numbers<[1], [1], [0], [0], [0, 0, 1, 0], [], []>} : vector<8x32xf32>, vector<128x32xf32>, vector<8x128xf32> -> vector<8x128xf32>
    %cst_34 = arith.constant dense<0.000000e+00> : vector<8x128xf32>
    %90 = tpu.matmul %11, %38, %cst_34 {dimension_numbers = #tpu.dot_dimension_numbers<[1], [1], [0], [0], [0, 0, 1, 0], [], []>} : vector<8x32xf32>, vector<128x32xf32>, vector<8x128xf32> -> vector<8x128xf32>
    %91 = arith.mulf %2, %2 : vector<128x4xf32>
    %cst_35 = arith.constant dense<0.000000e+00> : vector<8x128xf32>
    %92 = tpu.matmul %12, %91, %cst_35 {dimension_numbers = #tpu.dot_dimension_numbers<[1], [1], [0], [0], [0, 0, 1, 0], [], []>} : vector<8x4xf32>, vector<128x4xf32>, vector<8x128xf32> -> vector<8x128xf32>
    %93 = arith.addf %89, %90 : vector<8x128xf32>
    %94 = arith.addf %93, %92 : vector<8x128xf32>
    %95 = vector.broadcast %9 : vector<1x1xf32> to vector<8x128xf32>
    %96 = arith.addf %94, %95 : vector<8x128xf32>
    %c0_36 = arith.constant 0 : index
    %c0_37 = arith.constant 0 : index
    %97 = vector.load %arg9[%c0_36, %c0_37] : memref<8x128xf32, #tpu.memory_space<vmem>>, vector<8x128xf32>
    tpu.vector_store %arg9[%c0_36, %c0_37], %96 {strides = array<i32>} : memref<8x128xf32, #tpu.memory_space<vmem>>, vector<8x128xf32>,
    return
  }
  func.func @transform_0(%arg0: i32) -> (i32, i32) {
    %c0_i32 = arith.constant 0 : i32
    %c0_i32_0 = arith.constant 0 : i32
    return %arg0, %c0_i32 : i32, i32
  }
  func.func @transform_1(%arg0: i32) -> (i32, i32) {
    %c0_i32 = arith.constant 0 : i32
    %c0_i32_0 = arith.constant 0 : i32
    %c0_i32_1 = arith.constant 0 : i32
    return %c0_i32, %c0_i32_0 : i32, i32
  }
  func.func @transform_2(%arg0: i32) -> (i32, i32) {
    %c0_i32 = arith.constant 0 : i32
    %c0_i32_0 = arith.constant 0 : i32
    %c0_i32_1 = arith.constant 0 : i32
    return %c0_i32, %c0_i32_0 : i32, i32
  }
  func.func @transform_3(%arg0: i32) -> (i32, i32) {
    %c0_i32 = arith.constant 0 : i32
    %c0_i32_0 = arith.constant 0 : i32
    %c0_i32_1 = arith.constant 0 : i32
    return %c0_i32, %c0_i32_0 : i32, i32
  }
  func.func @transform_4(%arg0: i32) -> (i32, i32) {
    %c0_i32 = arith.constant 0 : i32
    %c0_i32_0 = arith.constant 0 : i32
    %c0_i32_1 = arith.constant 0 : i32
    return %c0_i32, %c0_i32_0 : i32, i32
  }
  func.func @transform_5(%arg0: i32) -> (i32, i32) {
    %c0_i32 = arith.constant 0 : i32
    %c0_i32_0 = arith.constant 0 : i32
    %c0_i32_1 = arith.constant 0 : i32
    return %c0_i32, %c0_i32_0 : i32, i32
  }
  func.func @transform_6(%arg0: i32) -> (i32, i32) {
    %c0_i32 = arith.constant 0 : i32
    %c0_i32_0 = arith.constant 0 : i32
    %c0_i32_1 = arith.constant 0 : i32
    return %c0_i32, %c0_i32_0 : i32, i32
  }
  func.func @transform_7(%arg0: i32) -> (i32, i32) {
    %c0_i32 = arith.constant 0 : i32
    %c0_i32_0 = arith.constant 0 : i32
    %c0_i32_1 = arith.constant 0 : i32
    return %c0_i32, %c0_i32_0 : i32, i32
  }
  func.func @transform_8(%arg0: i32) -> (i32, i32) {
    %c0_i32 = arith.constant 0 : i32
    %c0_i32_0 = arith.constant 0 : i32
    return %c0_i32, %arg0 : i32, i32
  }
}

</mosaic_0001>

<bundles_post_ra>
// kernel: squeeze.1
= control target key start
LH: loop header
LB: loop body
LE: loop exit
PB: predicated region body
PF: predicated region fallthrough
CT: control target
= control target key end

     0   :  { %s85_s0 = inlined_call_operand.vmem [shape: f32[16], index: 0, kind: input, shape index: {}]   ;;  %s86_s1 = inlined_call_operand.hbm [shape: f32[2,8,1], index: 1, kind: output, shape index: {}]  }
   0x1   :  { %v5_v0 = vld [vmem:[%s85_s0] sm:$0x1] }
   0x2   :  { %2 = vsyncpa [#allocation1], 0  ;;  %6 = vst [vmem:[#allocation3] sm:$0x1] %v5_v0  ;;  %vm8_vm0 = vcmask 64512   ;;  %s58_s0 = smov 120  }
   0x3   :  { %s59_s8 = smov [#allocation0]  }
   0x4   :  { %s26_s9 = sshll.u32 %s59_s8, 4  ;;  %s27_s9 = int_to_ptr.vmem [resolvable:$true] %s26_s9 }
   0x5   :  { %s34_s10 = scalar_lea.vmem %s27_s9, 32  ;;  %p39_p1 = scmp.lt.s32.totalorder %s27_s9, %s27_s9 }
   0x6   :  { %p35_p0 = scmp.ne.s32.totalorder %s27_s9, %s34_s10  ;;  %p40_p2 = scmp.lt.s32.totalorder %s34_s10, %s34_s10 }
   0x8   :  { %p41_p3 = por %p40_p2, %p39_p1 }
   0x9   :  { %v10_v1 = vld [vmem:[#allocation3] sm:$0x1]  }
   0xa   :  { %v7_v2 = vld [vmem:[#allocation3] sm:$0x1]   ;;  %11 = vrot.lane.b32.xlu0 %v10_v1, %s58_s0  ;;  %p42_p4 = pnand %p41_p3, %p35_p0 }
   0xb   :  { %9 = vst.msk [vmem:[#allocation2] sm:$0x1] %vm8_vm0, %v7_v2  }
  0x7c   :  { %v12_v3 = vpop.permute.xlu0 %11  }
  0x7d   :  { %15 = vst.msk [vmem:[#allocation2 + $0x1] sm:$0x1] %vm8_vm0, %v12_v3  }
  0x84   :  { %v19_v4 = vld [vmem:[#allocation2] sm:$0x3] }
  0x85   :  { %21 = vst [vmem:[#allocation0] sm:$0x3] %v19_v4 }
  0x86   :  { %45 = shalt.err (!%p42_p4)
}
  0x87   :  { %s46_s13 = scalar_lea.hbm %s86_s1, 32 }
  0x88   :  { %p47_p5 = scmp.ne.s32.totalorder %s86_s1, %s46_s13  ;;  %p50_p6 = scmp.lt.u32.totalorder %s46_s13, %s86_s1 }
  0x8a   :  { %p52_p7 = pnand %p50_p6, %p47_p5 }
  0x8c   :  { %55 = shalt.err (!%p52_p7)
}
  0x8d   :  { %29 = dma.vmem_to_hbm [thread:$0]  %s27_s9, 32, %s86_s1, [#allocation1]  }
  0x8e   :  { %56 = dma.done.wait [#allocation1], 32  }
  0x8f   :  { %57 = vsyncadd [#allocation1], 4294967264 }
  0x90   :  { %31 = vsyncpa [#allocation1], 1 }

// kernel: _mixer_impl.1
= control target key start
LH: loop header
LB: loop body
LE: loop exit
PB: predicated region body
PF: predicated region fallthrough
CT: control target
= control target key end

     0   :  { %13 = vsyncpa [#allocation3], 0  ;;  %s8831_s0 = inlined_call_operand.hbm [shape: f32[128,36], index: 0, kind: input, shape index: {}]   ;;  %s8832_s1 = inlined_call_operand.hbm [shape: f32[32,768], index: 1, kind: input, shape index: {}]   ;;  %s8833_s2 = inlined_call_operand.hbm [shape: f32[64,128], index: 2, kind: input, shape index: {}]   ;;  %s8834_s3 = inlined_call_operand.hbm [shape: f32[64,1024], index: 3, kind: input, shape index: {}]   ;;  %s8835_s4 = inlined_call_operand.hbm [shape: f32[64,32], index: 4, kind: input, shape index: {}]   ;;  %s8836_s5 = inlined_call_operand.hbm [shape: f32[4,384], index: 5, kind: input, shape index: {}]   ;;  %s8837_s6 = inlined_call_operand.hbm [shape: f32[64,1024], index: 6, kind: input, shape index: {}]   ;;  %s8838_s7 = inlined_call_operand.hbm [shape: f32[8,1152], index: 7, kind: input, shape index: {}]   ;;  %s8839_s8 = inlined_call_operand.hbm [shape: f32[8,128], index: 8, kind: output, shape index: {}]  }
   0x1   :  { %14 = vsyncpa [#allocation6], 0 }
   0x2   :  { %15 = vsyncpa [#allocation9], 0 }
   0x3   :  { %16 = vsyncpa [#allocation12], 0 }
   0x4   :  { %17 = vsyncpa [#allocation15], 0 }
   0x5   :  { %18 = vsyncpa [#allocation4], 0  ;;  %s6340_s27 = smov [#allocation5]   ;;  %s6130_s9 = scalar_lea.hbm %s8832_s1, 3072 }
   0x6   :  { %s36_s28 = sshll.u32 %s6340_s27, 4  ;;  %p6131_p0 = scmp.ne.s32.totalorder %s8832_s1, %s6130_s9  ;;  %s37_s28 = int_to_ptr.vmem [resolvable:$true] %s36_s28 }
   0x7   :  { %p6134_p1 = scmp.lt.u32.totalorder %s6130_s9, %s8832_s1 }
   0x9   :  { %p6136_p2 = pnand %p6134_p1, %p6131_p0 }
   0xb   :  { %6139 = shalt.err (!%p6136_p2)
}
   0xc   :  { %s6140_s14 = scalar_lea.vmem %s37_s28, 3072  ;;  %p6145_p4 = scmp.lt.s32.totalorder %s37_s28, %s37_s28 }
   0xd   :  { %p6141_p3 = scmp.ne.s32.totalorder %s37_s28, %s6140_s14  ;;  %p6146_p5 = scmp.lt.s32.totalorder %s6140_s14, %s6140_s14 }
   0xf   :  { %p6147_p6 = por %p6146_p5, %p6145_p4 }
  0x11   :  { %p6148_p7 = pnand %p6147_p6, %p6141_p3 }
  0x13   :  { %6151 = shalt.err (!%p6148_p7)
}
  0x14   :  { %s6341_s15 = smov 768   ;;  %s6342_s16 = smov 48  }
  0x15   :  { %42 = dma.hbm_to_vmem [thread:$0]  %s8832_s1, 3072, %s37_s28, [#allocation6], %s6341_s15, %s6341_s15, %s6342_s16  }
  0x16   :  { %s6343_s19 = smov [#allocation8]   ;;  %s6152_s23 = scalar_lea.hbm %s8834_s3, 8192 }
  0x17   :  { %s60_s20 = sshll.u32 %s6343_s19, 4  ;;  %p6153_p8 = scmp.ne.s32.totalorder %s8834_s3, %s6152_s23  ;;  %s61_s20 = int_to_ptr.vmem [resolvable:$true] %s60_s20 }
  0x18   :  { %p6156_p9 = scmp.lt.u32.totalorder %s6152_s23, %s8834_s3 }
  0x1a   :  { %p6158_p10 = pnand %p6156_p9, %p6153_p8 }
  0x1c   :  { %6161 = shalt.err (!%p6158_p10)
}
  0x1d   :  { %s6162_s29 = scalar_lea.vmem %s61_s20, 8192  ;;  %p6167_p12 = scmp.lt.s32.totalorder %s61_s20, %s61_s20 }
  0x1e   :  { %p6163_p11 = scmp.ne.s32.totalorder %s61_s20, %s6162_s29  ;;  %p6168_p13 = scmp.lt.s32.totalorder %s6162_s29, %s6162_s29 }
  0x20   :  { %p6169_p0 = por %p6168_p13, %p6167_p12 }
  0x22   :  { %p6170_p1 = pnand %p6169_p0, %p6163_p11 }
  0x24   :  { %6173 = shalt.err (!%p6170_p1)
}
  0x25   :  { %s6344_s1 = smov 1024   ;;  %s6345_s28 = smov 64  }
  0x26   :  { %66 = dma.hbm_to_vmem [thread:$0]  %s8834_s3, 8192, %s61_s20, [#allocation9], %s6344_s1, %s6344_s1, %s6345_s28  }
  0x27   :  { %s6346_s10 = smov [#allocation11]   ;;  %s6347_s12 = smov [#allocation2]  }
  0x28   :  { %s85_s11 = sshll.u32 %s6346_s10, 4  ;;  %s24_s13 = sshll.u32 %s6347_s12, 4  ;;  %s86_s11 = int_to_ptr.vmem [resolvable:$true] %s85_s11  ;;  %s6431_s13 = int_to_ptr.vmem [resolvable:$true] %s24_s13 }
  0x29   :  { %s6174_s16 = scalar_lea.hbm %s8836_s5, 192 }
  0x2a   :  { %p6175_p2 = scmp.ne.s32.totalorder %s8836_s5, %s6174_s16  ;;  %p6178_p3 = scmp.lt.u32.totalorder %s6174_s16, %s8836_s5 }
  0x2c   :  { %p6180_p4 = pnand %p6178_p3, %p6175_p2 }
  0x2e   :  { %6183 = shalt.err (!%p6180_p4)
}
  0x2f   :  { %s6184_s3 = scalar_lea.vmem %s86_s11, 192  ;;  %p6189_p6 = scmp.lt.s32.totalorder %s86_s11, %s86_s11 }
  0x30   :  { %p6185_p5 = scmp.ne.s32.totalorder %s86_s11, %s6184_s3  ;;  %p6190_p7 = scmp.lt.s32.totalorder %s6184_s3, %s6184_s3 }
  0x32   :  { %p6191_p8 = por %p6190_p7, %p6189_p6 }
  0x34   :  { %p6192_p9 = pnand %p6191_p8, %p6185_p5 }
  0x36   :  { %6195 = shalt.err (!%p6192_p9)
}
  0x37   :  { %88 = dma.hbm_to_vmem [thread:$0]  %s8836_s5, 192, %s86_s11, [#allocation12]  }
  0x38   :  { %s6196_s25 = scalar_lea.hbm %s8831_s0, 2048 }
  0x39   :  { %p6197_p10 = scmp.ne.s32.totalorder %s8831_s0, %s6196_s25  ;;  %p6200_p11 = scmp.lt.u32.totalorder %s6196_s25, %s8831_s0 }
  0x3b   :  { %p6202_p12 = pnand %p6200_p11, %p6197_p10 }
  0x3d   :  { %6205 = shalt.err (!%p6202_p12)
}
  0x3e   :  { %s6206_s9 = scalar_lea.vmem %s6431_s13, 2048  ;;  %p6211_p0 = scmp.lt.s32.totalorder %s6431_s13, %s6431_s13 }
  0x3f   :  { %p6207_p13 = scmp.ne.s32.totalorder %s6431_s13, %s6206_s9  ;;  %p6212_p1 = scmp.lt.s32.totalorder %s6206_s9, %s6206_s9 }
  0x41   :  { %p6213_p2 = por %p6212_p1, %p6211_p0 }
  0x43   :  { %p6214_p3 = pnand %p6213_p2, %p6207_p13 }
  0x45   :  { %6217 = shalt.err (!%p6214_p3)
}
  0x46   :  { %s6348_s5 = smov 128   ;;  %s6349_s10 = smov 8  }
  0x47   :  { %30 = dma.hbm_to_vmem [thread:$0]  %s8831_s0, 2048, %s6431_s13, [#allocation3], %s6348_s5, %s6348_s5, %s6349_s10  }
  0x48   :  { %s6350_s14 = smov [#allocation7]   ;;  %s6351_s16 = smov [#allocation10]  }
  0x49   :  { %s48_s15 = sshll.u32 %s6350_s14, 4  ;;  %s72_s17 = sshll.u32 %s6351_s16, 4  ;;  %s49_s15 = int_to_ptr.vmem [resolvable:$true] %s48_s15  ;;  %s6465_s17 = int_to_ptr.vmem [resolvable:$true] %s72_s17 }
  0x4a   :  { %s6218_s21 = scalar_lea.hbm %s8833_s2, 1024 }
  0x4b   :  { %p6219_p4 = scmp.ne.s32.totalorder %s8833_s2, %s6218_s21  ;;  %p6222_p5 = scmp.lt.u32.totalorder %s6218_s21, %s8833_s2 }
  0x4d   :  { %p6224_p6 = pnand %p6222_p5, %p6219_p4 }
  0x4f   :  { %6227 = shalt.err (!%p6224_p6)
}
  0x50   :  { %s6228_s0 = scalar_lea.vmem %s49_s15, 1024  ;;  %p6233_p8 = scmp.lt.s32.totalorder %s49_s15, %s49_s15 }
  0x51   :  { %p6229_p7 = scmp.ne.s32.totalorder %s49_s15, %s6228_s0  ;;  %p6234_p9 = scmp.lt.s32.totalorder %s6228_s0, %s6228_s0 }
  0x53   :  { %p6235_p10 = por %p6234_p9, %p6233_p8 }
  0x55   :  { %p6236_p11 = pnand %p6235_p10, %p6229_p7 }
  0x57   :  { %6239 = shalt.err (!%p6236_p11)
}
  0x58   :  { %54 = dma.hbm_to_vmem [thread:$0]  %s8833_s2, 1024, %s49_s15, [#allocation6], %s6348_s5, %s6348_s5, %s6349_s10  }
  0x59   :  { %s6240_s27 = scalar_lea.hbm %s8835_s4, 1024 }
  0x5a   :  { %p6241_p12 = scmp.ne.s32.totalorder %s8835_s4, %s6240_s27  ;;  %p6244_p13 = scmp.lt.u32.totalorder %s6240_s27, %s8835_s4 }
  0x5c   :  { %p6246_p0 = pnand %p6244_p13, %p6241_p12 }
  0x5e   :  { %6249 = shalt.err (!%p6246_p0)
}
  0x5f   :  { %s6250_s12 = scalar_lea.vmem %s6465_s17, 1024  ;;  %p6255_p2 = scmp.lt.s32.totalorder %s6465_s17, %s6465_s17 }
  0x60   :  { %p6251_p1 = scmp.ne.s32.totalorder %s6465_s17, %s6250_s12  ;;  %p6256_p3 = scmp.lt.s32.totalorder %s6250_s12, %s6250_s12 }
  0x62   :  { %p6257_p4 = por %p6256_p3, %p6255_p2 }
  0x64   :  { %p6258_p5 = pnand %p6257_p4, %p6251_p1 }
  0x66   :  { %6261 = shalt.err (!%p6258_p5)
}
  0x67   :  { %78 = dma.hbm_to_vmem [thread:$0]  %s8835_s4, 1024, %s6465_s17, [#allocation9], %s6348_s5, %s6348_s5, %s6349_s10  }
  0x68   :  { %s6352_s15 = smov [#allocation13]   ;;  %s6353_s18 = smov [#allocation14]  }
  0x69   :  { %s94_s16 = sshll.u32 %s6352_s15, 4  ;;  %s107_s19 = sshll.u32 %s6353_s18, 4  ;;  %s95_s16 = int_to_ptr.vmem [resolvable:$true] %s94_s16  ;;  %s108_s19 = int_to_ptr.vmem [resolvable:$true] %s107_s19 }
  0x6a   :  { %s6262_s20 = scalar_lea.hbm %s8837_s6, 8192 }
  0x6b   :  { %p6263_p6 = scmp.ne.s32.totalorder %s8837_s6, %s6262_s20  ;;  %p6266_p7 = scmp.lt.u32.totalorder %s6262_s20, %s8837_s6 }
  0x6d   :  { %p6268_p8 = pnand %p6266_p7, %p6263_p6 }
  0x6f   :  { %6271 = shalt.err (!%p6268_p8)
}
  0x70   :  { %s6272_s4 = scalar_lea.vmem %s95_s16, 8192  ;;  %p6277_p10 = scmp.lt.s32.totalorder %s95_s16, %s95_s16 }
  0x71   :  { %p6273_p9 = scmp.ne.s32.totalorder %s95_s16, %s6272_s4  ;;  %p6278_p11 = scmp.lt.s32.totalorder %s6272_s4, %s6272_s4 }
  0x73   :  { %p6279_p12 = por %p6278_p11, %p6277_p10 }
  0x75   :  { %p6280_p13 = pnand %p6279_p12, %p6273_p9 }
  0x77   :  { %6283 = shalt.err (!%p6280_p13)
}
  0x78   :  { %100 = dma.hbm_to_vmem [thread:$0]  %s8837_s6, 8192, %s95_s16, [#allocation12], %s6344_s1, %s6344_s1, %s6345_s28  }
  0x79   :  { %s6284_s25 = scalar_lea.hbm %s8838_s7, 1152 }
  0x7a   :  { %p6285_p0 = scmp.ne.s32.totalorder %s8838_s7, %s6284_s25  ;;  %p6288_p1 = scmp.lt.u32.totalorder %s6284_s25, %s8838_s7 }
  0x7c   :  { %p6290_p2 = pnand %p6288_p1, %p6285_p0 }
  0x7e   :  { %6293 = shalt.err (!%p6290_p2)
}
  0x7f   :  { %s6294_s9 = scalar_lea.vmem %s108_s19, 1152  ;;  %p6299_p4 = scmp.lt.s32.totalorder %s108_s19, %s108_s19 }
  0x80   :  { %p6295_p3 = scmp.ne.s32.totalorder %s108_s19, %s6294_s9  ;;  %p6300_p5 = scmp.lt.s32.totalorder %s6294_s9, %s6294_s9 }
  0x82   :  { %p6301_p6 = por %p6300_p5, %p6299_p4 }
  0x84   :  { %p6302_p7 = pnand %p6301_p6, %p6295_p3 }
  0x86   :  { %6305 = shalt.err (!%p6302_p7)
}
  0x87   :  { %110 = dma.hbm_to_vmem [thread:$0]  %s8838_s7, 1152, %s108_s19, [#allocation15]  }
  0x88   :  { %6328 = dma.done.wait [#allocation3], 2048  }
  0x89   :  { %6329 = vsyncadd [#allocation3], 4294965248 }
  0x8a   :  { %6330 = dma.done.wait [#allocation6], 4096  }
  0x8b   :  { %6331 = vsyncadd [#allocation6], 4294963200 }
  0x8c   :  { %6332 = dma.done.wait [#allocation9], 9216  }
  0x8d   :  { %6333 = vsyncadd [#allocation9], 4294958080 }
  0x8e   :  { %6334 = dma.done.wait [#allocation12], 8384  }
  0x8f   :  { %6335 = vsyncadd [#allocation12], 4294958912 }
  0x90   :  { %6336 = dma.done.wait [#allocation15], 1152  }
  0x91   :  { %6337 = vsyncadd [#allocation15], 4294966144  ;;  %v8840_v0 = vmov 0.0   ;;  %v161_v1 = vld [vmem:[#allocation5 + $0x8] sm:$0xff]  ;;  %v167_v2 = vld [vmem:[#allocation5 + $0x38] sm:$0xff]  ;;  %vm354_vm0 = vcmask 261120  }
  0x92   :  { %467 = vmatprep.mubr.f32.mxu0 %v8840_v0  ;;  %515 = vmatprep.mubr.f32.mxu1 %v8840_v0  ;;  %v160_v3 = vld [vmem:[#allocation5] sm:$0xff]  ;;  %v5688_v4 = vpack.c.bf16 %v167_v2, %v161_v1  ;;  %v166_v5 = vld [vmem:[#allocation5 + $0x30] sm:$0xff]  ;;  %v173_v6 = vld [vmem:[#allocation5 + $0x68] sm:$0xff]  ;;  %s6355_s7 = smov 96   ;;  %vm954_vm1 = vcmask 523264   ;;  %vm2313_vm2 = vcmask 1043456  }
  0x93   :  { %v179_v7 = vld [vmem:[#allocation5 + $0x98] sm:$0xff]  ;;  %v5690_v8 = vpack.c.bf16 %v166_v5, %v160_v3  ;;  %v172_v10 = vld [vmem:[#allocation5 + $0x60] sm:$0xff]  ;;  %v178_v11 = vld [vmem:[#allocation5 + $0x90] sm:$0xff]  ;;  %vm2280_vm3 = vcmask 31744   ;;  %s6358_s11 = smov [#allocation16]  }
  0x94   :  { %v5692_v9 = vpack.c.bf16 %v179_v7, %v173_v6  ;;  %5689 = vmatprep.subr.bf16.mxu0 %v5688_v4  ;;  %5976 = vmatprep.subr.bf16.mxu1 %v5688_v4  ;;  %v5694_v12 = vpack.c.bf16 %v178_v11, %v172_v10  ;;  %v6531_v13 = vld [vmem:[#allocation2] sm:$0xff]  ;;  %v163_v15 = vld [vmem:[#allocation5 + $0x18] sm:$0xff]  ;;  %v169_v16 = vld [vmem:[#allocation5 + $0x48] sm:$0xff]  ;;  %s4970_s12 = sshll.u32 %s6358_s11, 4  ;;  %s4971_s12 = int_to_ptr.vmem [resolvable:$true] %s4970_s12 }
  0x95   :  { %5691 = vmatpush1.bf16.msra.mxu0 %v5690_v8  ;;  %5978 = vmatpush1.bf16.msra.mxu1 %v5690_v8  ;;  %v6533_v14 = vld [vmem:[#allocation2 + $0x40] sm:$0xff]  ;;  %v162_v17 = vld [vmem:[#allocation5 + $0x10] sm:$0xff]  ;;  %v5696_v18 = vpack.c.bf16 %v169_v16, %v163_v15  ;;  %v175_v20 = vld [vmem:[#allocation5 + $0x78] sm:$0xff]  ;;  %s6306_s2 = scalar_lea.vmem %s4971_s12, 128  ;;  %p6311_p9 = scmp.lt.s32.totalorder %s4971_s12, %s4971_s12 }
  0x96   :  { %5693 = vmatprep.subr.bf16.mxu0 %v5692_v9  ;;  %5977 = vmatprep.subr.bf16.mxu1 %v5692_v9  ;;  %v168_v19 = vld [vmem:[#allocation5 + $0x40] sm:$0xff]  ;;  %v181_v21 = vld [vmem:[#allocation5 + $0xa8] sm:$0xff]  ;;  %v174_v24 = vld [vmem:[#allocation5 + $0x70] sm:$0xff]  ;;  %p6307_p8 = scmp.ne.s32.totalorder %s4971_s12, %s6306_s2  ;;  %p6312_p10 = scmp.lt.s32.totalorder %s6306_s2, %s6306_s2 }
  0x97   :  { %v6535_v22 = vld [vmem:[#allocation2 + $0x8] sm:$0xff]  ;;  %v5698_v23 = vpack.c.bf16 %v168_v19, %v162_v17  ;;  %v180_v25 = vld [vmem:[#allocation5 + $0xa0] sm:$0xff]  ;;  %v171_v27 = vld [vmem:[#allocation5 + $0x58] sm:$0xff]  ;;  %v5700_v34 = vpack.c.bf16 %v181_v21, %v175_v20  ;;  %2245 = vrot.lane.b32.xlu0 %v6531_v13, %s6355_s7 }
  0x98   :  { %v165_v26 = vld [vmem:[#allocation5 + $0x28] sm:$0xff]  ;;  %v164_v28 = vld [vmem:[#allocation5 + $0x20] sm:$0xff]  ;;  %v170_v29 = vld [vmem:[#allocation5 + $0x50] sm:$0xff]  ;;  %v5702_v37 = vpack.c.bf16 %v180_v25, %v174_v24  ;;  %p6313_p11 = por %p6312_p10, %p6311_p9 }
  0x99   :  { %5695 = vmatpush1.bf16.msra.mxu0 %v5694_v12  ;;  %5979 = vmatpush1.bf16.msra.mxu1 %v5694_v12  ;;  %v6543_v30 = vld [vmem:[#allocation2 + $0x48] sm:$0xff]  ;;  %v5704_v31 = vpack.c.bf16 %v171_v27, %v165_v26  ;;  %v183_v33 = vld [vmem:[#allocation5 + $0xb8] sm:$0xff]  ;;  %v5706_v35 = vpack.c.bf16 %v170_v29, %v164_v28  ;;  %v176_v36 = vld [vmem:[#allocation5 + $0x80] sm:$0xff] }
  0x9a   :  { %v177_v32 = vld [vmem:[#allocation5 + $0x88] sm:$0xff]  ;;  %5697 = vmatprep.subr.bf16.mxu1 %v5696_v18  ;;  %v182_v39 = vld [vmem:[#allocation5 + $0xb0] sm:$0xff]  ;;  %v184_v40 = vld [vmem:[#allocation7] sm:$0xff]  ;;  %p6314_p12 = pnand %p6313_p11, %p6307_p8 }
  0x9b   :  { %5705 = vmatprep.subr.bf16.mxu0 %v5704_v31  ;;  %v5708_v38 = vpack.c.bf16 %v183_v33, %v177_v32  ;;  %v185_v41 = vld [vmem:[#allocation7 + $0x8] sm:$0xff]  ;;  %v195_v42 = vld [vmem:[#allocation8 + $0x18] sm:$0xff]  ;;  %v6550_v44 = vld [vmem:[#allocation2 + $0x10] sm:$0xff]  ;;  %v5710_v46 = vpack.c.bf16 %v182_v39, %v176_v36  ;;  %2247 = vrot.lane.b32.xlu0 %v6535_v22, %s6355_s7 }
  0x9c   :  { %4983 = vmatmul.mubr.msk.f32.vlgmr.msra.gmra.mrb[0].mxu0 %vm354_vm0, %v6531_v13  ;;  %4991 = vmatmul.mubr.msk.f32.vlgmr.msra.gmra.mrb[0].mxu1 %vm354_vm0, %v6533_v14  ;;  %v203_v43 = vld [vmem:[#allocation8 + $0x58] sm:$0xff]  ;;  %v6553_v45 = vld [vmem:[#allocation2 + $0x50] sm:$0xff]  ;;  %v5712_v47 = vpack.c.bf16 %v185_v41, %v184_v40  ;;  %v6570_v51 = vld [vmem:[#allocation2 + $0x20] sm:$0xff] }
  0x9d   :  { %473 = vmatprep.mubr.f32.mxu0 %v8840_v0  ;;  %521 = vmatprep.mubr.f32.mxu1 %v8840_v0  ;;  %v5744_v48 = vpack.c.bf16 %v203_v43, %v195_v42  ;;  %v6560_v49 = vld [vmem:[#allocation2 + $0x18] sm:$0xff]  ;;  %v6573_v52 = vld [vmem:[#allocation2 + $0x60] sm:$0xff]  ;;  %v6580_v53 = vld [vmem:[#allocation2 + $0x28] sm:$0xff] }
  0x9e   :  { %5699 = vmatpush1.bf16.msra.mxu1 %v5698_v23  ;;  %5707 = vmatpush1.bf16.msra.mxu0 %v5706_v35  ;;  %v6563_v50 = vld [vmem:[#allocation2 + $0x58] sm:$0xff]  ;;  %v6583_v54 = vld [vmem:[#allocation2 + $0x68] sm:$0xff]  ;;  %v6590_v55 = vld [vmem:[#allocation2 + $0x30] sm:$0xff] }
  0x9f   :  { %5701 = vmatprep.subr.bf16.mxu1 %v5700_v34  ;;  %5709 = vmatprep.subr.bf16.mxu0 %v5708_v38  ;;  %v6593_v56 = vld [vmem:[#allocation2 + $0x70] sm:$0xff]  ;;  %v6600_v57 = vld [vmem:[#allocation2 + $0x38] sm:$0xff]  ;;  %v188_v4 = vld [vmem:[#allocation7 + $0x20] sm:$0xff] }
  0xa0   :  { %4984 = vmatmul.mubr.msk.f32.gmra.mrb[2].mxu0 %vm354_vm0, %v6535_v22  ;;  %4992 = vmatmul.mubr.msk.f32.gmra.mrb[2].mxu1 %vm354_vm0, %v6543_v30  ;;  %v6603_v58 = vld [vmem:[#allocation2 + $0x78] sm:$0xff]  ;;  %v186_v59 = vld [vmem:[#allocation7 + $0x10] sm:$0xff]  ;;  %v189_v8 = vld [vmem:[#allocation7 + $0x28] sm:$0xff] }
  0xa1   :  { %479 = vmatprep.mubr.f32.mxu0 %v8840_v0  ;;  %527 = vmatprep.mubr.f32.mxu1 %v8840_v0  ;;  %v194_v60 = vld [vmem:[#allocation8 + $0x10] sm:$0xff]  ;;  %v187_v62 = vld [vmem:[#allocation7 + $0x18] sm:$0xff]  ;;  %v5720_v12 = vpack.c.bf16 %v189_v8, %v188_v4  ;;  %v193_v29 = vld [vmem:[#allocation8 + $0x8] sm:$0xff] }
  0xa2   :  { %5703 = vmatpush1.bf16.msra.mxu1 %v5702_v37  ;;  %5711 = vmatpush1.bf16.msra.mxu0 %v5710_v46  ;;  %v202_v61 = vld [vmem:[#allocation8 + $0x50] sm:$0xff]  ;;  %v211_v63 = vld [vmem:[#allocation8 + $0x98] sm:$0xff]  ;;  %v5716_v3 = vpack.c.bf16 %v187_v62, %v186_v59  ;;  %v201_v31 = vld [vmem:[#allocation8 + $0x48] sm:$0xff] }
  0xa3   :  { %5713 = vmatprep.subr.bf16.mxu1 %v5712_v47  ;;  %5745 = vmatprep.subr.bf16.mxu0 %v5744_v48  ;;  %v219_v1 = vld [vmem:[#allocation8 + $0xd8] sm:$0xff]  ;;  %v5746_v2 = vpack.c.bf16 %v202_v61, %v194_v60  ;;  %v210_v6 = vld [vmem:[#allocation8 + $0x90] sm:$0xff]  ;;  %v5728_v32 = vpack.c.bf16 %v201_v31, %v193_v29  ;;  %v216_v8 = vld [vmem:[#allocation8 + $0xc0] sm:$0xff] }
  0xa4   :  { %4985 = vmatmul.mubr.msk.f32.gmra.mrb[4].mxu0 %vm354_vm0, %v6550_v44  ;;  %4993 = vmatmul.mubr.msk.f32.gmra.mrb[4].mxu1 %vm354_vm0, %v6553_v45  ;;  %v5748_v5 = vpack.c.bf16 %v219_v1, %v211_v63  ;;  %v218_v7 = vld [vmem:[#allocation8 + $0xd0] sm:$0xff]  ;;  %v227_v9 = vld [vmem:[#allocation8 + $0x118] sm:$0xff]  ;;  %v224_v31 = vld [vmem:[#allocation8 + $0x100] sm:$0xff] }
  0xa5   :  { %485 = vmatprep.mubr.f32.mxu0 %v8840_v0  ;;  %533 = vmatprep.mubr.f32.mxu1 %v8840_v0  ;;  %v235_v10 = vld [vmem:[#allocation8 + $0x158] sm:$0xff]  ;;  %v5750_v11 = vpack.c.bf16 %v218_v7, %v210_v6  ;;  %v226_v16 = vld [vmem:[#allocation8 + $0x110] sm:$0xff]  ;;  %v208_v7 = vld [vmem:[#allocation8 + $0x80] sm:$0xff] }
  0xa6   :  { %v5752_v15 = vpack.c.bf16 %v235_v10, %v227_v9  ;;  %v234_v17 = vld [vmem:[#allocation8 + $0x150] sm:$0xff]  ;;  %v243_v19 = vld [vmem:[#allocation8 + $0x198] sm:$0xff]  ;;  %2249 = vrot.lane.b32.xlu1 %v6550_v44, %s6355_s7  ;;  %2253 = vrot.lane.b32.xlu0 %v6570_v51, %s6355_s7 }
  0xa7   :  { %v5754_v18 = vpack.c.bf16 %v234_v17, %v226_v16  ;;  %v251_v20 = vld [vmem:[#allocation8 + $0x1d8] sm:$0xff]  ;;  %v242_v23 = vld [vmem:[#allocation8 + $0x190] sm:$0xff] }
  0xa8   :  { %4986 = vmatmul.mubr.msk.f32.gmra.mrb[6].mxu0 %vm354_vm0, %v6560_v49  ;;  %4994 = vmatmul.mubr.msk.f32.gmra.mrb[6].mxu1 %vm354_vm0, %v6563_v50  ;;  %v5756_v21 = vpack.c.bf16 %v251_v20, %v243_v19  ;;  %v250_v24 = vld [vmem:[#allocation8 + $0x1d0] sm:$0xff]  ;;  %v191_v27 = vld [vmem:[#allocation7 + $0x38] sm:$0xff] }
  0xa9   :  { %491 = vmatprep.mubr.f32.mxu0 %v8840_v0  ;;  %539 = vmatprep.mubr.f32.mxu1 %v8840_v0  ;;  %v5758_v25 = vpack.c.bf16 %v250_v24, %v242_v23  ;;  %v190_v26 = vld [vmem:[#allocation7 + $0x30] sm:$0xff]  ;;  %v199_v33 = vld [vmem:[#allocation8 + $0x38] sm:$0xff] }
  0xaa   :  { %v5724_v28 = vpack.c.bf16 %v191_v27, %v190_v26  ;;  %v207_v34 = vld [vmem:[#allocation8 + $0x78] sm:$0xff]  ;;  %2251 = vrot.lane.b32.xlu1 %v6560_v49, %s6355_s7  ;;  %2257 = vrot.lane.b32.xlu0 %v6590_v55, %s6355_s7  ;;  %v198_v41 = vld [vmem:[#allocation8 + $0x30] sm:$0xff] }
  0xab   :  { %v5776_v35 = vpack.c.bf16 %v207_v34, %v199_v33  ;;  %v152_v36 = vld [vmem:[#allocation14 + $0x8] sm:$0xff] }
  0xac   :  { %4987 = vmatmul.mubr.msk.f32.gmra.mrb[8].mxu0 %vm354_vm0, %v6570_v51  ;;  %4995 = vmatmul.mubr.msk.f32.gmra.mrb[8].mxu1 %vm354_vm0, %v6573_v52  ;;  %v206_v42 = vld [vmem:[#allocation8 + $0x70] sm:$0xff]  ;;  %v215_v46 = vld [vmem:[#allocation8 + $0xb8] sm:$0xff] }
  0xad   :  { %497 = vmatprep.mubr.f32.mxu0 %v8840_v0  ;;  %545 = vmatprep.mubr.f32.mxu1 %v8840_v0  ;;  %v214_v62 = vld [vmem:[#allocation8 + $0xb0] sm:$0xff]  ;;  %v239_v4 = vld [vmem:[#allocation8 + $0x178] sm:$0xff] }
  0xae   :  { %2255 = vrot.lane.b32.xlu1 %v6580_v53, %s6355_s7  ;;  %2261 = vrot.lane.b32.xlu0 %v6533_v14, %s6355_s7  ;;  %v222_v63 = vld [vmem:[#allocation8 + $0xf0] sm:$0xff]  ;;  %v247_v26 = vld [vmem:[#allocation8 + $0x1b8] sm:$0xff] }
  0xaf   :  { %v5782_v16 = vpack.c.bf16 %v222_v63, %v214_v62  ;;  %v238_v23 = vld [vmem:[#allocation8 + $0x170] sm:$0xff]  ;;  %v255_v27 = vld [vmem:[#allocation8 + $0x1f8] sm:$0xff] }
  0xb0   :  { %4988 = vmatmul.mubr.msk.f32.gmra.mrb[10].mxu0 %vm354_vm0, %v6580_v53  ;;  %4996 = vmatmul.mubr.msk.f32.gmra.mrb[10].mxu1 %vm354_vm0, %v6583_v54 }
  0xb1   :  { %503 = vmatprep.mubr.f32.mxu0 %v8840_v0  ;;  %551 = vmatprep.mubr.f32.mxu1 %v8840_v0 }
  0xb2   :  { %2259 = vrot.lane.b32.xlu1 %v6600_v57, %s6355_s7  ;;  %2265 = vrot.lane.b32.xlu0 %v6553_v45, %s6355_s7 }
  0xb4   :  { %4989 = vmatmul.mubr.msk.f32.gmra.mrb[12].mxu0 %vm354_vm0, %v6590_v55  ;;  %4997 = vmatmul.mubr.msk.f32.gmra.mrb[12].mxu1 %vm354_vm0, %v6593_v56 }
  0xb5   :  { %509 = vmatprep.mubr.f32.mxu0 %v8840_v0  ;;  %557 = vmatprep.mubr.f32.mxu1 %v8840_v0 }
  0xb6   :  { %2263 = vrot.lane.b32.xlu1 %v6543_v30, %s6355_s7  ;;  %2269 = vrot.lane.b32.xlu0 %v6573_v52, %s6355_s7 }
  0xb8   :  { %4990 = vmatmul.mubr.msk.f32.gmra.mrb[14].mxu0 %vm354_vm0, %v6600_v57  ;;  %4998 = vmatmul.mubr.msk.f32.gmra.mrb[14].mxu1 %vm354_vm0, %v6603_v58 }
  0xb9   :  { %628 = vmatprep.mubr.f32.mxu1 %v8840_v0  ;;  %789 = vmatprep.mubr.f32.mxu0 %v8840_v0 }
  0xba   :  { %2267 = vrot.lane.b32.xlu1 %v6563_v50, %s6355_s7  ;;  %2273 = vrot.lane.b32.xlu0 %v6593_v56, %s6355_s7 }
  0xbc   :  { %4999 = vmatmul.mubr.msk.f32.vlgmr.msra.gmra.mrb[16].mxu1 %vm354_vm0, %v6531_v13  ;;  %5015 = vmatmul.mubr.msk.f32.vlgmr.msra.gmra.mrb[16].mxu0 %vm354_vm0, %v6531_v13  ;;  %v330_v13 = vlaneseq }
  0xbd   :  { %634 = vmatprep.mubr.f32.mxu1 %v8840_v0  ;;  %795 = vmatprep.mubr.f32.mxu0 %v8840_v0 }
  0xbe   :  { %5715 = vmatpush3.bf16.msra.mxu1 %v5712_v47  ;;  %5747 = vmatpush1.bf16.msra.mxu0 %v5746_v2  ;;  %v223_v47 = vld [vmem:[#allocation8 + $0xf8] sm:$0xff] }
  0xbf   :  { %5717 = vmatprep.subr.bf16.mxu1 %v5716_v3  ;;  %5749 = vmatprep.subr.bf16.mxu0 %v5748_v5 }
  0xc0   :  { %5000 = vmatmul.mubr.msk.f32.gmra.mrb[18].mxu1 %vm354_vm0, %v6535_v22  ;;  %5016 = vmatmul.mubr.msk.f32.gmra.mrb[18].mxu0 %vm354_vm0, %v6535_v22  ;;  %v6734_v22 = vshrl.u32 %v330_v13, 7  ;;  %v241_v13 = vld [vmem:[#allocation8 + $0x188] sm:$0xff] }
  0xc1   :  { %640 = vmatprep.mubr.f32.mxu1 %v8840_v0  ;;  %801 = vmatprep.mubr.f32.mxu0 %v8840_v0 }
  0xc2   :  { %5719 = vmatpush3.bf16.msra.mxu1 %v5716_v3  ;;  %5751 = vmatpush1.bf16.msra.mxu0 %v5750_v11  ;;  %v231_v3 = vld [vmem:[#allocation8 + $0x138] sm:$0xff] }
  0xc3   :  { %5721 = vmatprep.subr.bf16.mxu1 %v5720_v12  ;;  %5753 = vmatprep.subr.bf16.mxu0 %v5752_v15  ;;  %v233_v15 = vld [vmem:[#allocation8 + $0x148] sm:$0xff]  ;;  %v5784_v20 = vpack.c.bf16 %v239_v4, %v231_v3 }
  0xc4   :  { %5001 = vmatmul.mubr.msk.f32.gmra.mrb[20].mxu1 %vm354_vm0, %v6550_v44  ;;  %5017 = vmatmul.mubr.msk.f32.gmra.mrb[20].mxu0 %vm354_vm0, %v6550_v44 }
  0xc5   :  { %646 = vmatprep.mubr.f32.mxu1 %v8840_v0  ;;  %807 = vmatprep.mubr.f32.mxu0 %v8840_v0 }
  0xc6   :  { %5723 = vmatpush3.bf16.msra.mxu1 %v5720_v12  ;;  %5755 = vmatpush1.bf16.msra.mxu0 %v5754_v18  ;;  %v225_v12 = vld [vmem:[#allocation8 + $0x108] sm:$0xff] }
  0xc7   :  { %5757 = vmatprep.subr.bf16.mxu0 %v5756_v21  ;;  %5725 = vmatprep.subr.bf16.mxu1 %v5724_v28  ;;  %v230_v21 = vld [vmem:[#allocation8 + $0x130] sm:$0xff]  ;;  %v5736_v29 = vpack.c.bf16 %v233_v15, %v225_v12 }
  0xc8   :  { %5002 = vmatmul.mubr.msk.f32.gmra.mrb[22].mxu1 %vm354_vm0, %v6560_v49  ;;  %5018 = vmatmul.mubr.msk.f32.gmra.mrb[22].mxu0 %vm354_vm0, %v6560_v49 }
  0xc9   :  { %652 = vmatprep.mubr.f32.mxu1 %v8840_v0  ;;  %813 = vmatprep.mubr.f32.mxu0 %v8840_v0 }
  0xca   :  { %5759 = vmatpush1.bf16.msra.mxu0 %v5758_v25  ;;  %5727 = vmatpush3.bf16.msra.mxu1 %v5724_v28  ;;  %v5734_v25 = vpack.c.bf16 %v216_v8, %v208_v7 }
  0xcb   :  { %5729 = vmatprep.subr.bf16.mxu1 %v5728_v32  ;;  %5777 = vmatprep.subr.bf16.mxu0 %v5776_v35  ;;  %v232_v32 = vld [vmem:[#allocation8 + $0x140] sm:$0xff] }
  0xcc   :  { %5003 = vmatmul.mubr.msk.f32.gmra.mrb[24].mxu1 %vm354_vm0, %v6570_v51  ;;  %5019 = vmatmul.mubr.msk.f32.gmra.mrb[24].mxu0 %vm354_vm0, %v6570_v51  ;;  %v200_v51 = vld [vmem:[#allocation8 + $0x40] sm:$0xff] }
  0xcd   :  { %658 = vmatprep.mubr.f32.mxu1 %v8840_v0  ;;  %819 = vmatprep.mubr.f32.mxu0 %v8840_v0 }
  0xce   :  { %2271 = vrot.lane.b32.xlu1 %v6583_v54, %s6355_s7 }
  0xd0   :  { %5004 = vmatmul.mubr.msk.f32.gmra.mrb[26].mxu1 %vm354_vm0, %v6580_v53  ;;  %5020 = vmatmul.mubr.msk.f32.gmra.mrb[26].mxu0 %vm354_vm0, %v6580_v53 }
  0xd1   :  { %664 = vmatprep.mubr.f32.mxu1 %v8840_v0  ;;  %825 = vmatprep.mubr.f32.mxu0 %v8840_v0 }
  0xd2   :  { %2275 = vrot.lane.b32.xlu1 %v6603_v58, %s6355_s7 }
  0xd4   :  { %5005 = vmatmul.mubr.msk.f32.gmra.mrb[28].mxu1 %vm354_vm0, %v6590_v55  ;;  %5021 = vmatmul.mubr.msk.f32.gmra.mrb[28].mxu0 %vm354_vm0, %v6590_v55 }
  0xd5   :  { %670 = vmatprep.mubr.f32.mxu1 %v8840_v0  ;;  %831 = vmatprep.mubr.f32.mxu0 %v8840_v0 }
  0xd8   :  { %5006 = vmatmul.mubr.msk.f32.gmra.mrb[30].mxu1 %vm354_vm0, %v6600_v57  ;;  %5022 = vmatmul.mubr.msk.f32.gmra.mrb[30].mxu0 %vm354_vm0, %v6600_v57  ;;  %v217_v57 = vld [vmem:[#allocation8 + $0xc8] sm:$0xff] }
  0xd9   :  { %676 = vmatprep.mubr.f32.mxu1 %v8840_v0  ;;  %837 = vmatprep.mubr.f32.mxu0 %v8840_v0 }
  0xdc   :  { %5007 = vmatmul.mubr.msk.f32.gmra.mrb[32].mxu1 %vm354_vm0, %v6533_v14  ;;  %5023 = vmatmul.mubr.msk.f32.gmra.mrb[32].mxu0 %vm354_vm0, %v6533_v14  ;;  %v6741_v14 = vsub.s32 2, %v6734_v22 }
  0xdd   :  { %682 = vmatprep.mubr.f32.mxu1 %v8840_v0  ;;  %843 = vmatprep.mubr.f32.mxu0 %v8840_v0 }
  0xde   :  { %v6747_v38 = vrot.slane %v152_v36, %v6741_v14  ;;  %v5786_v36 = vpack.c.bf16 %v238_v23, %v230_v21 }
  0xe0   :  { %5008 = vmatmul.mubr.msk.f32.gmra.mrb[34].mxu1 %vm354_vm0, %v6543_v30  ;;  %5024 = vmatmul.mubr.msk.f32.gmra.mrb[34].mxu0 %vm354_vm0, %v6543_v30  ;;  %v151_v30 = vld [vmem:[#allocation14] sm:$0xff] }
  0xe1   :  { %688 = vmatprep.mubr.f32.mxu1 %v8840_v0  ;;  %849 = vmatprep.mubr.f32.mxu0 %v8840_v0  ;;  %v6744_v37 = vrot.slane %v151_v30, %v6741_v14  ;;  %v249_v30 = vld [vmem:[#allocation8 + $0x1c8] sm:$0xff] }
  0xe4   :  { %5009 = vmatmul.mubr.msk.f32.gmra.mrb[36].mxu1 %vm354_vm0, %v6553_v45  ;;  %5025 = vmatmul.mubr.msk.f32.gmra.mrb[36].mxu0 %vm354_vm0, %v6553_v45 }
  0xe5   :  { %694 = vmatprep.mubr.f32.mxu1 %v8840_v0  ;;  %855 = vmatprep.mubr.f32.mxu0 %v8840_v0 }
  0xe8   :  { %5010 = vmatmul.mubr.msk.f32.gmra.mrb[38].mxu1 %vm354_vm0, %v6563_v50  ;;  %5026 = vmatmul.mubr.msk.f32.gmra.mrb[38].mxu0 %vm354_vm0, %v6563_v50  ;;  %v192_v50 = vld [vmem:[#allocation8] sm:$0xff] }
  0xe9   :  { %700 = vmatprep.mubr.f32.mxu1 %v8840_v0  ;;  %861 = vmatprep.mubr.f32.mxu0 %v8840_v0  ;;  %v5730_v2 = vpack.c.bf16 %v200_v51, %v192_v50  ;;  %v5740_v50 = vpack.c.bf16 %v249_v30, %v241_v13  ;;  %v240_v51 = vld [vmem:[#allocation8 + $0x180] sm:$0xff] }
  0xec   :  { %5011 = vmatmul.mubr.msk.f32.gmra.mrb[40].mxu1 %vm354_vm0, %v6573_v52  ;;  %5027 = vmatmul.mubr.msk.f32.gmra.mrb[40].mxu0 %vm354_vm0, %v6573_v52  ;;  %v5778_v52 = vpack.c.bf16 %v206_v42, %v198_v41 }
  0xed   :  { %706 = vmatprep.mubr.f32.mxu1 %v8840_v0  ;;  %867 = vmatprep.mubr.f32.mxu0 %v8840_v0 }
  0xf0   :  { %5012 = vmatmul.mubr.msk.f32.gmra.mrb[42].mxu1 %vm354_vm0, %v6583_v54  ;;  %5028 = vmatmul.mubr.msk.f32.gmra.mrb[42].mxu0 %vm354_vm0, %v6583_v54 }
  0xf1   :  { %712 = vmatprep.mubr.f32.mxu1 %v8840_v0  ;;  %873 = vmatprep.mubr.f32.mxu0 %v8840_v0 }
  0xf4   :  { %5013 = vmatmul.mubr.msk.f32.gmra.mrb[44].mxu1 %vm354_vm0, %v6593_v56  ;;  %5029 = vmatmul.mubr.msk.f32.gmra.mrb[44].mxu0 %vm354_vm0, %v6593_v56  ;;  %v209_v56 = vld [vmem:[#allocation8 + $0x88] sm:$0xff] }
  0xf5   :  { %718 = vmatprep.mubr.f32.mxu1 %v8840_v0  ;;  %879 = vmatprep.mubr.f32.mxu0 %v8840_v0  ;;  %v5732_v6 = vpack.c.bf16 %v217_v57, %v209_v56 }
  0xf8   :  { %5014 = vmatmul.mubr.msk.f32.gmra.mrb[46].mxu1 %vm354_vm0, %v6603_v58  ;;  %5030 = vmatmul.mubr.msk.f32.gmra.mrb[46].mxu0 %vm354_vm0, %v6603_v58  ;;  %v5780_v58 = vpack.c.bf16 %v223_v47, %v215_v46  ;;  %v254_v46 = vld [vmem:[#allocation8 + $0x1f0] sm:$0xff] }
  0xf9   :  { %1469 = vmatprep.mubr.f32.mxu0 %v8840_v0 }
 0x16f   :  { %v469_v39 = vpop.f32.mrb[0].mxu0  ;;  %v6749_v40 = vpop.f32.mrb[0].mxu1 }
 0x170   :  { %v470_v43 = vadd.f32 %v469_v39, %v6744_v37  ;;  %v471_v44 = vpop.f32.mrb[1].mxu0  ;;  %v6752_v45 = vpop.f32.mrb[1].mxu1 }
 0x171   :  { %v472_v48 = vadd.f32 %v471_v44, %v6747_v38  ;;  %v246_v44 = vld [vmem:[#allocation8 + $0x1b0] sm:$0xff] }
 0x172   :  { %v886_v49 = vmax.f32 %v470_v43, 0.0  ;;  %v5788_v43 = vpack.c.bf16 %v255_v27, %v247_v26 }
 0x173   :  { %v6755_v53 = vmax.f32 %v472_v48, 0.0  ;;  %v475_v54 = vpop.f32.mrb[2].mxu0  ;;  %v6757_v55 = vpop.f32.mrb[2].mxu1  ;;  %v5738_v48 = vpack.c.bf16 %v232_v32, %v224_v31 }
 0x174   :  { %v476_v59 = vadd.f32 %v475_v54, %v6744_v37  ;;  %v477_v60 = vpop.f32.mrb[3].mxu0  ;;  %5461 = vmatprep.mubr.msk.f32.mxu1 %vm954_vm1, %v886_v49  ;;  %v6761_v61 = vpop.f32.mrb[3].mxu1 }
 0x175   :  { %v478_v1 = vadd.f32 %v477_v60, %v6747_v38  ;;  %5063 = vmatmul.mubr.msk.f32.vlgmr.msra.gmra.mrb[48].mxu0 %vm954_vm1, %v6755_v53  ;;  %v5790_v60 = vpack.c.bf16 %v254_v46, %v246_v44 }
 0x176   :  { %v887_v5 = vmax.f32 %v476_v59, 0.0  ;;  %1475 = vmatprep.mubr.f32.mxu0 %v8840_v0  ;;  %5779 = vmatpush1.bf16.msra.mxu0 %v5778_v52  ;;  %v248_v52 = vld [vmem:[#allocation8 + $0x1c0] sm:$0xff]  ;;  %v205_v59 = vld [vmem:[#allocation8 + $0x68] sm:$0xff] }
 0x177   :  { %v6767_v9 = vmax.f32 %v478_v1, 0.0  ;;  %v481_v10 = vpop.f32.mrb[4].mxu0  ;;  %v6769_v11 = vpop.f32.mrb[4].mxu1  ;;  %5781 = vmatprep.subr.bf16.mxu0 %v5780_v58  ;;  %v197_v58 = vld [vmem:[#allocation8 + $0x28] sm:$0xff]  ;;  %v5742_v3 = vpack.c.bf16 %v248_v52, %v240_v51 }
 0x178   :  { %v482_v17 = vadd.f32 %v481_v10, %v6744_v37  ;;  %v483_v18 = vpop.f32.mrb[5].mxu0  ;;  %5462 = vmatmul.mubr.msk.f32.vlgmr.msra.gmra.mrb[48].mxu1 %vm954_vm1, %v887_v5  ;;  %v6773_v19 = vpop.f32.mrb[5].mxu1  ;;  %v5760_v5 = vpack.c.bf16 %v205_v59, %v197_v58  ;;  %v530_v44 = vadd.f32 %v6769_v11, %v6744_v37 }
 0x179   :  { %v484_v24 = vadd.f32 %v483_v18, %v6747_v38  ;;  %5064 = vmatmul.mubr.msk.f32.gmra.mrb[50].mxu0 %vm954_vm1, %v6767_v9  ;;  %5731 = vmatpush1.bf16.msra.mxu1 %v5730_v2 }
 0x17a   :  { %v888_v28 = vmax.f32 %v482_v17, 0.0  ;;  %1481 = vmatprep.mubr.f32.mxu0 %v8840_v0  ;;  %5733 = vmatprep.subr.bf16.mxu1 %v5732_v6 }
 0x17b   :  { %v6779_v33 = vmax.f32 %v484_v24, 0.0  ;;  %v487_v34 = vpop.f32.mrb[6].mxu0  ;;  %v6781_v35 = vpop.f32.mrb[6].mxu1  ;;  %5783 = vmatpush1.bf16.msra.mxu0 %v5782_v16 }
 0x17c   :  { %v488_v39 = vadd.f32 %v487_v34, %v6744_v37  ;;  %v489_v41 = vpop.f32.mrb[7].mxu0  ;;  %5464 = vmatprep.mubr.msk.f32.mxu1 %vm954_vm1, %v888_v28  ;;  %v6785_v42 = vpop.f32.mrb[7].mxu1  ;;  %5785 = vmatprep.subr.bf16.mxu0 %v5784_v20  ;;  %v518_v28 = vadd.f32 %v6749_v40, %v6744_v37 }
 0x17d   :  { %v490_v47 = vadd.f32 %v489_v41, %v6747_v38  ;;  %5065 = vmatmul.mubr.msk.f32.gmra.mrb[52].mxu0 %vm954_vm1, %v6779_v33  ;;  %5735 = vmatpush1.bf16.msra.mxu1 %v5734_v25 }
 0x17e   :  { %v889_v49 = vmax.f32 %v488_v39, 0.0  ;;  %1487 = vmatprep.mubr.f32.mxu0 %v8840_v0  ;;  %5737 = vmatprep.subr.bf16.mxu1 %v5736_v29  ;;  %v524_v39 = vadd.f32 %v6757_v55, %v6744_v37  ;;  %v894_v41 = vmax.f32 %v518_v28, 0.0  ;;  %v212_v28 = vld [vmem:[#allocation8 + $0xa0] sm:$0xff] }
 0x17f   :  { %v6791_v54 = vmax.f32 %v490_v47, 0.0  ;;  %v493_v56 = vpop.f32.mrb[8].mxu0  ;;  %v6793_v57 = vpop.f32.mrb[8].mxu1  ;;  %5787 = vmatpush1.bf16.msra.mxu0 %v5786_v36 }
 0x180   :  { %v494_v62 = vadd.f32 %v493_v56, %v6744_v37  ;;  %v495_v63 = vpop.f32.mrb[9].mxu0  ;;  %5465 = vmatmul.mubr.msk.f32.gmra.mrb[50].mxu1 %vm954_vm1, %v889_v49  ;;  %v6797_v1 = vpop.f32.mrb[9].mxu1  ;;  %5789 = vmatprep.subr.bf16.mxu0 %v5788_v43  ;;  %v520_v43 = vadd.f32 %v6752_v45, %v6747_v38  ;;  %v895_v55 = vmax.f32 %v524_v39, 0.0  ;;  %v536_v45 = vadd.f32 %v6781_v35, %v6744_v37 }
 0x181   :  { %v496_v2 = vadd.f32 %v495_v63, %v6747_v38  ;;  %5066 = vmatmul.mubr.msk.f32.gmra.mrb[54].mxu0 %vm954_vm1, %v6791_v54  ;;  %5739 = vmatpush1.bf16.msra.mxu1 %v5738_v48  ;;  %v526_v49 = vadd.f32 %v6761_v61, %v6747_v38  ;;  %v542_v51 = vadd.f32 %v6793_v57, %v6744_v37 }
 0x182   :  { %v890_v4 = vmax.f32 %v494_v62, 0.0  ;;  %1493 = vmatprep.mubr.f32.mxu0 %v8840_v0  ;;  %5741 = vmatprep.subr.bf16.mxu1 %v5740_v50  ;;  %v6854_v11 = vmax.f32 %v520_v43, 0.0  ;;  %v896_v50 = vmax.f32 %v530_v44, 0.0  ;;  %v897_v58 = vmax.f32 %v536_v45, 0.0  ;;  %v245_v45 = vld [vmem:[#allocation8 + $0x1a8] sm:$0xff] }
 0x183   :  { %v6803_v6 = vmax.f32 %v496_v2, 0.0  ;;  %v499_v7 = vpop.f32.mrb[10].mxu0  ;;  %v547_v8 = vpop.f32.mrb[10].mxu1  ;;  %5791 = vmatpush1.bf16.msra.mxu0 %v5790_v60  ;;  %v6871_v59 = vmax.f32 %v526_v49, 0.0  ;;  %v532_v57 = vadd.f32 %v6773_v19, %v6747_v38  ;;  %v898_v60 = vmax.f32 %v542_v51, 0.0  ;;  %v253_v49 = vld [vmem:[#allocation8 + $0x1e8] sm:$0xff] }
 0x184   :  { %v500_v10 = vadd.f32 %v499_v7, %v6744_v37  ;;  %v501_v12 = vpop.f32.mrb[11].mxu0  ;;  %5467 = vmatprep.mubr.msk.f32.mxu1 %vm954_vm1, %v890_v4  ;;  %v6807_v15 = vpop.f32.mrb[11].mxu1  ;;  %v548_v61 = vadd.f32 %v547_v8, %v6744_v37  ;;  %v538_v19 = vadd.f32 %v6785_v42, %v6747_v38  ;;  %v544_v42 = vadd.f32 %v6797_v1, %v6747_v38 }
 0x185   :  { %v502_v16 = vadd.f32 %v501_v12, %v6747_v38  ;;  %5067 = vmatmul.mubr.msk.f32.gmra.mrb[56].mxu0 %vm954_vm1, %v6803_v6  ;;  %5743 = vmatpush1.bf16.msra.mxu1 %v5742_v3  ;;  %v204_v12 = vld [vmem:[#allocation8 + $0x60] sm:$0xff]  ;;  %v550_v1 = vadd.f32 %v6807_v15, %v6747_v38 }
 0x186   :  { %v891_v17 = vmax.f32 %v500_v10, 0.0  ;;  %1499 = vmatprep.mubr.f32.mxu0 %v8840_v0  ;;  %5761 = vmatprep.subr.bf16.mxu1 %v5760_v5  ;;  %v899_v4 = vmax.f32 %v548_v61, 0.0  ;;  %v6885_v5 = vmax.f32 %v532_v57, 0.0  ;;  %v196_v10 = vld [vmem:[#allocation8 + $0x20] sm:$0xff] }
 0x187   :  { %v6813_v18 = vmax.f32 %v502_v16, 0.0  ;;  %v505_v20 = vpop.f32.mrb[12].mxu0  ;;  %v553_v21 = vpop.f32.mrb[12].mxu1  ;;  %v6898_v16 = vmax.f32 %v538_v19, 0.0 }
 0x188   :  { %v506_v23 = vadd.f32 %v505_v20, %v6744_v37  ;;  %v507_v24 = vpop.f32.mrb[13].mxu0  ;;  %5468 = vmatmul.mubr.msk.f32.gmra.mrb[52].mxu1 %vm954_vm1, %v891_v17  ;;  %v6817_v25 = vpop.f32.mrb[13].mxu1  ;;  %v554_v35 = vadd.f32 %v553_v21, %v6744_v37  ;;  %v213_v20 = vld [vmem:[#allocation8 + $0xa8] sm:$0xff] }
 0x189   :  { %v508_v26 = vadd.f32 %v507_v24, %v6747_v38  ;;  %5068 = vmatmul.mubr.msk.f32.gmra.mrb[58].mxu0 %vm954_vm1, %v6813_v18  ;;  %v221_v21 = vld [vmem:[#allocation8 + $0xe8] sm:$0xff]  ;;  %v5762_v24 = vpack.c.bf16 %v204_v12, %v196_v10  ;;  %v556_v43 = vadd.f32 %v6817_v25, %v6747_v38  ;;  %v256_v10 = vld [vmem:[#allocation10] sm:$0xff] }
 0x18a   :  { %v892_v27 = vmax.f32 %v506_v23, 0.0  ;;  %1505 = vmatprep.mubr.f32.mxu0 %v8840_v0  ;;  %v900_v3 = vmax.f32 %v554_v35, 0.0  ;;  %v156_v35 = vld [vmem:[#allocation14 + $0x28] sm:$0xff]  ;;  %v257_v12 = vld [vmem:[#allocation10 + $0x8] sm:$0xff] }
 0x18b   :  { %v6825_v29 = vmax.f32 %v508_v26, 0.0  ;;  %v511_v31 = vpop.f32.mrb[14].mxu0  ;;  %v559_v32 = vpop.f32.mrb[14].mxu1  ;;  %v6911_v26 = vmax.f32 %v544_v42, 0.0  ;;  %v6941_v25 = vrot.slane %v156_v35, %v6741_v14 }
 0x18c   :  { %v512_v34 = vadd.f32 %v511_v31, %v6744_v37  ;;  %v513_v13 = vpop.f32.mrb[15].mxu0  ;;  %5470 = vmatprep.mubr.msk.f32.mxu1 %vm954_vm1, %v892_v27  ;;  %v6829_v30 = vpop.f32.mrb[15].mxu1  ;;  %v560_v63 = vadd.f32 %v559_v32, %v6744_v37  ;;  %v5764_v27 = vpack.c.bf16 %v221_v21, %v213_v20  ;;  %v220_v31 = vld [vmem:[#allocation8 + $0xe0] sm:$0xff] }
 0x18d   :  { %v514_v36 = vadd.f32 %v513_v13, %v6747_v38  ;;  %5069 = vmatmul.mubr.msk.f32.gmra.mrb[60].mxu0 %vm954_vm1, %v6825_v29  ;;  %v237_v13 = vld [vmem:[#allocation8 + $0x168] sm:$0xff]  ;;  %v5766_v15 = vpack.c.bf16 %v220_v31, %v212_v28  ;;  %v562_v19 = vadd.f32 %v6829_v30, %v6747_v38 }
 0x18e   :  { %v893_v40 = vmax.f32 %v512_v34, 0.0  ;;  %1511 = vmatprep.mubr.f32.mxu0 %v8840_v0  ;;  %v901_v8 = vmax.f32 %v560_v63, 0.0  ;;  %v229_v34 = vld [vmem:[#allocation8 + $0x128] sm:$0xff]  ;;  %v244_v63 = vld [vmem:[#allocation8 + $0x1a0] sm:$0xff] }
 0x18f   :  { %v6841_v46 = vmax.f32 %v514_v36, 0.0  ;;  %v6843_v47 = vpop.f32.mrb[16].mxu1  ;;  %v6923_v39 = vpop.f32.mrb[16].mxu0  ;;  %v5768_v44 = vpack.c.bf16 %v237_v13, %v229_v34  ;;  %v6967_v13 = vpack.c.bf16 %v257_v12, %v256_v10 }
 0x190   :  { %5471 = vmatmul.mubr.msk.f32.gmra.mrb[54].mxu1 %vm954_vm1, %v893_v40  ;;  %v6846_v48 = vpop.f32.mrb[17].mxu1  ;;  %8849 = vst [vmem:[#allocation23_spill] sm:$0xff] %v6923_v39  ;;  %v228_v40 = vld [vmem:[#allocation8 + $0x120] sm:$0xff] }
 0x191   :  { %5473 = vmatprep.mubr.msk.f32.mxu1 %vm954_vm1, %v894_v41  ;;  %5070 = vmatmul.mubr.msk.f32.gmra.mrb[62].mxu0 %vm954_vm1, %v6841_v46  ;;  %v6927_v41 = vmax.f32 %v550_v1, 0.0 }
 0x192   :  { %1517 = vmatprep.mubr.f32.mxu0 %v8840_v0 }
 0x193   :  { %v6860_v52 = vpop.f32.mrb[18].mxu1 }
 0x194   :  { %5474 = vmatmul.mubr.msk.f32.gmra.mrb[56].mxu1 %vm954_vm1, %v895_v55  ;;  %v6863_v56 = vpop.f32.mrb[19].mxu1  ;;  %v236_v55 = vld [vmem:[#allocation8 + $0x160] sm:$0xff] }
 0x195   :  { %5476 = vmatprep.mubr.msk.f32.mxu1 %vm954_vm1, %v896_v50  ;;  %5071 = vmatmul.mubr.msk.f32.gmra.mrb[64].mxu0 %vm954_vm1, %v6854_v11  ;;  %v5770_v57 = vpack.c.bf16 %v236_v55, %v228_v40  ;;  %v6969_v40 = vmax.f32 %v562_v19, 0.0 }
 0x196   :  { %1523 = vmatprep.mubr.f32.mxu0 %v8840_v0 }
 0x197   :  { %v6875_v62 = vpop.f32.mrb[20].mxu1 }
 0x198   :  { %5477 = vmatmul.mubr.msk.f32.gmra.mrb[58].mxu1 %vm954_vm1, %v897_v58  ;;  %v6879_v2 = vpop.f32.mrb[21].mxu1  ;;  %v793_v58 = vpop.f32.mrb[17].mxu0 }
 0x199   :  { %5479 = vmatprep.mubr.msk.f32.mxu1 %vm954_vm1, %v898_v60  ;;  %5072 = vmatmul.mubr.msk.f32.gmra.mrb[66].mxu0 %vm954_vm1, %v6871_v59  ;;  %v6943_v61 = vpop.f32.mrb[18].mxu0  ;;  %v5772_v60 = vpack.c.bf16 %v253_v49, %v245_v45  ;;  %v794_v20 = vadd.f32 %v793_v58, %v6941_v25 }
 0x19a   :  { %1529 = vmatprep.mubr.f32.mxu0 %v8840_v0  ;;  %8850 = vst [vmem:[#allocation24_spill] sm:$0xff] %v6943_v61 }
 0x19b   :  { %v6889_v7 = vpop.f32.mrb[22].mxu1  ;;  %v934_v38 = vmax.f32 %v794_v20, 0.0 }
 0x19c   :  { %5480 = vmatmul.mubr.msk.f32.gmra.mrb[60].mxu1 %vm954_vm1, %v899_v4  ;;  %v6892_v37 = vpop.f32.mrb[23].mxu1  ;;  %v6946_v4 = vmax.f32 %v556_v43, 0.0 }
 0x19d   :  { %5482 = vmatprep.mubr.msk.f32.mxu1 %vm954_vm1, %v900_v3  ;;  %5073 = vmatmul.mubr.msk.f32.gmra.mrb[68].mxu0 %vm954_vm1, %v6885_v5  ;;  %v799_v3 = vpop.f32.mrb[19].mxu0 }
 0x19e   :  { %1535 = vmatprep.mubr.f32.mxu0 %v8840_v0  ;;  %v800_v21 = vadd.f32 %v799_v3, %v6941_v25 }
 0x19f   :  { %v6902_v17 = vpop.f32.mrb[24].mxu1 }
 0x1a0   :  { %5483 = vmatmul.mubr.msk.f32.gmra.mrb[62].mxu1 %vm954_vm1, %v901_v8  ;;  %v6905_v23 = vpop.f32.mrb[25].mxu1  ;;  %v252_v8 = vld [vmem:[#allocation8 + $0x1e0] sm:$0xff]  ;;  %v935_v30 = vmax.f32 %v800_v21, 0.0 }
 0x1a1   :  { %5074 = vmatmul.mubr.msk.f32.gmra.mrb[70].mxu0 %vm954_vm1, %v6898_v16  ;;  %1308 = vmatprep.mubr.f32.mxu1 %v8840_v0  ;;  %v5774_v34 = vpack.c.bf16 %v252_v8, %v244_v63 }
 0x1a2   :  { %1541 = vmatprep.mubr.f32.mxu0 %v8840_v0 }
 0x1a3   :  { %v6915_v32 = vpop.f32.mrb[26].mxu1 }
 0x1a4   :  { %5047 = vmatmul.mubr.msk.f32.vlgmr.msra.gmra.mrb[64].mxu1 %vm954_vm1, %v6755_v53  ;;  %v6919_v36 = vpop.f32.mrb[27].mxu1 }
 0x1a5   :  { %5763 = vmatpush1.bf16.msra.mxu1 %v5762_v24  ;;  %5075 = vmatmul.mubr.msk.f32.gmra.mrb[72].mxu0 %vm954_vm1, %v6911_v26  ;;  %v6954_v24 = vpop.f32.mrb[20].mxu0 }
 0x1a6   :  { %1314 = vmatprep.mubr.f32.mxu1 %v8840_v0  ;;  %1547 = vmatprep.mubr.f32.mxu0 %v8840_v0  ;;  %8851 = vst [vmem:[#allocation25_spill] sm:$0xff] %v6954_v24 }
 0x1a7   :  { %5765 = vmatprep.subr.bf16.mxu1 %v5764_v27  ;;  %v6931_v50 = vpop.f32.mrb[28].mxu1  ;;  %v805_v27 = vpop.f32.mrb[21].mxu0 }
 0x1a8   :  { %5048 = vmatmul.mubr.msk.f32.gmra.mrb[66].mxu1 %vm954_vm1, %v6767_v9  ;;  %v6935_v51 = vpop.f32.mrb[29].mxu1  ;;  %v806_v28 = vadd.f32 %v805_v27, %v6941_v25  ;;  %v6964_v31 = vpop.f32.mrb[22].mxu0 }
 0x1a9   :  { %5076 = vmatmul.mubr.msk.f32.gmra.mrb[74].mxu0 %vm954_vm1, %v6927_v41  ;;  %1320 = vmatprep.mubr.f32.mxu1 %v8840_v0  ;;  %8852 = vst [vmem:[#allocation26_spill] sm:$0xff] %v6964_v31 }
 0x1aa   :  { %1553 = vmatprep.mubr.f32.mxu0 %v8840_v0  ;;  %5767 = vmatpush1.bf16.msra.mxu1 %v5766_v15  ;;  %v811_v15 = vpop.f32.mrb[23].mxu0  ;;  %v936_v55 = vmax.f32 %v806_v28, 0.0 }
 0x1ab   :  { %5769 = vmatprep.subr.bf16.mxu1 %v5768_v44  ;;  %v6950_v42 = vpop.f32.mrb[30].mxu1  ;;  %v6973_v44 = vpack.c.bf16 %v935_v30, %v934_v38  ;;  %v812_v45 = vadd.f32 %v811_v15, %v6941_v25  ;;  %v6976_v49 = vpop.f32.mrb[24].mxu0 }
 0x1ac   :  { %5049 = vmatmul.mubr.msk.f32.gmra.mrb[68].mxu1 %vm954_vm1, %v6779_v33  ;;  %v6958_v1 = vpop.f32.mrb[31].mxu1  ;;  %8854 = vst [vmem:[#allocation28_spill] sm:$0xff] %v6976_v49  ;;  %v817_v58 = vpop.f32.mrb[25].mxu0 }
 0x1ad   :  { %5077 = vmatmul.mubr.msk.f32.gmra.mrb[76].mxu0 %vm954_vm1, %v6946_v4  ;;  %1326 = vmatprep.mubr.f32.mxu1 %v8840_v0  ;;  %8853 = vst [vmem:[#allocation27_spill] sm:$0xff] %v6973_v44  ;;  %v6986_v63 = vpop.f32.mrb[26].mxu0 }
 0x1ae   :  { %1559 = vmatprep.mubr.f32.mxu0 %v8840_v0  ;;  %5771 = vmatpush1.bf16.msra.mxu1 %v5770_v57  ;;  %v937_v57 = vmax.f32 %v812_v45, 0.0  ;;  %8855 = vst [vmem:[#allocation29_spill] sm:$0xff] %v6986_v63  ;;  %v823_v3 = vpop.f32.mrb[27].mxu0 }
 0x1af   :  { %5773 = vmatprep.subr.bf16.mxu1 %v5772_v60  ;;  %v6971_v43 = vpop.f32.mrb[32].mxu1  ;;  %v818_v60 = vadd.f32 %v817_v58, %v6941_v25  ;;  %v824_v12 = vadd.f32 %v823_v3, %v6941_v25  ;;  %v6995_v20 = vpop.f32.mrb[28].mxu0 }
 0x1b0   :  { %5050 = vmatmul.mubr.msk.f32.gmra.mrb[70].mxu1 %vm954_vm1, %v6791_v54  ;;  %v6980_v35 = vpop.f32.mrb[33].mxu1  ;;  %v6992_v8 = vpack.c.bf16 %v937_v57, %v936_v55  ;;  %8857 = vst [vmem:[#allocation31_spill] sm:$0xff] %v6995_v20  ;;  %v829_v27 = vpop.f32.mrb[29].mxu0 }
 0x1b1   :  { %5078 = vmatmul.mubr.msk.f32.gmra.mrb[78].mxu0 %vm954_vm1, %v6969_v40  ;;  %1332 = vmatprep.mubr.f32.mxu1 %v8840_v0  ;;  %v938_v10 = vmax.f32 %v818_v60, 0.0  ;;  %v939_v38 = vmax.f32 %v824_v12, 0.0  ;;  %v830_v30 = vadd.f32 %v829_v27, %v6941_v25  ;;  %v7005_v28 = vpop.f32.mrb[30].mxu0 }
 0x1b2   :  { %1791 = vmatprep.mubr.f32.mxu0 %v8840_v0  ;;  %5775 = vmatpush1.bf16.msra.mxu1 %v5774_v34  ;;  %8856 = vst [vmem:[#allocation30_spill] sm:$0xff] %v6992_v8  ;;  %8858 = vst [vmem:[#allocation32_spill] sm:$0xff] %v7005_v28  ;;  %v835_v34 = vpop.f32.mrb[31].mxu0 }
 0x1b3   :  { %5793 = vmatprep.subr.bf16.mxu1 %v6967_v13  ;;  %v6990_v19 = vpop.f32.mrb[34].mxu1  ;;  %v7010_v55 = vpack.c.bf16 %v939_v38, %v938_v10  ;;  %v940_v45 = vmax.f32 %v830_v30, 0.0  ;;  %v836_v58 = vadd.f32 %v835_v34, %v6941_v25  ;;  %v7013_v57 = vpop.f32.mrb[32].mxu0  ;;  %v264_v38 = vld [vmem:[#allocation11] sm:$0xff] }
 0x1b4   :  { %5051 = vmatmul.mubr.msk.f32.gmra.mrb[72].mxu1 %vm954_vm1, %v6803_v6  ;;  %v6999_v21 = vpop.f32.mrb[35].mxu1  ;;  %8860 = vst [vmem:[#allocation34_spill] sm:$0xff] %v7013_v57  ;;  %v841_v3 = vpop.f32.mrb[33].mxu0  ;;  %v2279_v34 = vcombine.high %v264_v38, %v264_v38 }
 0x1b5   :  { %5095 = vmatmul.mubr.msk.f32.vlgmr.msra.gmra.mrb[80].mxu0 %vm954_vm1, %v6755_v53  ;;  %1338 = vmatprep.mubr.f32.mxu1 %v8840_v0  ;;  %8859 = vst [vmem:[#allocation33_spill] sm:$0xff] %v7010_v55  ;;  %v941_v12 = vmax.f32 %v836_v58, 0.0  ;;  %v842_v10 = vadd.f32 %v841_v3, %v6941_v25  ;;  %v7023_v27 = vpop.f32.mrb[34].mxu0 }
 0x1b6   :  { %1797 = vmatprep.mubr.f32.mxu0 %v8840_v0  ;;  %8861 = vst [vmem:[#allocation35_spill] sm:$0xff] %v7023_v27  ;;  %v847_v30 = vpop.f32.mrb[35].mxu0  ;;  %5127 = vmatprep.subr.msk.mxu0 %vm2313_vm2, %v2279_v34 }
 0x1b7   :  { %v7008_v15 = vpop.f32.mrb[36].mxu1  ;;  %v7028_v28 = vpack.c.bf16 %v941_v12, %v940_v45  ;;  %v942_v20 = vmax.f32 %v842_v10, 0.0  ;;  %v848_v63 = vadd.f32 %v847_v30, %v6941_v25  ;;  %v7031_v49 = vpop.f32.mrb[36].mxu0  ;;  %5128 = vmatpush1.msk.msra.mxu0 %vm2313_vm2, %v264_v38  ;;  %v8868_v38 = vmov 0.0  }
 0x1b8   :  { %5052 = vmatmul.mubr.msk.f32.gmra.mrb[74].mxu1 %vm954_vm1, %v6813_v18  ;;  %v7017_v60 = vpop.f32.mrb[37].mxu1  ;;  %8863 = vst [vmem:[#allocation37_spill] sm:$0xff] %v7031_v49  ;;  %v853_v45 = vpop.f32.mrb[37].mxu0 }
 0x1b9   :  { %5096 = vmatmul.mubr.msk.f32.gmra.mrb[82].mxu0 %vm954_vm1, %v6767_v9  ;;  %1344 = vmatprep.mubr.f32.mxu1 %v8840_v0  ;;  %8862 = vst [vmem:[#allocation36_spill] sm:$0xff] %v7028_v28  ;;  %v943_v3 = vmax.f32 %v848_v63, 0.0  ;;  %v854_v12 = vadd.f32 %v853_v45, %v6941_v25 }
 0x1ba   :  { %1803 = vmatprep.mubr.f32.mxu0 %v8840_v0 }
 0x1bb   :  { %v7026_v57 = vpop.f32.mrb[38].mxu1  ;;  %v7044_v10 = vpop.f32.mrb[38].mxu0  ;;  %v7048_v49 = vpack.c.bf16 %v943_v3, %v942_v20  ;;  %v944_v63 = vmax.f32 %v854_v12, 0.0 }
 0x1bc   :  { %5053 = vmatmul.mubr.msk.f32.gmra.mrb[76].mxu1 %vm954_vm1, %v6825_v29  ;;  %v7035_v58 = vpop.f32.mrb[39].mxu1  ;;  %8864 = vst [vmem:[#allocation38_spill] sm:$0xff] %v7044_v10  ;;  %v859_v34 = vpop.f32.mrb[39].mxu0 }
 0x1bd   :  { %5097 = vmatmul.mubr.msk.f32.gmra.mrb[84].mxu0 %vm954_vm1, %v6779_v33  ;;  %1350 = vmatprep.mubr.f32.mxu1 %v8840_v0  ;;  %8865 = vst [vmem:[#allocation39_spill] sm:$0xff] %v7048_v49  ;;  %v860_v31 = vadd.f32 %v859_v34, %v6941_v25 }
 0x1be   :  { %1809 = vmatprep.mubr.f32.mxu0 %v8840_v0 }
 0x1bf   :  { %v7046_v30 = vpop.f32.mrb[40].mxu1  ;;  %v7055_v0 = vpop.f32.mrb[40].mxu0  ;;  %v945_v20 = vmax.f32 %v860_v31, 0.0 }
 0x1c0   :  { %5054 = vmatmul.mubr.msk.f32.gmra.mrb[78].mxu1 %vm954_vm1, %v6841_v46  ;;  %v7052_v27 = vpop.f32.mrb[41].mxu1  ;;  %8867 = vst [vmem:[#allocation41_spill] sm:$0xff] %v7055_v0  ;;  %v865_v45 = vpop.f32.mrb[41].mxu0 }
 0x1c1   :  { %8866 = vst [vmem:[#allocation40_spill] sm:$0xff] %v7052_v27  ;;  %5098 = vmatmul.mubr.msk.f32.gmra.mrb[86].mxu0 %vm954_vm1, %v6791_v54  ;;  %1356 = vmatprep.mubr.f32.mxu1 %v8868_v38  ;;  %v866_v3 = vadd.f32 %v865_v45, %v6941_v25  ;;  %v7070_v34 = vpack.c.bf16 %v945_v20, %v944_v63 }
 0x1c2   :  { %1815 = vmatprep.mubr.f32.mxu0 %v8868_v38 }
 0x1c3   :  { %v7062_v10 = vpop.f32.mrb[42].mxu1  ;;  %v7064_v24 = vpop.f32.mrb[42].mxu0  ;;  %8870 = vst [vmem:[#allocation43_spill] sm:$0xff] %v7070_v34  ;;  %v946_v31 = vmax.f32 %v866_v3, 0.0 }
 0x1c4   :  { %8869 = vst [vmem:[#allocation42_spill] sm:$0xff] %v7064_v24  ;;  %5055 = vmatmul.mubr.msk.f32.gmra.mrb[80].mxu1 %vm954_vm1, %v6854_v11  ;;  %v7068_v12 = vpop.f32.mrb[43].mxu1  ;;  %v871_v0 = vpop.f32.mrb[43].mxu0 }
 0x1c5   :  { %5099 = vmatmul.mubr.msk.f32.gmra.mrb[88].mxu0 %vm954_vm1, %v6803_v6  ;;  %1362 = vmatprep.mubr.f32.mxu1 %v8868_v38  ;;  %v872_v45 = vadd.f32 %v871_v0, %v6941_v25 }
 0x1c6   :  { %1821 = vmatprep.mubr.f32.mxu0 %v8868_v38 }
 0x1c7   :  { %v7077_v61 = vpop.f32.mrb[44].mxu1  ;;  %v947_v24 = vmax.f32 %v872_v45, 0.0  ;;  %v7079_v39 = vpop.f32.mrb[44].mxu0 }
 0x1c8   :  { %8871 = vst [vmem:[#allocation44_spill] sm:$0xff] %v7079_v39  ;;  %5056 = vmatmul.mubr.msk.f32.gmra.mrb[82].mxu1 %vm954_vm1, %v6871_v59  ;;  %v7083_v63 = vpop.f32.mrb[45].mxu1  ;;  %v877_v20 = vpop.f32.mrb[45].mxu0 }
 0x1c9   :  { %8872 = vst [vmem:[#allocation45_spill] sm:$0xff] %v7083_v63  ;;  %5100 = vmatmul.mubr.msk.f32.gmra.mrb[90].mxu0 %vm954_vm1, %v6813_v18  ;;  %1368 = vmatprep.mubr.f32.mxu1 %v8868_v38  ;;  %v7088_v3 = vpack.c.bf16 %v947_v24, %v946_v31  ;;  %v878_v0 = vadd.f32 %v877_v20, %v6941_v25  ;;  %v274_v63 = vld [vmem:[#allocation13 + $0x40] sm:$0xff] }
 0x1ca   :  { %1827 = vmatprep.mubr.f32.mxu0 %v8868_v38 }
 0x1cb   :  { %8873 = vst [vmem:[#allocation46_spill] sm:$0xff] %v7088_v3  ;;  %v7092_v45 = vpop.f32.mrb[46].mxu1  ;;  %v7094_v39 = vpop.f32.mrb[46].mxu0  ;;  %v948_v24 = vmax.f32 %v878_v0, 0.0 }
 0x1cc   :  { %8874 = vst [vmem:[#allocation47_spill] sm:$0xff] %v7094_v39  ;;  %5057 = vmatmul.mubr.msk.f32.gmra.mrb[84].mxu1 %vm954_vm1, %v6885_v5  ;;  %v7098_v34 = vpop.f32.mrb[47].mxu1  ;;  %v883_v49 = vpop.f32.mrb[47].mxu0 }
 0x1cd   :  { %8875 = vst [vmem:[#allocation48_spill] sm:$0xff] %v7098_v34  ;;  %5101 = vmatmul.mubr.msk.f32.gmra.mrb[92].mxu0 %vm954_vm1, %v6825_v29  ;;  %1374 = vmatprep.mubr.f32.mxu1 %v8868_v38  ;;  %v884_v31 = vadd.f32 %v883_v49, %v6941_v25  ;;  %v258_v25 = vld [vmem:[#allocation10 + $0x10] sm:$0xff]  ;;  %v259_v49 = vld [vmem:[#allocation10 + $0x18] sm:$0xff] }
 0x1ce   :  { %1833 = vmatprep.mubr.f32.mxu0 %v8868_v38  ;;  %v5796_v0 = vpack.c.bf16 %v259_v49, %v258_v25  ;;  %v262_v25 = vld [vmem:[#allocation10 + $0x30] sm:$0xff]  ;;  %v263_v49 = vld [vmem:[#allocation10 + $0x38] sm:$0xff] }
 0x1cf   :  { %v949_v20 = vmax.f32 %v884_v31, 0.0  ;;  %v261_v31 = vld [vmem:[#allocation10 + $0x28] sm:$0xff] }
 0x1d0   :  { %5058 = vmatmul.mubr.msk.f32.gmra.mrb[86].mxu1 %vm954_vm1, %v6898_v16 }
 0x1d1   :  { %5102 = vmatmul.mubr.msk.f32.gmra.mrb[94].mxu0 %vm954_vm1, %v6841_v46  ;;  %1380 = vmatprep.mubr.f32.mxu1 %v8868_v38  ;;  %v7110_v39 = vpack.c.bf16 %v949_v20, %v948_v24  ;;  %v260_v24 = vld [vmem:[#allocation10 + $0x20] sm:$0xff] }
 0x1d2   :  { %1839 = vmatprep.mubr.f32.mxu0 %v8868_v38  ;;  %v5800_v20 = vpack.c.bf16 %v261_v31, %v260_v24 }
 0x1d3   :  { %8876 = vst [vmem:[#allocation49_spill] sm:$0xff] %v7110_v39 }
 0x1d4   :  { %5059 = vmatmul.mubr.msk.f32.gmra.mrb[88].mxu1 %vm954_vm1, %v6911_v26 }
 0x1d5   :  { %5103 = vmatmul.mubr.msk.f32.gmra.mrb[96].mxu0 %vm954_vm1, %v6854_v11  ;;  %1386 = vmatprep.mubr.f32.mxu1 %v8868_v38 }
 0x1d6   :  { %1845 = vmatprep.mubr.f32.mxu0 %v8868_v38 }
 0x1d8   :  { %5060 = vmatmul.mubr.msk.f32.gmra.mrb[90].mxu1 %vm954_vm1, %v6927_v41 }
 0x1d9   :  { %5104 = vmatmul.mubr.msk.f32.gmra.mrb[98].mxu0 %vm954_vm1, %v6871_v59  ;;  %1392 = vmatprep.mubr.f32.mxu1 %v8868_v38 }
 0x1da   :  { %1851 = vmatprep.mubr.f32.mxu0 %v8868_v38 }
 0x1dc   :  { %5061 = vmatmul.mubr.msk.f32.gmra.mrb[92].mxu1 %vm954_vm1, %v6946_v4 }
 0x1dd   :  { %5105 = vmatmul.mubr.msk.f32.gmra.mrb[100].mxu0 %vm954_vm1, %v6885_v5  ;;  %1398 = vmatprep.mubr.f32.mxu1 %v8868_v38 }
 0x1de   :  { %1857 = vmatprep.mubr.f32.mxu0 %v8868_v38 }
 0x1e0   :  { %5062 = vmatmul.mubr.msk.f32.gmra.mrb[94].mxu1 %vm954_vm1, %v6969_v40 }
 0x1e1   :  { %5106 = vmatmul.mubr.msk.f32.gmra.mrb[102].mxu0 %vm954_vm1, %v6898_v16  ;;  %1630 = vmatprep.mubr.f32.mxu1 %v8868_v38 }
 0x1e2   :  { %1863 = vmatprep.mubr.f32.mxu0 %v8868_v38 }
 0x1e4   :  { %5079 = vmatmul.mubr.msk.f32.vlgmr.msra.gmra.mrb[96].mxu1 %vm954_vm1, %v6755_v53  ;;  %v5804_v53 = vpack.c.bf16 %v263_v49, %v262_v25 }
 0x1e5   :  { %5795 = vmatpush3.bf16.msra.mxu1 %v6967_v13  ;;  %5107 = vmatmul.mubr.msk.f32.gmra.mrb[104].mxu0 %vm954_vm1, %v6911_v26  ;;  %v7160_v13 = vpop.permute.xlu0 %2245 }
 0x1e6   :  { %1636 = vmatprep.mubr.f32.mxu1 %v8868_v38  ;;  %1869 = vmatprep.mubr.f32.mxu0 %v8868_v38 }
 0x1e7   :  { %5797 = vmatprep.subr.bf16.mxu1 %v5796_v0 }
 0x1e8   :  { %5080 = vmatmul.mubr.msk.f32.gmra.mrb[98].mxu1 %vm954_vm1, %v6767_v9  ;;  %v7158_v9 = vld [vmem:[#allocation11 + $0x8] sm:$0xf] }
 0x1e9   :  { %5108 = vmatmul.mubr.msk.f32.gmra.mrb[106].mxu0 %vm954_vm1, %v6927_v41  ;;  %1642 = vmatprep.mubr.f32.mxu1 %v8868_v38 }
 0x1ea   :  { %1875 = vmatprep.mubr.f32.mxu0 %v8868_v38  ;;  %5799 = vmatpush3.bf16.msra.mxu1 %v5796_v0 }
 0x1eb   :  { %5801 = vmatprep.subr.bf16.mxu1 %v5800_v20 }
 0x1ec   :  { %5081 = vmatmul.mubr.msk.f32.gmra.mrb[100].mxu1 %vm954_vm1, %v6779_v33  ;;  %v7173_v33 = vpop.permute.xlu0 %2247 }
 0x1ed   :  { %5109 = vmatmul.mubr.msk.f32.gmra.mrb[108].mxu0 %vm954_vm1, %v6946_v4  ;;  %1648 = vmatprep.mubr.f32.mxu1 %v8868_v38 }
 0x1ee   :  { %1881 = vmatprep.mubr.f32.mxu0 %v8868_v38  ;;  %5803 = vmatpush3.bf16.msra.mxu1 %v5800_v20 }
 0x1ef   :  { %5805 = vmatprep.subr.bf16.mxu1 %v5804_v53 }
 0x1f0   :  { %5082 = vmatmul.mubr.msk.f32.gmra.mrb[102].mxu1 %vm954_vm1, %v6791_v54  ;;  %v7181_v54 = vpop.permute.xlu1 %2249 }
 0x1f1   :  { %5110 = vmatmul.mubr.msk.f32.gmra.mrb[110].mxu0 %vm954_vm1, %v6969_v40  ;;  %1654 = vmatprep.mubr.f32.mxu1 %v8868_v38 }
 0x1f2   :  { %5807 = vmatpush3.bf16.msra.mxu1 %v5804_v53  ;;  %2384 = vmatprep.mubr.f32.mxu0 %v8868_v38 }
 0x1f3   :  { %5525 = vmatprep.subr.msk.mxu1 %vm2313_vm2, %v7158_v9 }
 0x1f4   :  { %5083 = vmatmul.mubr.msk.f32.gmra.mrb[104].mxu1 %vm954_vm1, %v6803_v6  ;;  %v7192_v6 = vpop.permute.xlu1 %2251 }
 0x1f5   :  { %1660 = vmatprep.mubr.f32.mxu1 %v8868_v38  ;;  %5129 = vmatmul.mubr.msk.f32.vlgmr.msra.gmra.mrb[112].mxu0 %vm2280_vm3, %v7160_v13 }
 0x1f6   :  { %2390 = vmatprep.mubr.f32.mxu0 %v8868_v38 }
 0x1f8   :  { %5084 = vmatmul.mubr.msk.f32.gmra.mrb[106].mxu1 %vm954_vm1, %v6813_v18  ;;  %v7200_v18 = vpop.permute.xlu0 %2253 }
 0x1f9   :  { %1666 = vmatprep.mubr.f32.mxu1 %v8868_v38  ;;  %5130 = vmatmul.mubr.msk.f32.gmra.mrb[114].mxu0 %vm2280_vm3, %v7173_v33 }
 0x1fa   :  { %2396 = vmatprep.mubr.f32.mxu0 %v8868_v38 }
 0x1fc   :  { %5085 = vmatmul.mubr.msk.f32.gmra.mrb[108].mxu1 %vm954_vm1, %v6825_v29  ;;  %v7208_v29 = vpop.permute.xlu1 %2255 }
 0x1fd   :  { %1672 = vmatprep.mubr.f32.mxu1 %v8868_v38  ;;  %5131 = vmatmul.mubr.msk.f32.gmra.mrb[116].mxu0 %vm2280_vm3, %v7181_v54 }
 0x1fe   :  { %2402 = vmatprep.mubr.f32.mxu0 %v8868_v38 }
 0x200   :  { %5086 = vmatmul.mubr.msk.f32.gmra.mrb[110].mxu1 %vm954_vm1, %v6841_v46  ;;  %v7216_v46 = vpop.permute.xlu0 %2257 }
 0x201   :  { %1678 = vmatprep.mubr.f32.mxu1 %v8868_v38  ;;  %5132 = vmatmul.mubr.msk.f32.gmra.mrb[118].mxu0 %vm2280_vm3, %v7192_v6 }
 0x202   :  { %2408 = vmatprep.mubr.f32.mxu0 %v8868_v38 }
 0x204   :  { %5087 = vmatmul.mubr.msk.f32.gmra.mrb[112].mxu1 %vm954_vm1, %v6854_v11  ;;  %v7224_v11 = vpop.permute.xlu1 %2259 }
 0x205   :  { %1684 = vmatprep.mubr.f32.mxu1 %v8868_v38  ;;  %5133 = vmatmul.mubr.msk.f32.gmra.mrb[120].mxu0 %vm2280_vm3, %v7200_v18 }
 0x206   :  { %2414 = vmatprep.mubr.f32.mxu0 %v8868_v38 }
 0x208   :  { %5088 = vmatmul.mubr.msk.f32.gmra.mrb[114].mxu1 %vm954_vm1, %v6871_v59  ;;  %v153_v59 = vld [vmem:[#allocation14 + $0x10] sm:$0xff]  ;;  %v7243_v0 = vpop.permute.xlu1 %2263 }
 0x209   :  { %1690 = vmatprep.mubr.f32.mxu1 %v8868_v38  ;;  %5134 = vmatmul.mubr.msk.f32.gmra.mrb[122].mxu0 %vm2280_vm3, %v7208_v29 }
 0x20a   :  { %2420 = vmatprep.mubr.f32.mxu0 %v8868_v38 }
 0x20c   :  { %5089 = vmatmul.mubr.msk.f32.gmra.mrb[116].mxu1 %vm954_vm1, %v6885_v5  ;;  %v7232_v5 = vpop.permute.xlu0 %2261 }
 0x20d   :  { %1696 = vmatprep.mubr.f32.mxu1 %v8868_v38  ;;  %5135 = vmatmul.mubr.msk.f32.gmra.mrb[124].mxu0 %vm2280_vm3, %v7216_v46 }
 0x20e   :  { %2426 = vmatprep.mubr.f32.mxu0 %v8868_v38 }
 0x210   :  { %5090 = vmatmul.mubr.msk.f32.gmra.mrb[118].mxu1 %vm954_vm1, %v6898_v16  ;;  %v7239_v16 = vrot.slane %v153_v59, %v6741_v14  ;;  %v7253_v24 = vpop.permute.xlu0 %2265 }
 0x211   :  { %1702 = vmatprep.mubr.f32.mxu1 %v8868_v38  ;;  %5136 = vmatmul.mubr.msk.f32.gmra.mrb[126].mxu0 %vm2280_vm3, %v7224_v11 }
 0x212   :  { %2432 = vmatprep.mubr.f32.mxu0 %v8868_v38  ;;  %v643_v20 = vadd.f32 %v6875_v62, %v7239_v16  ;;  %v655_v62 = vadd.f32 %v6902_v17, %v7239_v16  ;;  %v661_v53 = vadd.f32 %v6915_v32, %v7239_v16  ;;  %v667_v17 = vadd.f32 %v6931_v50, %v7239_v16 }
 0x214   :  { %5091 = vmatmul.mubr.msk.f32.gmra.mrb[120].mxu1 %vm954_vm1, %v6911_v26  ;;  %v631_v26 = vadd.f32 %v6843_v47, %v7239_v16  ;;  %v7265_v47 = vpop.permute.xlu1 %2267  ;;  %v920_v25 = vmax.f32 %v643_v20, 0.0  ;;  %v923_v59 = vmax.f32 %v661_v53, 0.0  ;;  %v924_v32 = vmax.f32 %v667_v17, 0.0 }
 0x215   :  { %1708 = vmatprep.mubr.f32.mxu1 %v8868_v38  ;;  %5137 = vmatmul.mubr.msk.f32.gmra.mrb[128].mxu0 %vm2280_vm3, %v7232_v5  ;;  %v685_v20 = vadd.f32 %v6990_v19, %v7239_v16  ;;  %v709_v53 = vadd.f32 %v7062_v10, %v7239_v16 }
 0x216   :  { %2438 = vmatprep.mubr.f32.mxu0 %v8868_v38  ;;  %v918_v31 = vmax.f32 %v631_v26, 0.0  ;;  %v673_v26 = vadd.f32 %v6950_v42, %v7239_v16 }
 0x217   :  { %v931_v17 = vmax.f32 %v709_v53, 0.0 }
 0x218   :  { %5092 = vmatmul.mubr.msk.f32.gmra.mrb[122].mxu1 %vm954_vm1, %v6927_v41  ;;  %v637_v41 = vadd.f32 %v6860_v52, %v7239_v16  ;;  %v649_v52 = vadd.f32 %v6889_v7, %v7239_v16  ;;  %v922_v7 = vmax.f32 %v655_v62, 0.0  ;;  %v703_v62 = vadd.f32 %v7046_v30, %v7239_v16 }
 0x219   :  { %1714 = vmatprep.mubr.f32.mxu1 %v8868_v38  ;;  %5138 = vmatmul.mubr.msk.f32.gmra.mrb[130].mxu0 %vm2280_vm3, %v7243_v0 }
 0x21a   :  { %2444 = vmatprep.mubr.f32.mxu0 %v8868_v38  ;;  %v921_v49 = vmax.f32 %v649_v52, 0.0  ;;  %v927_v52 = vmax.f32 %v685_v20, 0.0 }
 0x21c   :  { %5093 = vmatmul.mubr.msk.f32.gmra.mrb[124].mxu1 %vm954_vm1, %v6946_v4  ;;  %v919_v4 = vmax.f32 %v637_v41, 0.0  ;;  %v679_v41 = vadd.f32 %v6971_v43, %v7239_v16 }
 0x21d   :  { %1720 = vmatprep.mubr.f32.mxu1 %v8868_v38  ;;  %5139 = vmatmul.mubr.msk.f32.gmra.mrb[132].mxu0 %vm2280_vm3, %v7253_v24 }
 0x21e   :  { %2450 = vmatprep.mubr.f32.mxu0 %v8868_v38  ;;  %v926_v42 = vmax.f32 %v679_v41, 0.0 }
 0x220   :  { %5094 = vmatmul.mubr.msk.f32.gmra.mrb[126].mxu1 %vm954_vm1, %v6969_v40  ;;  %v7279_v40 = vpop.permute.xlu0 %2269 }
 0x221   :  { %5501 = vmatprep.mubr.msk.f32.mxu1 %vm954_vm1, %v918_v31  ;;  %5140 = vmatmul.mubr.msk.f32.gmra.mrb[134].mxu0 %vm2280_vm3, %v7265_v47  ;;  %v925_v31 = vmax.f32 %v673_v26, 0.0 }
 0x222   :  { %2456 = vmatprep.mubr.f32.mxu0 %v8868_v38 }
 0x224   :  { %5502 = vmatmul.mubr.msk.f32.vlgmr.msra.gmra.mrb[128].mxu1 %vm954_vm1, %v919_v4  ;;  %v7301_v50 = vpop.permute.xlu0 %2273  ;;  %v691_v4 = vadd.f32 %v7008_v15, %v7239_v16  ;;  %v715_v15 = vadd.f32 %v7077_v61, %v7239_v16 }
 0x225   :  { %5526 = vmatpush3.msk.msra.mxu1 %vm2313_vm2, %v7158_v9  ;;  %5504 = vmatprep.mubr.msk.f32.mxu1 %vm954_vm1, %v920_v25  ;;  %v7290_v9 = vpop.permute.xlu1 %2271  ;;  %v697_v25 = vadd.f32 %v7026_v57, %v7239_v16  ;;  %v930_v57 = vmax.f32 %v703_v62, 0.0 }
 0x226   :  { %5141 = vmatmul.mubr.msk.f32.gmra.mrb[136].mxu0 %vm2280_vm3, %v7279_v40  ;;  %v928_v19 = vmax.f32 %v691_v4, 0.0  ;;  %v932_v30 = vmax.f32 %v715_v15, 0.0 }
 0x227   :  { %2462 = vmatprep.mubr.f32.mxu0 %v8868_v38 }
 0x228   :  { %5505 = vmatmul.mubr.msk.f32.gmra.mrb[130].mxu1 %vm954_vm1, %v921_v49  ;;  %v929_v49 = vmax.f32 %v697_v25, 0.0 }
 0x229   :  { %5507 = vmatprep.mubr.msk.f32.mxu1 %vm954_vm1, %v922_v7  ;;  %v2276_v43 = vpop.permute.xlu1 %2275  ;;  %v721_v7 = vadd.f32 %v7092_v45, %v7239_v16 }
 0x22a   :  { %5142 = vmatmul.mubr.msk.f32.gmra.mrb[138].mxu0 %vm2280_vm3, %v7290_v9 }
 0x22b   :  { %2468 = vmatprep.mubr.f32.mxu0 %v8868_v38 }
 0x22c   :  { %5508 = vmatmul.mubr.msk.f32.gmra.mrb[132].mxu1 %vm954_vm1, %v923_v59  ;;  %v933_v59 = vmax.f32 %v721_v7, 0.0 }
 0x22d   :  { %5510 = vmatprep.mubr.msk.f32.mxu1 %vm954_vm1, %v924_v32 }
 0x22e   :  { %5143 = vmatmul.mubr.msk.f32.gmra.mrb[140].mxu0 %vm2280_vm3, %v7301_v50 }
 0x22f   :  { %2474 = vmatprep.mubr.f32.mxu0 %v8868_v38 }
 0x230   :  { %5511 = vmatmul.mubr.msk.f32.gmra.mrb[134].mxu1 %vm954_vm1, %v925_v31 }
 0x231   :  { %5513 = vmatprep.mubr.msk.f32.mxu1 %vm954_vm1, %v926_v42 }
 0x232   :  { %5144 = vmatmul.mubr.msk.f32.gmra.mrb[142].mxu0 %vm2280_vm3, %v2276_v43 }
 0x233   :  { %3063 = vmatprep.mubr.f32.mxu0 %v8868_v38 }
 0x234   :  { %5514 = vmatmul.mubr.msk.f32.gmra.mrb[136].mxu1 %vm954_vm1, %v927_v52 }
 0x235   :  { %5516 = vmatprep.mubr.msk.f32.mxu1 %vm954_vm1, %v928_v19 }
 0x238   :  { %5517 = vmatmul.mubr.msk.f32.gmra.mrb[138].mxu1 %vm954_vm1, %v929_v49 }
 0x239   :  { %5519 = vmatprep.mubr.msk.f32.mxu1 %vm954_vm1, %v930_v57 }
 0x23c   :  { %5520 = vmatmul.mubr.msk.f32.gmra.mrb[140].mxu1 %vm954_vm1, %v931_v17 }
 0x23d   :  { %5522 = vmatprep.mubr.msk.f32.mxu1 %vm954_vm1, %v932_v30 }
 0x240   :  { %5523 = vmatmul.mubr.msk.f32.gmra.mrb[142].mxu1 %vm954_vm1, %v933_v59 }
 0x241   :  { %5527 = vmatprep.mubr.msk.f32.mxu1 %vm2280_vm3, %v7160_v13 }
 0x244   :  { %5528 = vmatmul.mubr.msk.f32.vlgmr.msra.gmra.mrb[144].mxu1 %vm2280_vm3, %v7173_v33 }
 0x245   :  { %5530 = vmatprep.mubr.msk.f32.mxu1 %vm2280_vm3, %v7181_v54 }
 0x248   :  { %v7337_v61 = vpop.f32.mrb[48].mxu0  ;;  %5531 = vmatmul.mubr.msk.f32.gmra.mrb[146].mxu1 %vm2280_vm3, %v7192_v6 }
 0x249   :  { %8877 = vst [vmem:[#allocation50_spill] sm:$0xff] %v7337_v61  ;;  %v7341_v10 = vpop.f32.mrb[49].mxu0  ;;  %5533 = vmatprep.mubr.msk.f32.mxu1 %vm2280_vm3, %v7200_v18 }
 0x24a   :  { %8878 = vst [vmem:[#allocation51_spill] sm:$0xff] %v7341_v10 }
 0x24b   :  { %v7345_v45 = vpop.f32.mrb[48].mxu1 }
 0x24c   :  { %v7347_v16 = vpop.f32.mrb[49].mxu1  ;;  %v7349_v13 = vpop.f32.mrb[50].mxu0  ;;  %5534 = vmatmul.mubr.msk.f32.gmra.mrb[148].mxu1 %vm2280_vm3, %v7208_v29 }
 0x24d   :  { %8879 = vst [vmem:[#allocation52_spill] sm:$0xff] %v7349_v13  ;;  %v7353_v33 = vpop.f32.mrb[51].mxu0  ;;  %5536 = vmatprep.mubr.msk.f32.mxu1 %vm2280_vm3, %v7216_v46 }
 0x24e   :  { %8880 = vst [vmem:[#allocation53_spill] sm:$0xff] %v7353_v33 }
 0x250   :  { %v7357_v54 = vpop.f32.mrb[52].mxu0  ;;  %5537 = vmatmul.mubr.msk.f32.gmra.mrb[150].mxu1 %vm2280_vm3, %v7224_v11 }
 0x251   :  { %8881 = vst [vmem:[#allocation54_spill] sm:$0xff] %v7357_v54  ;;  %v7361_v6 = vpop.f32.mrb[53].mxu0  ;;  %5539 = vmatprep.mubr.msk.f32.mxu1 %vm2280_vm3, %v7232_v5  ;;  %v159_v54 = vld [vmem:[#allocation14 + $0x40] sm:$0xff] }
 0x252   :  { %8882 = vst [vmem:[#allocation55_spill] sm:$0xff] %v7361_v6 }
 0x253   :  { %v7365_v18 = vpop.f32.mrb[50].mxu1 }
 0x254   :  { %v7367_v26 = vpop.f32.mrb[51].mxu1  ;;  %v7369_v29 = vpop.f32.mrb[54].mxu0  ;;  %5540 = vmatmul.mubr.msk.f32.gmra.mrb[152].mxu1 %vm2280_vm3, %v7243_v0 }
 0x255   :  { %8883 = vst [vmem:[#allocation56_spill] sm:$0xff] %v7369_v29  ;;  %v7373_v46 = vpop.f32.mrb[55].mxu0  ;;  %5542 = vmatprep.mubr.msk.f32.mxu1 %vm2280_vm3, %v7253_v24 }
 0x256   :  { %8884 = vst [vmem:[#allocation57_spill] sm:$0xff] %v7373_v46 }
 0x258   :  { %v7377_v11 = vpop.f32.mrb[56].mxu0  ;;  %5543 = vmatmul.mubr.msk.f32.gmra.mrb[154].mxu1 %vm2280_vm3, %v7265_v47 }
 0x259   :  { %8885 = vst [vmem:[#allocation58_spill] sm:$0xff] %v7377_v11  ;;  %v7381_v5 = vpop.f32.mrb[57].mxu0  ;;  %5545 = vmatprep.mubr.msk.f32.mxu1 %vm2280_vm3, %v7279_v40 }
 0x25a   :  { %8886 = vst [vmem:[#allocation59_spill] sm:$0xff] %v7381_v5 }
 0x25b   :  { %v7385_v32 = vpop.f32.mrb[52].mxu1 }
 0x25c   :  { %v7387_v41 = vpop.f32.mrb[53].mxu1  ;;  %v7389_v0 = vpop.f32.mrb[58].mxu0  ;;  %5546 = vmatmul.mubr.msk.f32.gmra.mrb[156].mxu1 %vm2280_vm3, %v7290_v9 }
 0x25d   :  { %8887 = vst [vmem:[#allocation60_spill] sm:$0xff] %v7389_v0  ;;  %v7393_v24 = vpop.f32.mrb[59].mxu0  ;;  %5548 = vmatprep.mubr.msk.f32.mxu1 %vm2280_vm3, %v7301_v50 }
 0x25e   :  { %8888 = vst [vmem:[#allocation61_spill] sm:$0xff] %v7393_v24 }
 0x260   :  { %v7397_v47 = vpop.f32.mrb[60].mxu0  ;;  %5549 = vmatmul.mubr.msk.f32.gmra.mrb[158].mxu1 %vm2280_vm3, %v2276_v43 }
 0x261   :  { %8889 = vst [vmem:[#allocation62_spill] sm:$0xff] %v7397_v47  ;;  %v7400_v31 = vpop.f32.mrb[61].mxu0 }
 0x262   :  { %8890 = vst [vmem:[#allocation63_spill] sm:$0xff] %v7400_v31 }
 0x263   :  { %v7402_v40 = vpop.f32.mrb[54].mxu1 }
 0x264   :  { %v7404_v20 = vpop.f32.mrb[55].mxu1  ;;  %v7406_v42 = vpop.f32.mrb[62].mxu0 }
 0x265   :  { %8891 = vst [vmem:[#allocation64_spill] sm:$0xff] %v7406_v42  ;;  %v7408_v4 = vpop.f32.mrb[63].mxu0 }
 0x266   :  { %8892 = vst [vmem:[#allocation65_spill] sm:$0xff] %v7408_v4 }
 0x267   :  { %v7410_v9 = vpop.f32.mrb[56].mxu1 }
 0x268   :  { %v7412_v52 = vpop.f32.mrb[57].mxu1  ;;  %v7414_v25 = vpop.f32.mrb[64].mxu0 }
 0x269   :  { %8893 = vst [vmem:[#allocation66_spill] sm:$0xff] %v7414_v25  ;;  %v7416_v50 = vpop.f32.mrb[65].mxu0  ;;  %v306_v25 = vld [vmem:[#allocation13 + $0x140] sm:$0xff] }
 0x26a   :  { %8894 = vst [vmem:[#allocation67_spill] sm:$0xff] %v7416_v50  ;;  %v298_v50 = vld [vmem:[#allocation13 + $0x100] sm:$0xff] }
 0x26b   :  { %v7418_v19 = vpop.f32.mrb[58].mxu1 }
 0x26c   :  { %v7420_v43 = vpop.f32.mrb[59].mxu1  ;;  %v7422_v62 = vpop.f32.mrb[66].mxu0 }
 0x26d   :  { %8895 = vst [vmem:[#allocation68_spill] sm:$0xff] %v7422_v62  ;;  %v7424_v15 = vpop.f32.mrb[67].mxu0 }
 0x26e   :  { %8896 = vst [vmem:[#allocation69_spill] sm:$0xff] %v7424_v15 }
 0x26f   :  { %v7426_v49 = vpop.f32.mrb[60].mxu1 }
 0x270   :  { %v7428_v53 = vpop.f32.mrb[61].mxu1  ;;  %v7430_v57 = vpop.f32.mrb[68].mxu0 }
 0x271   :  { %8897 = vst [vmem:[#allocation70_spill] sm:$0xff] %v7430_v57  ;;  %v7432_v7 = vpop.f32.mrb[69].mxu0 }
 0x272   :  { %8898 = vst [vmem:[#allocation71_spill] sm:$0xff] %v7432_v7 }
 0x273   :  { %v7434_v30 = vpop.f32.mrb[62].mxu1 }
 0x274   :  { %v7436_v17 = vpop.f32.mrb[63].mxu1  ;;  %v7438_v59 = vpop.f32.mrb[70].mxu0 }
 0x275   :  { %8899 = vst [vmem:[#allocation72_spill] sm:$0xff] %v7438_v59  ;;  %v7440_v39 = vpop.f32.mrb[71].mxu0 }
 0x276   :  { %8900 = vst [vmem:[#allocation73_spill] sm:$0xff] %v7440_v39 }
 0x277   :  { %v7442_v3 = vpop.f32.mrb[64].mxu1 }
 0x278   :  { %8901 = vst [vmem:[#allocation74_spill] sm:$0xff] %v7442_v3  ;;  %v7444_v28 = vpop.f32.mrb[65].mxu1  ;;  %v7446_v55 = vpop.f32.mrb[72].mxu0 }
 0x279   :  { %8902 = vst [vmem:[#allocation75_spill] sm:$0xff] %v7444_v28  ;;  %8903 = vst [vmem:[#allocation76_spill] sm:$0xff] %v7446_v55  ;;  %v7448_v8 = vpop.f32.mrb[73].mxu0  ;;  %v7466_v55 = vpack.c.bf16 %v306_v25, %v298_v50 }
 0x27a   :  { %8904 = vst [vmem:[#allocation77_spill] sm:$0xff] %v7448_v8 }
 0x27b   :  { %v7450_v44 = vpop.f32.mrb[66].mxu1  ;;  %8913 = vst [vmem:[#allocation86_spill] sm:$0xff] %v7466_v55  ;;  %5809 = vmatprep.subr.bf16.mxu1 %v7466_v55 }
 0x27c   :  { %8905 = vst [vmem:[#allocation78_spill] sm:$0xff] %v7450_v44  ;;  %v7452_v57 = vpop.f32.mrb[67].mxu1  ;;  %v7454_v7 = vpop.f32.mrb[74].mxu0  ;;  %5811 = vmatpush3.bf16.xpose.msra.mxu1 %v7466_v55  ;;  %v6108_v44 = vld [vmem:[#allocation2 + $0x8] sm:$0xff] }
 0x27d   :  { %8906 = vst [vmem:[#allocation79_spill] sm:$0xff] %v7452_v57  ;;  %8907 = vst [vmem:[#allocation80_spill] sm:$0xff] %v7454_v7  ;;  %v7456_v15 = vpop.f32.mrb[75].mxu0 }
 0x27e   :  { %8908 = vst [vmem:[#allocation81_spill] sm:$0xff] %v7456_v15 }
 0x27f   :  { %v7458_v62 = vpop.f32.mrb[68].mxu1 }
 0x280   :  { %8909 = vst [vmem:[#allocation82_spill] sm:$0xff] %v7458_v62  ;;  %v7460_v59 = vpop.f32.mrb[69].mxu1  ;;  %v7462_v39 = vpop.f32.mrb[76].mxu0 }
 0x281   :  { %8910 = vst [vmem:[#allocation83_spill] sm:$0xff] %v7460_v59  ;;  %8911 = vst [vmem:[#allocation84_spill] sm:$0xff] %v7462_v39  ;;  %v7464_v4 = vpop.f32.mrb[77].mxu0 }
 0x282   :  { %8912 = vst [vmem:[#allocation85_spill] sm:$0xff] %v7464_v4 }
 0x283   :  { %v7468_v8 = vpop.f32.mrb[70].mxu1 }
 0x284   :  { %8914 = vst [vmem:[#allocation87_spill] sm:$0xff] %v7468_v8  ;;  %v7471_v42 = vpop.f32.mrb[71].mxu1  ;;  %v7473_v7 = vpop.f32.mrb[78].mxu0 }
 0x285   :  { %8915 = vst [vmem:[#allocation88_spill] sm:$0xff] %v7471_v42  ;;  %8916 = vst [vmem:[#allocation89_spill] sm:$0xff] %v7473_v7  ;;  %v7476_v15 = vpop.f32.mrb[79].mxu0 }
 0x286   :  { %8917 = vst [vmem:[#allocation90_spill] sm:$0xff] %v7476_v15 }
 0x287   :  { %v7478_v31 = vpop.f32.mrb[72].mxu1 }
 0x288   :  { %8918 = vst [vmem:[#allocation91_spill] sm:$0xff] %v7478_v31  ;;  %v7480_v39 = vpop.f32.mrb[73].mxu1  ;;  %v7482_v47 = vpop.f32.mrb[80].mxu0  ;;  %v314_v31 = vld [vmem:[#allocation13 + $0x180] sm:$0xff] }
 0x289   :  { %8919 = vst [vmem:[#allocation92_spill] sm:$0xff] %v7480_v39  ;;  %8920 = vst [vmem:[#allocation93_spill] sm:$0xff] %v7482_v47  ;;  %v7484_v25 = vpop.f32.mrb[81].mxu0  ;;  %v322_v39 = vld [vmem:[#allocation13 + $0x1c0] sm:$0xff] }
 0x28a   :  { %8921 = vst [vmem:[#allocation94_spill] sm:$0xff] %v7484_v25  ;;  %v7502_v47 = vpack.c.bf16 %v322_v39, %v314_v31 }
 0x28b   :  { %v7486_v50 = vpop.f32.mrb[74].mxu1 }
 0x28c   :  { %8922 = vst [vmem:[#allocation95_spill] sm:$0xff] %v7486_v50  ;;  %v7488_v4 = vpop.f32.mrb[75].mxu1  ;;  %v7490_v24 = vpop.f32.mrb[82].mxu0  ;;  %8930 = vst [vmem:[#allocation103_spill] sm:$0xff] %v7502_v47  ;;  %5813 = vmatprep.subr.bf16.mxu1 %v7502_v47 }
 0x28d   :  { %8923 = vst [vmem:[#allocation96_spill] sm:$0xff] %v7488_v4  ;;  %8924 = vst [vmem:[#allocation97_spill] sm:$0xff] %v7490_v24  ;;  %v7492_v0 = vpop.f32.mrb[83].mxu0  ;;  %5815 = vmatpush3.bf16.xpose.msra.mxu1 %v7502_v47  ;;  %v267_v47 = vld [vmem:[#allocation13 + $0x8] sm:$0xff] }
 0x28e   :  { %8925 = vst [vmem:[#allocation98_spill] sm:$0xff] %v7492_v0 }
 0x28f   :  { %v7494_v7 = vpop.f32.mrb[76].mxu1 }
 0x290   :  { %8926 = vst [vmem:[#allocation99_spill] sm:$0xff] %v7494_v7  ;;  %v7496_v5 = vpop.f32.mrb[77].mxu1  ;;  %v7498_v15 = vpop.f32.mrb[84].mxu0 }
 0x291   :  { %8927 = vst [vmem:[#allocation100_spill] sm:$0xff] %v7496_v5  ;;  %8928 = vst [vmem:[#allocation101_spill] sm:$0xff] %v7498_v15  ;;  %v7500_v11 = vpop.f32.mrb[85].mxu0 }
 0x292   :  { %8929 = vst [vmem:[#allocation102_spill] sm:$0xff] %v7500_v11 }
 0x293   :  { %v7504_v25 = vpop.f32.mrb[78].mxu1 }
 0x294   :  { %8931 = vst [vmem:[#allocation104_spill] sm:$0xff] %v7504_v25  ;;  %v7507_v4 = vpop.f32.mrb[79].mxu1  ;;  %v7509_v24 = vpop.f32.mrb[86].mxu0 }
 0x295   :  { %8932 = vst [vmem:[#allocation105_spill] sm:$0xff] %v7507_v4  ;;  %8933 = vst [vmem:[#allocation106_spill] sm:$0xff] %v7509_v24  ;;  %v7512_v0 = vpop.f32.mrb[87].mxu0 }
 0x296   :  { %8934 = vst [vmem:[#allocation107_spill] sm:$0xff] %v7512_v0 }
 0x297   :  { %v7514_v5 = vpop.f32.mrb[80].mxu1 }
 0x298   :  { %8935 = vst [vmem:[#allocation108_spill] sm:$0xff] %v7514_v5  ;;  %v7516_v15 = vpop.f32.mrb[81].mxu1  ;;  %v7518_v7 = vpop.f32.mrb[88].mxu0 }
 0x299   :  { %8936 = vst [vmem:[#allocation109_spill] sm:$0xff] %v7516_v15  ;;  %8937 = vst [vmem:[#allocation110_spill] sm:$0xff] %v7518_v7  ;;  %v7520_v39 = vpop.f32.mrb[89].mxu0 }
 0x29a   :  { %8938 = vst [vmem:[#allocation111_spill] sm:$0xff] %v7520_v39 }
 0x29b   :  { %v7522_v31 = vpop.f32.mrb[82].mxu1 }
 0x29c   :  { %8939 = vst [vmem:[#allocation112_spill] sm:$0xff] %v7522_v31  ;;  %v7524_v11 = vpop.f32.mrb[83].mxu1  ;;  %v7526_v25 = vpop.f32.mrb[90].mxu0 }
 0x29d   :  { %8940 = vst [vmem:[#allocation113_spill] sm:$0xff] %v7524_v11  ;;  %8941 = vst [vmem:[#allocation114_spill] sm:$0xff] %v7526_v25  ;;  %v7528_v4 = vpop.f32.mrb[91].mxu0 }
 0x29e   :  { %8942 = vst [vmem:[#allocation115_spill] sm:$0xff] %v7528_v4 }
 0x29f   :  { %v7530_v24 = vpop.f32.mrb[84].mxu1 }
 0x2a0   :  { %8943 = vst [vmem:[#allocation116_spill] sm:$0xff] %v7530_v24  ;;  %v7532_v50 = vpop.f32.mrb[85].mxu1  ;;  %v7534_v0 = vpop.f32.mrb[92].mxu0 }
 0x2a1   :  { %8944 = vst [vmem:[#allocation117_spill] sm:$0xff] %v7532_v50  ;;  %8945 = vst [vmem:[#allocation118_spill] sm:$0xff] %v7534_v0  ;;  %v7536_v5 = vpop.f32.mrb[93].mxu0 }
 0x2a2   :  { %8946 = vst [vmem:[#allocation119_spill] sm:$0xff] %v7536_v5 }
 0x2a3   :  { %v7538_v15 = vpop.f32.mrb[86].mxu1 }
 0x2a4   :  { %8947 = vst [vmem:[#allocation120_spill] sm:$0xff] %v7538_v15  ;;  %v7540_v7 = vpop.f32.mrb[87].mxu1  ;;  %v7542_v39 = vpop.f32.mrb[94].mxu0 }
 0x2a5   :  { %8948 = vst [vmem:[#allocation121_spill] sm:$0xff] %v7540_v7  ;;  %8949 = vst [vmem:[#allocation122_spill] sm:$0xff] %v7542_v39  ;;  %v7544_v31 = vpop.f32.mrb[95].mxu0 }
 0x2a6   :  { %8950 = vst [vmem:[#allocation123_spill] sm:$0xff] %v7544_v31 }
 0x2a7   :  { %v7546_v11 = vpop.f32.mrb[88].mxu1 }
 0x2a8   :  { %8951 = vst [vmem:[#allocation124_spill] sm:$0xff] %v7546_v11  ;;  %v7548_v25 = vpop.f32.mrb[89].mxu1  ;;  %v7550_v4 = vpop.f32.mrb[96].mxu0 }
 0x2a9   :  { %8952 = vst [vmem:[#allocation125_spill] sm:$0xff] %v7548_v25  ;;  %8953 = vst [vmem:[#allocation126_spill] sm:$0xff] %v7550_v4  ;;  %v7552_v24 = vpop.f32.mrb[97].mxu0 }
 0x2aa   :  { %8954 = vst [vmem:[#allocation127_spill] sm:$0xff] %v7552_v24 }
 0x2ab   :  { %v7554_v50 = vpop.f32.mrb[90].mxu1 }
 0x2ac   :  { %8955 = vst [vmem:[#allocation128_spill] sm:$0xff] %v7554_v50  ;;  %v7556_v0 = vpop.f32.mrb[91].mxu1  ;;  %v7558_v5 = vpop.f32.mrb[98].mxu0 }
 0x2ad   :  { %8956 = vst [vmem:[#allocation129_spill] sm:$0xff] %v7556_v0  ;;  %8957 = vst [vmem:[#allocation130_spill] sm:$0xff] %v7558_v5  ;;  %v7560_v15 = vpop.f32.mrb[99].mxu0 }
 0x2ae   :  { %8958 = vst [vmem:[#allocation131_spill] sm:$0xff] %v7560_v15 }
 0x2af   :  { %v7562_v7 = vpop.f32.mrb[92].mxu1 }
 0x2b0   :  { %8959 = vst [vmem:[#allocation132_spill] sm:$0xff] %v7562_v7  ;;  %v7564_v39 = vpop.f32.mrb[93].mxu1  ;;  %v7566_v31 = vpop.f32.mrb[100].mxu0 }
 0x2b1   :  { %8960 = vst [vmem:[#allocation133_spill] sm:$0xff] %v7564_v39  ;;  %8961 = vst [vmem:[#allocation134_spill] sm:$0xff] %v7566_v31  ;;  %v7568_v11 = vpop.f32.mrb[101].mxu0 }
 0x2b2   :  { %8962 = vst [vmem:[#allocation135_spill] sm:$0xff] %v7568_v11 }
 0x2b3   :  { %v7570_v25 = vpop.f32.mrb[94].mxu1 }
 0x2b4   :  { %8963 = vst [vmem:[#allocation136_spill] sm:$0xff] %v7570_v25  ;;  %v7572_v4 = vpop.f32.mrb[95].mxu1  ;;  %v7574_v24 = vpop.f32.mrb[102].mxu0 }
 0x2b5   :  { %8964 = vst [vmem:[#allocation137_spill] sm:$0xff] %v7572_v4  ;;  %8965 = vst [vmem:[#allocation138_spill] sm:$0xff] %v7574_v24  ;;  %v7576_v50 = vpop.f32.mrb[103].mxu0 }
 0x2b6   :  { %8966 = vst [vmem:[#allocation139_spill] sm:$0xff] %v7576_v50 }
 0x2b7   :  { %v7578_v0 = vpop.f32.mrb[96].mxu1 }
 0x2b8   :  { %8967 = vst [vmem:[#allocation140_spill] sm:$0xff] %v7578_v0  ;;  %v7580_v5 = vpop.f32.mrb[97].mxu1  ;;  %v7582_v15 = vpop.f32.mrb[104].mxu0 }
 0x2b9   :  { %8968 = vst [vmem:[#allocation141_spill] sm:$0xff] %v7580_v5  ;;  %8969 = vst [vmem:[#allocation142_spill] sm:$0xff] %v7582_v15  ;;  %v7584_v7 = vpop.f32.mrb[105].mxu0 }
 0x2ba   :  { %8970 = vst [vmem:[#allocation143_spill] sm:$0xff] %v7584_v7 }
 0x2bb   :  { %v7586_v39 = vpop.f32.mrb[98].mxu1 }
 0x2bc   :  { %8971 = vst [vmem:[#allocation144_spill] sm:$0xff] %v7586_v39  ;;  %v7588_v31 = vpop.f32.mrb[99].mxu1  ;;  %v7590_v11 = vpop.f32.mrb[106].mxu0 }
 0x2bd   :  { %8972 = vst [vmem:[#allocation145_spill] sm:$0xff] %v7588_v31  ;;  %8973 = vst [vmem:[#allocation146_spill] sm:$0xff] %v7590_v11  ;;  %v7592_v25 = vpop.f32.mrb[107].mxu0  ;;  %v2660_v11 = vsub.s32 4, %v6734_v22 }
 0x2be   :  { %8974 = vst [vmem:[#allocation147_spill] sm:$0xff] %v7592_v25 }
 0x2bf   :  { %v7594_v4 = vpop.f32.mrb[100].mxu1 }
 0x2c0   :  { %8975 = vst [vmem:[#allocation148_spill] sm:$0xff] %v7594_v4  ;;  %v7596_v24 = vpop.f32.mrb[101].mxu1  ;;  %v7598_v50 = vpop.f32.mrb[108].mxu0 }
 0x2c1   :  { %8976 = vst [vmem:[#allocation149_spill] sm:$0xff] %v7596_v24  ;;  %8977 = vst [vmem:[#allocation150_spill] sm:$0xff] %v7598_v50  ;;  %v7600_v0 = vpop.f32.mrb[109].mxu0  ;;  %v7615_v50 = vld [vmem:[#allocation14] sm:$0xff] }
 0x2c2   :  { %8978 = vst [vmem:[#allocation151_spill] sm:$0xff] %v7600_v0  ;;  %v7618_v0 = vrot.slane %v7615_v50, %v2660_v11 }
 0x2c3   :  { %v7602_v5 = vpop.f32.mrb[102].mxu1 }
 0x2c4   :  { %8979 = vst [vmem:[#allocation152_spill] sm:$0xff] %v7602_v5  ;;  %v7604_v15 = vpop.f32.mrb[103].mxu1  ;;  %v7606_v7 = vpop.f32.mrb[110].mxu0 }
 0x2c5   :  { %8980 = vst [vmem:[#allocation153_spill] sm:$0xff] %v7604_v15  ;;  %8981 = vst [vmem:[#allocation154_spill] sm:$0xff] %v7606_v7  ;;  %v7608_v39 = vpop.f32.mrb[111].mxu0 }
 0x2c6   :  { %8982 = vst [vmem:[#allocation155_spill] sm:$0xff] %v7608_v39 }
 0x2c7   :  { %v7611_v31 = vpop.f32.mrb[104].mxu1 }
 0x2c8   :  { %8983 = vst [vmem:[#allocation156_spill] sm:$0xff] %v7611_v31  ;;  %v7613_v25 = vpop.f32.mrb[105].mxu1  ;;  %v2386_v4 = vpop.f32.mrb[112].mxu0 }
 0x2c9   :  { %8984 = vst [vmem:[#allocation157_spill] sm:$0xff] %v7613_v25  ;;  %v2626_v24 = vmul.f32 %v2386_v4, %v2386_v4  ;;  %v2388_v42 = vpop.f32.mrb[113].mxu0 }
 0x2cb   :  { %v7620_v5 = vpop.f32.mrb[106].mxu1  ;;  %v2642_v15 = vadd.f32 %v2626_v24, %v2388_v42 }
 0x2cc   :  { %8985 = vst [vmem:[#allocation158_spill] sm:$0xff] %v7620_v5  ;;  %v7622_v7 = vpop.f32.mrb[107].mxu1  ;;  %v2392_v39 = vpop.f32.mrb[114].mxu0 }
 0x2cd   :  { %8986 = vst [vmem:[#allocation159_spill] sm:$0xff] %v7622_v7  ;;  %v7625_v8 = vadd.f32 %v7618_v0, %v2642_v15  ;;  %v2627_v31 = vmul.f32 %v2392_v39, %v2392_v39  ;;  %v2394_v46 = vpop.f32.mrb[115].mxu0 }
 0x2cf   :  { %v7627_v25 = vpop.f32.mrb[108].mxu1  ;;  %v2643_v4 = vadd.f32 %v2627_v31, %v2394_v46  ;;  %4367 = vrot.lane.b32.xlu0 %v7625_v8, %s6355_s7 }
 0x2d0   :  { %8987 = vst [vmem:[#allocation160_spill] sm:$0xff] %v7627_v25  ;;  %v7631_v29 = vpop.f32.mrb[109].mxu1  ;;  %v2398_v11 = vpop.f32.mrb[116].mxu0 }
 0x2d1   :  { %8988 = vst [vmem:[#allocation161_spill] sm:$0xff] %v7631_v29  ;;  %v7634_v5 = vadd.f32 %v7618_v0, %v2643_v4  ;;  %v2628_v24 = vmul.f32 %v2398_v11, %v2398_v11  ;;  %v2400_v42 = vpop.f32.mrb[117].mxu0 }
 0x2d3   :  { %v7636_v7 = vpop.f32.mrb[110].mxu1  ;;  %v2644_v15 = vadd.f32 %v2628_v24, %v2400_v42  ;;  %4369 = vrot.lane.b32.xlu1 %v7634_v5, %s6355_s7 }
 0x2d4   :  { %8989 = vst [vmem:[#allocation162_spill] sm:$0xff] %v7636_v7  ;;  %v7640_v39 = vpop.f32.mrb[111].mxu1  ;;  %v2404_v46 = vpop.f32.mrb[118].mxu0 }
 0x2d5   :  { %8990 = vst [vmem:[#allocation163_spill] sm:$0xff] %v7640_v39  ;;  %v7643_v31 = vadd.f32 %v7618_v0, %v2644_v15  ;;  %v2629_v25 = vmul.f32 %v2404_v46, %v2404_v46  ;;  %v2406_v29 = vpop.f32.mrb[119].mxu0 }
 0x2d7   :  { %v7645_v59 = vpop.f32.mrb[112].mxu1  ;;  %v2645_v4 = vadd.f32 %v2629_v25, %v2406_v29  ;;  %4371 = vrot.lane.b32.xlu0 %v7643_v31, %s6355_s7 }
 0x2d8   :  { %8991 = vst [vmem:[#allocation164_spill] sm:$0xff] %v7645_v59  ;;  %v7649_v11 = vpop.f32.mrb[113].mxu1  ;;  %v2410_v24 = vpop.f32.mrb[120].mxu0 }
 0x2d9   :  { %8992 = vst [vmem:[#allocation165_spill] sm:$0xff] %v7649_v11  ;;  %v7652_v42 = vadd.f32 %v7618_v0, %v2645_v4  ;;  %v2630_v7 = vmul.f32 %v2410_v24, %v2410_v24  ;;  %v2412_v39 = vpop.f32.mrb[121].mxu0 }
 0x2db   :  { %v7654_v6 = vpop.f32.mrb[114].mxu1  ;;  %4373 = vrot.lane.b32.xlu1 %v7652_v42, %s6355_s7  ;;  %v2646_v15 = vadd.f32 %v2630_v7, %v2412_v39 }
 0x2dc   :  { %8993 = vst [vmem:[#allocation166_spill] sm:$0xff] %v7654_v6  ;;  %v7658_v46 = vpop.f32.mrb[115].mxu1  ;;  %v2416_v29 = vpop.f32.mrb[122].mxu0 }
 0x2dd   :  { %8994 = vst [vmem:[#allocation167_spill] sm:$0xff] %v7658_v46  ;;  %v7661_v25 = vadd.f32 %v7618_v0, %v2646_v15  ;;  %v2631_v59 = vmul.f32 %v2416_v29, %v2416_v29  ;;  %v2418_v11 = vpop.f32.mrb[123].mxu0 }
 0x2df   :  { %v7663_v62 = vpop.f32.mrb[116].mxu1  ;;  %v2647_v4 = vadd.f32 %v2631_v59, %v2418_v11  ;;  %4375 = vrot.lane.b32.xlu0 %v7661_v25, %s6355_s7 }
 0x2e0   :  { %8995 = vst [vmem:[#allocation168_spill] sm:$0xff] %v7663_v62  ;;  %v7667_v24 = vpop.f32.mrb[117].mxu1  ;;  %v2422_v6 = vpop.f32.mrb[124].mxu0 }
 0x2e1   :  { %8996 = vst [vmem:[#allocation169_spill] sm:$0xff] %v7667_v24  ;;  %v7670_v7 = vadd.f32 %v7618_v0, %v2647_v4  ;;  %v2632_v39 = vmul.f32 %v2422_v6, %v2422_v6  ;;  %v2424_v46 = vpop.f32.mrb[125].mxu0 }
 0x2e3   :  { %v7672_v57 = vpop.f32.mrb[118].mxu1  ;;  %4377 = vrot.lane.b32.xlu1 %v7670_v7, %s6355_s7  ;;  %v2648_v15 = vadd.f32 %v2632_v39, %v2424_v46  ;;  %4544 = vrot.lane.b32.xlu0 %v159_v54, %s6355_s7  ;;  %v4667_v46 = vmul.f32 %v6108_v44, %v6108_v44 }
 0x2e4   :  { %8997 = vst [vmem:[#allocation170_spill] sm:$0xff] %v7672_v57  ;;  %v7677_v59 = vpop.f32.mrb[119].mxu1  ;;  %v2428_v11 = vpop.f32.mrb[126].mxu0  ;;  %v6107_v57 = vld [vmem:[#allocation2] sm:$0xff] }
 0x2e5   :  { %8998 = vst [vmem:[#allocation171_spill] sm:$0xff] %v7677_v59  ;;  %v7680_v29 = vadd.f32 %v7618_v0, %v2648_v15  ;;  %v2633_v24 = vmul.f32 %v2428_v11, %v2428_v11  ;;  %v2430_v62 = vpop.f32.mrb[127].mxu0  ;;  %v4666_v33 = vmul.f32 %v6107_v57, %v6107_v57  ;;  %v6110_v57 = vld [vmem:[#allocation2 + $0x18] sm:$0xff] }
 0x2e6   :  { %v4669_v3 = vmul.f32 %v6110_v57, %v6110_v57 }
 0x2e7   :  { %v7682_v4 = vpop.f32.mrb[120].mxu1  ;;  %v2649_v6 = vadd.f32 %v2633_v24, %v2430_v62  ;;  %4379 = vrot.lane.b32.xlu0 %v7680_v29, %s6355_s7  ;;  %v6001_v24 = vpack.i.bf16 %v4667_v46, %v4666_v33 }
 0x2e8   :  { %8999 = vst [vmem:[#allocation172_spill] sm:$0xff] %v7682_v4  ;;  %v7686_v39 = vpop.f32.mrb[121].mxu1  ;;  %v2434_v54 = vpop.f32.mrb[128].mxu0  ;;  %v6109_v4 = vld [vmem:[#allocation2 + $0x10] sm:$0xff] }
 0x2e9   :  { %9000 = vst [vmem:[#allocation173_spill] sm:$0xff] %v7686_v39  ;;  %v7689_v59 = vadd.f32 %v7618_v0, %v2649_v6  ;;  %v2634_v15 = vmul.f32 %v2434_v54, %v2434_v54  ;;  %v2436_v13 = vpop.f32.mrb[129].mxu0  ;;  %v4668_v28 = vmul.f32 %v6109_v4, %v6109_v4 }
 0x2eb   :  { %9001 = vst [vmem:[#allocation174_spill] sm:$0xff] %v7689_v59  ;;  %v7691_v11 = vpop.f32.mrb[122].mxu1  ;;  %4381 = vrot.lane.b32.xlu1 %v7689_v59, %s6355_s7  ;;  %v2650_v62 = vadd.f32 %v2634_v15, %v2436_v13  ;;  %v6006_v13 = vpack.i.bf16 %v4669_v3, %v4668_v28 }
 0x2ec   :  { %9002 = vst [vmem:[#allocation175_spill] sm:$0xff] %v7691_v11  ;;  %v7695_v44 = vpop.f32.mrb[123].mxu1  ;;  %v2440_v39 = vpop.f32.mrb[130].mxu0 }
 0x2ed   :  { %9003 = vst [vmem:[#allocation176_spill] sm:$0xff] %v7695_v44  ;;  %v7698_v10 = vadd.f32 %v7618_v0, %v2650_v62  ;;  %v2635_v6 = vmul.f32 %v2440_v39, %v2440_v39  ;;  %v2442_v54 = vpop.f32.mrb[131].mxu0 }
 0x2ef   :  { %9004 = vst [vmem:[#allocation177_spill] sm:$0xff] %v7698_v10  ;;  %v7700_v61 = vpop.f32.mrb[124].mxu1  ;;  %v2651_v11 = vadd.f32 %v2635_v6, %v2442_v54  ;;  %6002 = vrot.lane.b32.xlu1 %v6001_v24, %s6355_s7  ;;  %4383 = vrot.lane.b32.xlu0 %v7698_v10, %s6355_s7  ;;  %v6111_v24 = vld [vmem:[#allocation2 + $0x20] sm:$0xff]  ;;  %v6112_v54 = vld [vmem:[#allocation2 + $0x28] sm:$0xff] }
 0x2f0   :  { %9005 = vst [vmem:[#allocation178_spill] sm:$0xff] %v7700_v61  ;;  %v7705_v33 = vpop.f32.mrb[125].mxu1  ;;  %v2446_v4 = vpop.f32.mrb[132].mxu0  ;;  %v4670_v6 = vmul.f32 %v6111_v24, %v6111_v24  ;;  %v4671_v28 = vmul.f32 %v6112_v54, %v6112_v54 }
 0x2f1   :  { %9006 = vst [vmem:[#allocation179_spill] sm:$0xff] %v7705_v33  ;;  %v7708_v46 = vadd.f32 %v7618_v0, %v2651_v11  ;;  %v2636_v15 = vmul.f32 %v2446_v4, %v2446_v4  ;;  %v2448_v62 = vpop.f32.mrb[133].mxu0 }
 0x2f3   :  { %9007 = vst [vmem:[#allocation180_spill] sm:$0xff] %v7708_v46  ;;  %v7710_v57 = vpop.f32.mrb[126].mxu1  ;;  %4385 = vrot.lane.b32.xlu1 %v7708_v46, %s6355_s7  ;;  %v2652_v39 = vadd.f32 %v2636_v15, %v2448_v62  ;;  %6007 = vrot.lane.b32.xlu0 %v6006_v13, %s6355_s7  ;;  %v6011_v15 = vpack.i.bf16 %v4671_v28, %v4670_v6  ;;  %v6113_v28 = vld [vmem:[#allocation2 + $0x30] sm:$0xff] }
 0x2f4   :  { %9008 = vst [vmem:[#allocation181_spill] sm:$0xff] %v7710_v57  ;;  %v7715_v3 = vpop.f32.mrb[127].mxu1  ;;  %v2452_v33 = vpop.f32.mrb[134].mxu0  ;;  %v266_v46 = vld [vmem:[#allocation13] sm:$0xff] }
 0x2f5   :  { %9009 = vst [vmem:[#allocation182_spill] sm:$0xff] %v7715_v3  ;;  %v7718_v11 = vadd.f32 %v7618_v0, %v2652_v39  ;;  %v2637_v4 = vmul.f32 %v2452_v33, %v2452_v33  ;;  %v2454_v61 = vpop.f32.mrb[135].mxu0  ;;  %v275_v39 = vld [vmem:[#allocation13 + $0x48] sm:$0xff] }
 0x2f7   :  { %9010 = vst [vmem:[#allocation183_spill] sm:$0xff] %v7718_v11  ;;  %v7720_v44 = vpop.f32.mrb[128].mxu1  ;;  %v2653_v57 = vadd.f32 %v2637_v4, %v2454_v61  ;;  %4387 = vrot.lane.b32.xlu1 %v7718_v11, %s6355_s7  ;;  %v5816_v61 = vpack.c.bf16 %v275_v39, %v267_v47  ;;  %v4672_v4 = vmul.f32 %v6113_v28, %v6113_v28  ;;  %v282_v39 = vld [vmem:[#allocation13 + $0x80] sm:$0xff] }
 0x2f8   :  { %9011 = vst [vmem:[#allocation184_spill] sm:$0xff] %v7720_v44  ;;  %v7724_v13 = vpop.f32.mrb[129].mxu1  ;;  %v5818_v47 = vpack.c.bf16 %v274_v63, %v266_v46 }
 0x2f9   :  { %9012 = vst [vmem:[#allocation185_spill] sm:$0xff] %v7724_v13  ;;  %v7727_v62 = vadd.f32 %v7618_v0, %v2653_v57  ;;  %v2458_v24 = vpop.f32.mrb[136].mxu0  ;;  %v6114_v57 = vld [vmem:[#allocation2 + $0x38] sm:$0xff]  ;;  %5817 = vmatprep.subr.bf16.mxu0 %v5816_v61 }
 0x2fa   :  { %v2638_v54 = vmul.f32 %v2458_v24, %v2458_v24  ;;  %v2460_v3 = vpop.f32.mrb[137].mxu0  ;;  %v4673_v44 = vmul.f32 %v6114_v57, %v6114_v57  ;;  %v269_v57 = vld [vmem:[#allocation13 + $0x18] sm:$0xff]  ;;  %5819 = vmatpush1.bf16.msra.mxu0 %v5818_v47 }
 0x2fb   :  { %9013 = vst [vmem:[#allocation186_spill] sm:$0xff] %v7727_v62  ;;  %v7729_v55 = vpop.f32.mrb[130].mxu1  ;;  %4389 = vrot.lane.b32.xlu0 %v7727_v62, %s6355_s7  ;;  %6012 = vrot.lane.b32.xlu1 %v6011_v15, %s6355_s7  ;;  %v283_v62 = vld [vmem:[#allocation13 + $0x88] sm:$0xff] }
 0x2fc   :  { %9014 = vst [vmem:[#allocation187_spill] sm:$0xff] %v7729_v55  ;;  %v7734_v33 = vpop.f32.mrb[131].mxu1  ;;  %v2654_v6 = vadd.f32 %v2638_v54, %v2460_v3  ;;  %v291_v15 = vld [vmem:[#allocation13 + $0xc8] sm:$0xff]  ;;  %v290_v3 = vld [vmem:[#allocation13 + $0xc0] sm:$0xff]  ;;  %v6016_v61 = vpack.i.bf16 %v4673_v44, %v4672_v4 }
 0x2fd   :  { %9015 = vst [vmem:[#allocation188_spill] sm:$0xff] %v7734_v33  ;;  %v2464_v13 = vpop.f32.mrb[138].mxu0  ;;  %v5822_v10 = vpack.c.bf16 %v290_v3, %v282_v39  ;;  %v952_v39 = vsub.s32 1, %v6734_v22 }
 0x2fe   :  { %v7737_v24 = vadd.f32 %v7618_v0, %v2654_v6  ;;  %v2639_v11 = vmul.f32 %v2464_v13, %v2464_v13  ;;  %v2466_v55 = vpop.f32.mrb[139].mxu0  ;;  %v5820_v6 = vpack.c.bf16 %v291_v15, %v283_v62  ;;  %v277_v13 = vld [vmem:[#allocation13 + $0x58] sm:$0xff] }
 0x2ff   :  { %v7739_v34 = vpop.f32.mrb[132].mxu1  ;;  %v5824_v27 = vpack.c.bf16 %v277_v13, %v269_v57 }
 0x300   :  { %9016 = vst [vmem:[#allocation189_spill] sm:$0xff] %v7739_v34  ;;  %v7741_v54 = vpop.f32.mrb[133].mxu1  ;;  %v2655_v28 = vadd.f32 %v2639_v11, %v2466_v55  ;;  %4391 = vrot.lane.b32.xlu0 %v7737_v24, %s6355_s7  ;;  %5821 = vmatprep.subr.bf16.mxu0 %v5820_v6 }
 0x301   :  { %v2470_v33 = vpop.f32.mrb[140].mxu0  ;;  %5825 = vmatprep.subr.bf16.mxu1 %v5824_v27  ;;  %5823 = vmatpush1.bf16.msra.mxu0 %v5822_v10 }
 0x302   :  { %v7746_v34 = vadd.f32 %v7618_v0, %v2655_v28  ;;  %v2640_v63 = vmul.f32 %v2470_v33, %v2470_v33  ;;  %v2472_v46 = vpop.f32.mrb[141].mxu0 }
 0x303   :  { %v7748_v59 = vpop.f32.mrb[134].mxu1 }
 0x304   :  { %v7750_v55 = vpop.f32.mrb[135].mxu1  ;;  %4393 = vrot.lane.b32.xlu1 %v7746_v34, %s6355_s7  ;;  %v2656_v44 = vadd.f32 %v2640_v63, %v2472_v46  ;;  %6017 = vrot.lane.b32.xlu0 %v6016_v61, %s6355_s7  ;;  %v7775_v61 = vrot.slane %v7615_v50, %v952_v39  ;;  %v268_v50 = vld [vmem:[#allocation13 + $0x10] sm:$0xff] }
 0x305   :  { %v2476_v11 = vpop.f32.mrb[142].mxu0 }
 0x306   :  { %v7756_v62 = vadd.f32 %v7618_v0, %v2656_v44  ;;  %v2641_v4 = vmul.f32 %v2476_v11, %v2476_v11  ;;  %v2478_v33 = vpop.f32.mrb[143].mxu0  ;;  %v1075_v13 = vadd.f32 %v7345_v45, %v7775_v61  ;;  %v1085_v44 = vadd.f32 %v7365_v18, %v7775_v61 }
 0x307   :  { %v7758_v47 = vpop.f32.mrb[136].mxu1  ;;  %v1090_v18 = vadd.f32 %v7387_v41, %v7775_v61 }
 0x308   :  { %9017 = vst [vmem:[#allocation190_spill] sm:$0xff] %v7758_v47  ;;  %v7760_v15 = vpop.f32.mrb[137].mxu1  ;;  %v2657_v27 = vadd.f32 %v2641_v4, %v2478_v33  ;;  %4395 = vrot.lane.b32.xlu1 %v7756_v62, %s6355_s7  ;;  %v1149_v11 = vand.u32 2147483647, %v1075_v13  ;;  %v276_v4 = vld [vmem:[#allocation13 + $0x50] sm:$0xff]  ;;  %v1080_v33 = vadd.f32 %v7367_v26, %v7775_v61 }
 0x30a   :  { %v7766_v3 = vadd.f32 %v7618_v0, %v2657_v27  ;;  %v1070_v0 = vadd.f32 %v7347_v16, %v7775_v61  ;;  %v1095_v16 = vadd.f32 %v7385_v32, %v7775_v61 }
 0x30b   :  { %v7768_v28 = vpop.f32.mrb[138].mxu1 }
 0x30c   :  { %9018 = vst [vmem:[#allocation191_spill] sm:$0xff] %v7768_v28  ;;  %v7770_v10 = vpop.f32.mrb[139].mxu1  ;;  %4397 = vrot.lane.b32.xlu0 %v7766_v3, %s6355_s7  ;;  %v1148_v39 = vand.u32 2147483647, %v1070_v0  ;;  %v1151_v28 = vand.u32 2147483647, %v1085_v44  ;;  %v1100_v44 = vadd.f32 %v7404_v20, %v7775_v61 }
 0x30d   :  { %9019 = vst [vmem:[#allocation192_spill] sm:$0xff] %v7770_v10  ;;  %v1153_v0 = vand.u32 2147483647, %v1095_v16 }
 0x30f   :  { %v7777_v6 = vpop.f32.mrb[140].mxu1 }
 0x310   :  { %9020 = vst [vmem:[#allocation193_spill] sm:$0xff] %v7777_v6  ;;  %v7779_v57 = vpop.f32.mrb[141].mxu1 }
 0x311   :  { %9021 = vst [vmem:[#allocation194_spill] sm:$0xff] %v7779_v57 }
 0x313   :  { %v7783_v63 = vpop.f32.mrb[142].mxu1 }
 0x314   :  { %9022 = vst [vmem:[#allocation195_spill] sm:$0xff] %v7783_v63  ;;  %v7787_v46 = vpop.f32.mrb[143].mxu1  ;;  %v5826_v63 = vpack.c.bf16 %v276_v4, %v268_v50  ;;  %v1152_v50 = vand.u32 2147483647, %v1090_v18 }
 0x315   :  { %9023 = vst [vmem:[#allocation196_spill] sm:$0xff] %v7787_v46  ;;  %v1150_v46 = vand.u32 2147483647, %v1080_v33 }
 0x317   :  { %v5529_v27 = vpop.f32.mrb[144].mxu1 }
 0x318   :  { %v2679_v6 = vmul.f32 %v5529_v27, %v1149_v11  ;;  %v2547_v45 = vpop.f32.mrb[145].mxu1  ;;  %v1105_v11 = vadd.f32 %v7402_v40, %v7775_v61 }
 0x319   :  { %v2678_v57 = vmul.f32 %v2547_v45, %v1148_v39  ;;  %v1125_v39 = vadd.f32 %v7418_v19, %v7775_v61  ;;  %v1120_v45 = vadd.f32 %v7420_v43, %v7775_v61 }
 0x31b   :  { %v5532_v13 = vpop.f32.mrb[146].mxu1  ;;  %5559 = vmatprep.mubr.f32.mxu1 %v2678_v57  ;;  %v1155_v57 = vand.u32 2147483647, %v1105_v11  ;;  %v1130_v11 = vadd.f32 %v7428_v53, %v7775_v61 }
 0x31c   :  { %v2681_v10 = vmul.f32 %v5532_v13, %v1151_v28  ;;  %v2557_v47 = vpop.f32.mrb[147].mxu1  ;;  %5560 = vmatmul.mubr.f32.vlgmr.msra.gmra.mrb[160].mxu1 %v2679_v6  ;;  %v1115_v28 = vadd.f32 %v7410_v9, %v7775_v61  ;;  %v1110_v6 = vadd.f32 %v7412_v52, %v7775_v61  ;;  %v1159_v13 = vand.u32 2147483647, %v1125_v39  ;;  %v292_v39 = vld [vmem:[#allocation13 + $0xd0] sm:$0xff] }
 0x31d   :  { %v2680_v26 = vmul.f32 %v2557_v47, %v1150_v46  ;;  %5827 = vmatpush1.bf16.msra.mxu1 %v5826_v63  ;;  %v1154_v47 = vand.u32 2147483647, %v1100_v44 }
 0x31e   :  { %v1157_v27 = vand.u32 2147483647, %v1115_v28 }
 0x31f   :  { %v5535_v32 = vpop.f32.mrb[148].mxu1  ;;  %5562 = vmatprep.mubr.f32.mxu1 %v2680_v26  ;;  %v1135_v26 = vadd.f32 %v7426_v49, %v7775_v61 }
 0x320   :  { %v2683_v4 = vmul.f32 %v5535_v32, %v1153_v0  ;;  %v2567_v33 = vpop.f32.mrb[149].mxu1  ;;  %5563 = vmatmul.mubr.f32.gmra.mrb[162].mxu1 %v2681_v10  ;;  %v1156_v10 = vand.u32 2147483647, %v1110_v6  ;;  %v1158_v0 = vand.u32 2147483647, %v1120_v45  ;;  %v271_v45 = vld [vmem:[#allocation13 + $0x28] sm:$0xff] }
 0x321   :  { %v2682_v41 = vmul.f32 %v2567_v33, %v1152_v50  ;;  %v1161_v32 = vand.u32 2147483647, %v1135_v26  ;;  %v1160_v33 = vand.u32 2147483647, %v1130_v11  ;;  %v7818_v26 = vld [vmem:[#allocation14 + $0x18] sm:$0xff] }
 0x323   :  { %v5538_v63 = vpop.f32.mrb[150].mxu1  ;;  %5565 = vmatprep.mubr.f32.mxu1 %v2682_v41  ;;  %v1140_v41 = vadd.f32 %v7436_v17, %v7775_v61  ;;  %v293_v17 = vld [vmem:[#allocation13 + $0xd8] sm:$0xff] }
 0x324   :  { %v2685_v40 = vmul.f32 %v5538_v63, %v1155_v57  ;;  %v2577_v46 = vpop.f32.mrb[151].mxu1  ;;  %5566 = vmatmul.mubr.f32.gmra.mrb[164].mxu1 %v2683_v4  ;;  %v1145_v4 = vadd.f32 %v7434_v30, %v7775_v61  ;;  %v285_v30 = vld [vmem:[#allocation13 + $0x98] sm:$0xff] }
 0x325   :  { %v2684_v20 = vmul.f32 %v2577_v46, %v1154_v47  ;;  %v1162_v6 = vand.u32 2147483647, %v1140_v41  ;;  %v5828_v61 = vpack.c.bf16 %v293_v17, %v285_v30 }
 0x326   :  { %v1163_v47 = vand.u32 2147483647, %v1145_v4 }
 0x327   :  { %v5541_v16 = vpop.f32.mrb[152].mxu1  ;;  %5568 = vmatprep.mubr.f32.mxu1 %v2684_v20  ;;  %5829 = vmatprep.subr.bf16.mxu1 %v5828_v61 }
 0x328   :  { %v2687_v9 = vmul.f32 %v5541_v16, %v1157_v27  ;;  %v2587_v18 = vpop.f32.mrb[153].mxu1  ;;  %5569 = vmatmul.mubr.f32.gmra.mrb[166].mxu1 %v2685_v40  ;;  %v284_v27 = vld [vmem:[#allocation13 + $0x90] sm:$0xff]  ;;  %v279_v16 = vld [vmem:[#allocation13 + $0x68] sm:$0xff] }
 0x329   :  { %v2686_v52 = vmul.f32 %v2587_v18, %v1156_v10  ;;  %v5830_v10 = vpack.c.bf16 %v292_v39, %v284_v27  ;;  %v273_v18 = vld [vmem:[#allocation13 + $0x38] sm:$0xff] }
 0x32b   :  { %v5544_v50 = vpop.f32.mrb[154].mxu1  ;;  %5571 = vmatprep.mubr.f32.mxu1 %v2686_v52  ;;  %5831 = vmatpush1.bf16.msra.mxu1 %v5830_v10  ;;  %v281_v52 = vld [vmem:[#allocation13 + $0x78] sm:$0xff] }
 0x32c   :  { %v2689_v19 = vmul.f32 %v5544_v50, %v1159_v13  ;;  %v2597_v44 = vpop.f32.mrb[155].mxu1  ;;  %5572 = vmatmul.mubr.f32.gmra.mrb[168].mxu1 %v2687_v9  ;;  %v5832_v9 = vpack.c.bf16 %v279_v16, %v271_v45  ;;  %v5840_v13 = vpack.c.bf16 %v281_v52, %v273_v18 }
 0x32d   :  { %v2688_v43 = vmul.f32 %v2597_v44, %v1158_v0  ;;  %v7822_v0 = vrot.slane %v7818_v26, %v6741_v14 }
 0x32e   :  { %5833 = vmatprep.subr.bf16.mxu0 %v5832_v9  ;;  %5841 = vmatprep.subr.bf16.mxu1 %v5840_v13  ;;  %v270_v13 = vld [vmem:[#allocation13 + $0x20] sm:$0xff] }
 0x32f   :  { %v5547_v57 = vpop.f32.mrb[156].mxu1  ;;  %5574 = vmatprep.mubr.f32.mxu1 %v2688_v43  ;;  %v639_v11 = vadd.f32 %v6863_v56, %v7822_v0  ;;  %v645_v56 = vadd.f32 %v6879_v2, %v7822_v0  ;;  %v657_v2 = vadd.f32 %v6905_v23, %v7822_v0  ;;  %v669_v23 = vadd.f32 %v6935_v51, %v7822_v0 }
 0x330   :  { %v2691_v49 = vmul.f32 %v5547_v57, %v1161_v32  ;;  %v2607_v28 = vpop.f32.mrb[157].mxu1  ;;  %5575 = vmatmul.mubr.f32.gmra.mrb[170].mxu1 %v2689_v19  ;;  %v633_v19 = vadd.f32 %v6846_v48, %v7822_v0 }
 0x331   :  { %v2690_v53 = vmul.f32 %v2607_v28, %v1160_v33  ;;  %v651_v33 = vadd.f32 %v6892_v37, %v7822_v0  ;;  %v663_v37 = vadd.f32 %v6919_v36, %v7822_v0  ;;  %v675_v36 = vadd.f32 %v6958_v1, %v7822_v0 }
 0x332   :  { %v687_v1 = vadd.f32 %v6999_v21, %v7822_v0 }
 0x333   :  { %v5550_v63 = vpop.f32.mrb[158].mxu1  ;;  %5577 = vmatprep.mubr.f32.mxu1 %v2690_v53 }
 0x334   :  { %v2693_v40 = vmul.f32 %v5550_v63, %v1163_v47  ;;  %v2617_v46 = vpop.f32.mrb[159].mxu1  ;;  %5578 = vmatmul.mubr.f32.gmra.mrb[172].mxu1 %v2691_v49 }
 0x335   :  { %v2692_v20 = vmul.f32 %v2617_v46, %v1162_v6 }
 0x337   :  { %5580 = vmatprep.mubr.f32.mxu1 %v2692_v20 }
 0x338   :  { %5581 = vmatmul.mubr.f32.gmra.mrb[174].mxu1 %v2693_v40 }
 0x339   :  { %3224 = vmatprep.mubr.f32.mxu1 %v8868_v38 }
 0x3ef   :  { %v5561_v50 = vpop.f32.mrb[160].mxu1 }
 0x3f0   :  { %v2766_v44 = vadd.f32 %v5561_v50, %v639_v11  ;;  %v2760_v43 = vpop.f32.mrb[161].mxu1  ;;  %v278_v50 = vld [vmem:[#allocation13 + $0x60] sm:$0xff] }
 0x3f1   :  { %v2761_v32 = vadd.f32 %v2760_v43, %v633_v19  ;;  %v272_v19 = vld [vmem:[#allocation13 + $0x30] sm:$0xff] }
 0x3f2   :  { %v7829_v4 = vadd.f32 %v2766_v44, %v7634_v5  ;;  %v280_v44 = vld [vmem:[#allocation13 + $0x70] sm:$0xff] }
 0x3f3   :  { %v7834_v41 = vadd.f32 %v2761_v32, %v7625_v8  ;;  %v5564_v57 = vpop.f32.mrb[162].mxu1 }
 0x3f4   :  { %v2872_v49 = vmin.f32 %v7829_v4, 0.0  ;;  %v2776_v28 = vadd.f32 %v5564_v57, %v651_v33  ;;  %v2770_v48 = vpop.f32.mrb[163].mxu1  ;;  %v699_v57 = vadd.f32 %v7035_v58, %v7822_v0  ;;  %vm2856_vm5 = vcmp.gt.f32.partialorder %v7829_v4, 0.0 }
 0x3f5   :  { %v2871_v53 = vmin.f32 %v7834_v41, 0.0  ;;  %v2771_v47 = vadd.f32 %v2770_v48, %v645_v56  ;;  %v711_v48 = vadd.f32 %v7068_v12, %v7822_v0  ;;  %vm2855_vm4 = vcmp.gt.f32.partialorder %v7834_v41, 0.0 }
 0x3f6   :  { %v2889_v6 = vmul.f32 1.442695, %v2872_v49  ;;  %v7841_v5 = vadd.f32 %v2776_v28, %v7652_v42  ;;  %v693_v28 = vadd.f32 %v7017_v60, %v7822_v0 }
 0x3f7   :  { %v2887_v8 = vmul.f32 1.442695, %v2871_v53  ;;  %v7846_v63 = vadd.f32 %v2771_v47, %v7643_v31  ;;  %v5567_v40 = vpop.f32.mrb[164].mxu1  ;;  %v5834_v53 = vpack.c.bf16 %v278_v50, %v270_v13  ;;  %v5842_v47 = vpack.c.bf16 %v280_v44, %v272_v19  ;;  %v9026_v50 = vld [vmem:[#allocation177_spill] sm:$0xff] }
 0x3f8   :  { %6042 = vpow2.f32 %v2889_v6  ;;  %v2874_v46 = vmin.f32 %v7841_v5, 0.0  ;;  %v2786_v20 = vadd.f32 %v5567_v40, %v663_v37  ;;  %v2780_v30 = vpop.f32.mrb[165].mxu1  ;;  %v295_v6 = vld [vmem:[#allocation13 + $0xe8] sm:$0xff]  ;;  %v289_v37 = vld [vmem:[#allocation13 + $0xb8] sm:$0xff]  ;;  %vm2858_vm7 = vcmp.gt.f32.partialorder %v7841_v5, 0.0 }
 0x3f9   :  { %6044 = vpow2.f32 %v2887_v8  ;;  %v2873_v42 = vmin.f32 %v7846_v63, 0.0  ;;  %v2781_v17 = vadd.f32 %v2780_v30, %v657_v2  ;;  %v9024_v40 = vld [vmem:[#allocation174_spill] sm:$0xff]  ;;  %v294_v30 = vld [vmem:[#allocation13 + $0xe0] sm:$0xff]  ;;  %vm2857_vm6 = vcmp.gt.f32.partialorder %v7846_v63, 0.0 }
 0x3fa   :  { %v2893_v39 = vmul.f32 1.442695, %v2874_v46  ;;  %v7860_v16 = vadd.f32 %v2786_v20, %v7670_v7  ;;  %v286_v20 = vld [vmem:[#allocation13 + $0xa0] sm:$0xff] }
 0x3fb   :  { %v2891_v61 = vmul.f32 1.442695, %v2873_v42  ;;  %v7855_v31 = vadd.f32 %v2781_v17, %v7661_v25  ;;  %v5570_v27 = vpop.f32.mrb[166].mxu1  ;;  %v681_v25 = vadd.f32 %v6980_v35, %v7822_v0  ;;  %v287_v35 = vld [vmem:[#allocation13 + $0xa8] sm:$0xff]  ;;  %v288_v17 = vld [vmem:[#allocation13 + $0xb0] sm:$0xff] }
 0x3fc   :  { %v2796_v10 = vadd.f32 %v5570_v27, %v675_v36  ;;  %v2790_v45 = vpop.f32.mrb[167].mxu1  ;;  %v2876_v7 = vmin.f32 %v7860_v16, 0.0  ;;  %v296_v36 = vld [vmem:[#allocation13 + $0xf0] sm:$0xff]  ;;  %vm2860_vm9 = vcmp.gt.f32.partialorder %v7860_v16, 0.0 }
 0x3fd   :  { %6046 = vpow2.f32 %v2891_v61  ;;  %v2875_v9 = vmin.f32 %v7855_v31, 0.0  ;;  %v2791_v18 = vadd.f32 %v2790_v45, %v669_v23  ;;  %v5836_v23 = vpack.c.bf16 %v295_v6, %v287_v35 }
 0x3fe   :  { %6048 = vpow2.f32 %v2893_v39  ;;  %v7881_v2 = vadd.f32 %v2796_v10, %v9024_v40  ;;  %v2897_v60 = vmul.f32 1.442695, %v2876_v7  ;;  %v5846_v13 = vpack.c.bf16 %v296_v36, %v288_v17 }
 0x3ff   :  { %v5573_v52 = vpop.f32.mrb[168].mxu1  ;;  %v2895_v43 = vmul.f32 1.442695, %v2875_v9  ;;  %v7871_v32 = vadd.f32 %v2791_v18, %v7680_v29  ;;  %v297_v29 = vld [vmem:[#allocation13 + $0xf8] sm:$0xff]  ;;  %vm2859_vm8 = vcmp.gt.f32.partialorder %v7855_v31, 0.0 }
 0x400   :  { %v7867_v51 = vadd.f32 %v5573_v52, %v687_v1  ;;  %v2800_v11 = vpop.f32.mrb[169].mxu1  ;;  %v5844_v39 = vpack.c.bf16 %v297_v29, %v289_v37  ;;  %v9025_v9 = vld [vmem:[#allocation40_spill] sm:$0xff]  ;;  %v5838_v1 = vpack.c.bf16 %v294_v30, %v286_v20  ;;  %v2878_v52 = vmin.f32 %v7881_v2, 0.0 }
 0x401   :  { %v2801_v33 = vadd.f32 %v2800_v11, %v681_v25  ;;  %6050 = vpow2.f32 %v2895_v43  ;;  %v2877_v12 = vmin.f32 %v7871_v32, 0.0  ;;  %v705_v18 = vadd.f32 %v9025_v9, %v7822_v0  ;;  %v9027_v43 = vld [vmem:[#allocation48_spill] sm:$0xff] }
 0x402   :  { %v6043_v21 = vpop.eup %6042  ;;  %6052 = vpow2.f32 %v2897_v60  ;;  %v309_v20 = vld [vmem:[#allocation13 + $0x158] sm:$0xff]  ;;  %v9030_v60 = vld [vmem:[#allocation183_spill] sm:$0xff]  ;;  %vm2861_vm10 = vcmp.gt.f32.partialorder %v7871_v32, 0.0  ;;  %vm2862_vm11 = vcmp.gt.f32.partialorder %v7881_v2, 0.0 }
 0x403   :  { %v6045_v56 = vpop.eup %6044  ;;  %v5576_v49 = vpop.f32.mrb[170].mxu1  ;;  %v5163_v27 = vadd.f32 -1.0, %v6043_v21  ;;  %v2899_v11 = vmul.f32 1.442695, %v2877_v12  ;;  %v7902_v19 = vadd.f32 %v2801_v33, %v9026_v50  ;;  %v723_v21 = vadd.f32 %v9027_v43, %v7822_v0  ;;  %v9028_v33 = vld [vmem:[#allocation45_spill] sm:$0xff] }
 0x404   :  { %v5162_v8 = vadd.f32 -1.0, %v6045_v56  ;;  %v7883_v58 = vadd.f32 %v5576_v49, %v699_v57  ;;  %v2810_v46 = vpop.f32.mrb[171].mxu1  ;;  %v717_v49 = vadd.f32 %v9028_v33, %v7822_v0 }
 0x405   :  { %v7886_v42 = vadd.f32 %v2810_v46, %v693_v28  ;;  %v7911_v57 = vsel %vm2856_vm5, %v7829_v4, %v5163_v27  ;;  %v2901_v28 = vmul.f32 1.442695, %v2878_v52  ;;  %6054 = vpow2.f32 %v2899_v11  ;;  %v9029_v4 = vld [vmem:[#allocation180_spill] sm:$0xff] }
 0x406   :  { %v7889_v61 = vsel %vm2855_vm4, %v7834_v41, %v5162_v8  ;;  %v2879_v6 = vmin.f32 %v7902_v19, 0.0  ;;  %v299_v8 = vld [vmem:[#allocation13 + $0x108] sm:$0xff]  ;;  %v301_v46 = vld [vmem:[#allocation13 + $0x118] sm:$0xff]  ;;  %vm2863_vm12 = vcmp.gt.f32.partialorder %v7902_v19, 0.0 }
 0x407   :  { %v6047_v10 = vpop.eup %6046  ;;  %v5579_v45 = vpop.f32.mrb[172].mxu1  ;;  %5178 = vmatmul.mubr.msk.f32.vlgmr.msra.gmra.mrb[144].mxu0 %vm354_vm0, %v7889_v61  ;;  %5194 = vmatmul.mubr.msk.f32.vlgmr.msra.gmra.mrb[176].mxu1 %vm354_vm0, %v7889_v61  ;;  %6056 = vpow2.f32 %v2901_v28  ;;  %v7944_v12 = vadd.f32 %v7886_v42, %v9030_v60 }
 0x408   :  { %v7898_v25 = vadd.f32 %v5579_v45, %v711_v48  ;;  %5835 = vmatpush1.bf16.msra.mxu0 %v5834_v53  ;;  %v2820_v41 = vpop.f32.mrb[173].mxu1  ;;  %5843 = vmatpush1.bf16.msra.mxu1 %v5842_v47  ;;  %v6049_v7 = vpop.eup %6048  ;;  %v5164_v35 = vadd.f32 -1.0, %v6047_v10  ;;  %v7926_v47 = vadd.f32 %v7867_v51, %v9029_v4  ;;  %v307_v51 = vld [vmem:[#allocation13 + $0x148] sm:$0xff]  ;;  %v2903_v30 = vmul.f32 1.442695, %v2879_v6 }
 0x409   :  { %v7904_v44 = vadd.f32 %v2820_v41, %v705_v18  ;;  %3069 = vmatprep.mubr.f32.mxu0 %v8868_v38  ;;  %3230 = vmatprep.mubr.f32.mxu1 %v8868_v38  ;;  %v5165_v29 = vadd.f32 -1.0, %v6049_v7  ;;  %v5848_v27 = vpack.c.bf16 %v307_v51, %v299_v8  ;;  %v2881_v45 = vmin.f32 %v7944_v12, 0.0 }
 0x40a   :  { %5837 = vmatprep.subr.bf16.mxu0 %v5836_v23  ;;  %5845 = vmatprep.subr.bf16.mxu1 %v5844_v39  ;;  %v7932_v0 = vsel %vm2857_vm6, %v7846_v63, %v5164_v35  ;;  %v2880_v63 = vmin.f32 %v7926_v47, 0.0  ;;  %v5856_v23 = vpack.c.bf16 %v309_v20, %v301_v46  ;;  %6058 = vpow2.f32 %v2903_v30  ;;  %vm8380_vm6 = vmpackc.low %vm354_vm0, %vm354_vm0 }
 0x40b   :  { %v5582_v56 = vpop.f32.mrb[174].mxu1  ;;  %5179 = vmatmul.mubr.msk.f32.gmra.mrb[146].mxu0 %vm354_vm0, %v7911_v57  ;;  %5195 = vmatmul.mubr.msk.f32.gmra.mrb[178].mxu1 %vm354_vm0, %v7911_v57  ;;  %v6051_v40 = vpop.eup %6050  ;;  %v7947_v17 = vsel %vm2858_vm7, %v7841_v5, %v5165_v29  ;;  %v9031_v5 = vld [vmem:[#allocation186_spill] sm:$0xff]  ;;  %v2907_v52 = vmul.f32 1.442695, %v2881_v45  ;;  %vm2864_vm13 = vcmp.gt.f32.partialorder %v7926_v47, 0.0  ;;  %vm2865_vm14 = vcmp.gt.f32.partialorder %v7944_v12, 0.0 }
 0x40c   :  { %v7919_v48 = vadd.f32 %v5582_v56, %v723_v21  ;;  %v2830_v53 = vpop.f32.mrb[175].mxu1  ;;  %3075 = vmatprep.mubr.f32.mxu0 %v8868_v38  ;;  %3236 = vmatprep.mubr.f32.mxu1 %v8868_v38  ;;  %v5166_v36 = vadd.f32 -1.0, %v6051_v40  ;;  %v6053_v39 = vpop.eup %6052  ;;  %v2905_v42 = vmul.f32 1.442695, %v2880_v63  ;;  %v7958_v10 = vadd.f32 %v7883_v58, %v9031_v5  ;;  %v308_v5 = vld [vmem:[#allocation13 + $0x150] sm:$0xff]  ;;  %v323_v45 = vld [vmem:[#allocation13 + $0x1c8] sm:$0xff] }
 0x40d   :  { %v7929_v37 = vadd.f32 %v2830_v53, %v717_v49  ;;  %5839 = vmatpush1.bf16.msra.mxu0 %v5838_v1  ;;  %5847 = vmatpush1.bf16.msra.mxu1 %v5846_v13  ;;  %v5167_v18 = vadd.f32 -1.0, %v6053_v39  ;;  %vm6357_vm7 = vmmov 0  }
 0x40e   :  { %5849 = vmatprep.subr.bf16.mxu0 %v5848_v27  ;;  %5857 = vmatprep.subr.bf16.mxu1 %v5856_v23  ;;  %v7962_v9 = vsel %vm2859_vm8, %v7855_v31, %v5166_v36  ;;  %6060 = vpow2.f32 %v2905_v42  ;;  %v2882_v58 = vmin.f32 %v7958_v10, 0.0  ;;  %v7974_v31 = vadd.f32 %v7904_v44, %v7737_v24  ;;  %v300_v42 = vld [vmem:[#allocation13 + $0x110] sm:$0xff]  ;;  %vm8555_vm8 = vmpackc.low %vm2280_vm3, %vm2280_vm3 }
 0x40f   :  { %5180 = vmatmul.mubr.msk.f32.gmra.mrb[148].mxu0 %vm354_vm0, %v7932_v0  ;;  %5196 = vmatmul.mubr.msk.f32.gmra.mrb[180].mxu1 %vm354_vm0, %v7932_v0  ;;  %v6055_v1 = vpop.eup %6054  ;;  %v7977_v41 = vsel %vm2860_vm9, %v7860_v16, %v5167_v18  ;;  %6062 = vpow2.f32 %v2907_v52  ;;  %v7988_v24 = vadd.f32 %v7898_v25, %v7746_v34  ;;  %vm2866_vm15 = vcmp.gt.f32.partialorder %v7958_v10, 0.0  ;;  %v317_v18 = vld [vmem:[#allocation13 + $0x198] sm:$0xff] }
 0x410   :  { %3081 = vmatprep.mubr.f32.mxu0 %v8868_v38  ;;  %3242 = vmatprep.mubr.f32.mxu1 %v8868_v38  ;;  %v5168_v13 = vadd.f32 -1.0, %v6055_v1  ;;  %v2909_v50 = vmul.f32 1.442695, %v2882_v58  ;;  %v2883_v16 = vmin.f32 %v7974_v31, 0.0  ;;  %vm2867_vm1 = vcmp.gt.f32.partialorder %v7974_v31, 0.0  ;;  %v325_v1 = vld [vmem:[#allocation13 + $0x1d8] sm:$0xff] }
 0x411   :  { %v6057_v11 = vpop.eup %6056  ;;  %v2884_v34 = vmin.f32 %v7988_v24, 0.0  ;;  %vm2868_vm2 = vcmp.gt.f32.partialorder %v7988_v24, 0.0  ;;  %v5858_v58 = vpack.c.bf16 %v308_v5, %v300_v42  ;;  %v329_v42 = vld [vmem:[#allocation13 + $0x1f8] sm:$0xff] }
 0x412   :  { %v7992_v44 = vsel %vm2861_vm10, %v7871_v32, %v5168_v13  ;;  %v5169_v7 = vadd.f32 -1.0, %v6057_v11  ;;  %6064 = vpow2.f32 %v2909_v50  ;;  %v2911_v25 = vmul.f32 1.442695, %v2883_v16  ;;  %v9032_v13 = vld [vmem:[#allocation86_spill] sm:$0xff]  ;;  %v316_v11 = vld [vmem:[#allocation13 + $0x190] sm:$0xff]  ;;  %v313_v16 = vld [vmem:[#allocation13 + $0x178] sm:$0xff] }
 0x413   :  { %5181 = vmatmul.mubr.msk.f32.gmra.mrb[150].mxu0 %vm354_vm0, %v7947_v17  ;;  %5197 = vmatmul.mubr.msk.f32.gmra.mrb[182].mxu1 %vm354_vm0, %v7947_v17  ;;  %v8004_v32 = vadd.f32 %v7929_v37, %v7756_v62  ;;  %v2913_v33 = vmul.f32 1.442695, %v2884_v34  ;;  %v8018_v62 = vadd.f32 %v7919_v48, %v7766_v3  ;;  %v324_v50 = vld [vmem:[#allocation13 + $0x1d0] sm:$0xff] }
 0x414   :  { %3087 = vmatprep.mubr.f32.mxu0 %v8868_v38  ;;  %3248 = vmatprep.mubr.f32.mxu1 %v8868_v38  ;;  %v6059_v43 = vpop.eup %6058  ;;  %v8007_v21 = vsel %vm2862_vm11, %v7881_v2, %v5169_v7  ;;  %6066 = vpow2.f32 %v2911_v25  ;;  %v6115_v7 = vld [vmem:[#allocation14 + $0x10] sm:$0xff]  ;;  %v6116_v25 = vld [vmem:[#allocation14] sm:$0xff] }
 0x415   :  { %v5170_v35 = vadd.f32 -1.0, %v6059_v43  ;;  %v2885_v2 = vmin.f32 %v8004_v32, 0.0  ;;  %6068 = vpow2.f32 %v2913_v33  ;;  %v2886_v3 = vmin.f32 %v8018_v62, 0.0 }
 0x416   :  { %vm2869_vm4 = vcmp.gt.f32.partialorder %v8004_v32, 0.0  ;;  %vm2870_vm5 = vcmp.gt.f32.partialorder %v8018_v62, 0.0 }
 0x417   :  { %5182 = vmatmul.mubr.msk.f32.gmra.mrb[152].mxu0 %vm354_vm0, %v7962_v9  ;;  %5198 = vmatmul.mubr.msk.f32.gmra.mrb[184].mxu1 %vm354_vm0, %v7962_v9  ;;  %v8022_v49 = vsel %vm2863_vm12, %v7902_v19, %v5170_v35  ;;  %v2915_v48 = vmul.f32 1.442695, %v2885_v2  ;;  %v2917_v37 = vmul.f32 1.442695, %v2886_v3 }
 0x418   :  { %3093 = vmatprep.mubr.f32.mxu0 %v8868_v38  ;;  %3254 = vmatprep.mubr.f32.mxu1 %v8868_v38  ;;  %v6061_v56 = vpop.eup %6060 }
 0x419   :  { %v5171_v28 = vadd.f32 -1.0, %v6061_v56  ;;  %v6063_v53 = vpop.eup %6062  ;;  %6070 = vpow2.f32 %v2915_v48  ;;  %v9034_v56 = vld [vmem:[#allocation50_spill] sm:$0xff]  ;;  %v9038_v48 = vld [vmem:[#allocation52_spill] sm:$0xff] }
 0x41a   :  { %v5172_v4 = vadd.f32 -1.0, %v6063_v53  ;;  %6072 = vpow2.f32 %v2917_v37  ;;  %v302_v37 = vld [vmem:[#allocation13 + $0x120] sm:$0xff] }
 0x41b   :  { %5183 = vmatmul.mubr.msk.f32.gmra.mrb[154].mxu0 %vm354_vm0, %v7977_v41  ;;  %5199 = vmatmul.mubr.msk.f32.gmra.mrb[186].mxu1 %vm354_vm0, %v7977_v41  ;;  %v8033_v19 = vsel %vm2864_vm13, %v7926_v47, %v5171_v28 }
 0x41c   :  { %3099 = vmatprep.mubr.f32.mxu0 %v8868_v38  ;;  %3260 = vmatprep.mubr.f32.mxu1 %v8868_v38  ;;  %v6065_v6 = vpop.eup %6064  ;;  %v8043_v29 = vsel %vm2865_vm14, %v7944_v12, %v5172_v4 }
 0x41d   :  { %v5173_v47 = vadd.f32 -1.0, %v6065_v6 }
 0x41e   :  { %v6067_v8 = vpop.eup %6066 }
 0x41f   :  { %5184 = vmatmul.mubr.msk.f32.gmra.mrb[156].mxu0 %vm354_vm0, %v7992_v44  ;;  %5200 = vmatmul.mubr.msk.f32.gmra.mrb[188].mxu1 %vm354_vm0, %v7992_v44  ;;  %v8053_v40 = vsel %vm2866_vm15, %v7958_v10, %v5173_v47  ;;  %v5174_v51 = vadd.f32 -1.0, %v6067_v8  ;;  %v6069_v46 = vpop.eup %6068  ;;  %v315_v10 = vld [vmem:[#allocation13 + $0x188] sm:$0xff] }
 0x420   :  { %3105 = vmatprep.mubr.f32.mxu0 %v8868_v38  ;;  %3266 = vmatprep.mubr.f32.mxu1 %v8868_v38  ;;  %v5175_v63 = vadd.f32 -1.0, %v6069_v46  ;;  %v5852_v52 = vpack.c.bf16 %v323_v45, %v315_v10  ;;  %v9039_v8 = vld [vmem:[#allocation78_spill] sm:$0xff]  ;;  %v312_v46 = vld [vmem:[#allocation13 + $0x170] sm:$0xff] }
 0x421   :  { %v8063_v20 = vsel %vm2867_vm1, %v7974_v31, %v5174_v51  ;;  %v5860_v31 = vpack.c.bf16 %v325_v1, %v317_v18  ;;  %v304_v51 = vld [vmem:[#allocation13 + $0x130] sm:$0xff]  ;;  %v9042_v10 = vld [vmem:[#allocation54_spill] sm:$0xff] }
 0x422   :  { %v8073_v60 = vsel %vm2868_vm2, %v7988_v24, %v5175_v63  ;;  %v9033_v24 = vld [vmem:[#allocation103_spill] sm:$0xff]  ;;  %v9040_v63 = vld [vmem:[#allocation53_spill] sm:$0xff] }
 0x423   :  { %5185 = vmatmul.mubr.msk.f32.gmra.mrb[158].mxu0 %vm354_vm0, %v8007_v21  ;;  %5201 = vmatmul.mubr.msk.f32.gmra.mrb[190].mxu1 %vm354_vm0, %v8007_v21  ;;  %v6071_v30 = vpop.eup %6070 }
 0x424   :  { %3111 = vmatprep.mubr.f32.mxu0 %v8868_v38  ;;  %3272 = vmatprep.mubr.f32.mxu1 %v8868_v38  ;;  %v5176_v12 = vadd.f32 -1.0, %v6071_v30  ;;  %v6073_v36 = vpop.eup %6072 }
 0x425   :  { %v5177_v23 = vadd.f32 -1.0, %v6073_v36 }
 0x426   :  { %v8083_v27 = vsel %vm2869_vm4, %v8004_v32, %v5176_v12 }
 0x427   :  { %5186 = vmatmul.mubr.msk.f32.gmra.mrb[160].mxu0 %vm354_vm0, %v8022_v49  ;;  %5202 = vmatmul.mubr.msk.f32.gmra.mrb[192].mxu1 %vm354_vm0, %v8022_v49  ;;  %v8093_v39 = vsel %vm2870_vm5, %v8018_v62, %v5177_v23  ;;  %v9035_v62 = vld [vmem:[#allocation51_spill] sm:$0xff]  ;;  %v327_v23 = vld [vmem:[#allocation13 + $0x1e8] sm:$0xff] }
 0x428   :  { %3117 = vmatprep.mubr.f32.mxu0 %v8868_v38  ;;  %3278 = vmatprep.mubr.f32.mxu1 %v8868_v38 }
 0x42b   :  { %5187 = vmatmul.mubr.msk.f32.gmra.mrb[162].mxu0 %vm354_vm0, %v8033_v19  ;;  %5203 = vmatmul.mubr.msk.f32.gmra.mrb[194].mxu1 %vm354_vm0, %v8033_v19 }
 0x42c   :  { %3123 = vmatprep.mubr.f32.mxu0 %v8868_v38  ;;  %3284 = vmatprep.mubr.f32.mxu1 %v8868_v38 }
 0x42f   :  { %5188 = vmatmul.mubr.msk.f32.gmra.mrb[164].mxu0 %vm354_vm0, %v8043_v29  ;;  %5204 = vmatmul.mubr.msk.f32.gmra.mrb[196].mxu1 %vm354_vm0, %v8043_v29 }
 0x430   :  { %3129 = vmatprep.mubr.f32.mxu0 %v8868_v38  ;;  %3290 = vmatprep.mubr.f32.mxu1 %v8868_v38 }
 0x433   :  { %5189 = vmatmul.mubr.msk.f32.gmra.mrb[166].mxu0 %vm354_vm0, %v8053_v40  ;;  %5205 = vmatmul.mubr.msk.f32.gmra.mrb[198].mxu1 %vm354_vm0, %v8053_v40 }
 0x434   :  { %3135 = vmatprep.mubr.f32.mxu0 %v8868_v38  ;;  %3296 = vmatprep.mubr.f32.mxu1 %v8868_v38 }
 0x437   :  { %5190 = vmatmul.mubr.msk.f32.gmra.mrb[168].mxu0 %vm354_vm0, %v8063_v20  ;;  %5206 = vmatmul.mubr.msk.f32.gmra.mrb[200].mxu1 %vm354_vm0, %v8063_v20 }
 0x438   :  { %3141 = vmatprep.mubr.f32.mxu0 %v8868_v38  ;;  %3302 = vmatprep.mubr.f32.mxu1 %v8868_v38 }
 0x43b   :  { %5191 = vmatmul.mubr.msk.f32.gmra.mrb[170].mxu0 %vm354_vm0, %v8073_v60  ;;  %5207 = vmatmul.mubr.msk.f32.gmra.mrb[202].mxu1 %vm354_vm0, %v8073_v60 }
 0x43c   :  { %3147 = vmatprep.mubr.f32.mxu0 %v8868_v38  ;;  %3308 = vmatprep.mubr.f32.mxu1 %v8868_v38 }
 0x43f   :  { %5192 = vmatmul.mubr.msk.f32.gmra.mrb[172].mxu0 %vm354_vm0, %v8083_v27  ;;  %5208 = vmatmul.mubr.msk.f32.gmra.mrb[204].mxu1 %vm354_vm0, %v8083_v27 }
 0x440   :  { %3153 = vmatprep.mubr.f32.mxu0 %v8868_v38  ;;  %3314 = vmatprep.mubr.f32.mxu1 %v8868_v38 }
 0x443   :  { %5193 = vmatmul.mubr.msk.f32.gmra.mrb[174].mxu0 %vm354_vm0, %v8093_v39  ;;  %5209 = vmatmul.mubr.msk.f32.gmra.mrb[206].mxu1 %vm354_vm0, %v8093_v39 }
 0x444   :  { %3385 = vmatprep.mubr.f32.mxu0 %v8868_v38  ;;  %3546 = vmatprep.mubr.f32.mxu1 %v8868_v38 }
 0x447   :  { %5210 = vmatmul.mubr.msk.f32.vlgmr.msra.gmra.mrb[176].mxu0 %vm354_vm0, %v7889_v61  ;;  %5226 = vmatmul.mubr.msk.f32.vlgmr.msra.gmra.mrb[208].mxu1 %vm354_vm0, %v7889_v61  ;;  %v5862_v61 = vpack.c.bf16 %v324_v50, %v316_v11  ;;  %v5874_v50 = vpack.c.bf16 %v312_v46, %v304_v51  ;;  %v320_v51 = vld [vmem:[#allocation13 + $0x1b0] sm:$0xff] }
 0x448   :  { %3391 = vmatprep.mubr.f32.mxu0 %v8868_v38  ;;  %3552 = vmatprep.mubr.f32.mxu1 %v8868_v38  ;;  %v328_v46 = vld [vmem:[#allocation13 + $0x1f0] sm:$0xff] }
 0x449   :  { %5851 = vmatpush1.bf16.xpose.msra.mxu0 %v9032_v13  ;;  %5859 = vmatpush1.bf16.xpose.msra.mxu1 %v5858_v58 }
 0x44a   :  { %5853 = vmatprep.subr.bf16.mxu0 %v5852_v52  ;;  %5861 = vmatprep.subr.bf16.mxu1 %v5860_v31 }
 0x44b   :  { %5211 = vmatmul.mubr.msk.f32.gmra.mrb[178].mxu0 %vm354_vm0, %v7911_v57  ;;  %5227 = vmatmul.mubr.msk.f32.gmra.mrb[210].mxu1 %vm354_vm0, %v7911_v57  ;;  %v303_v57 = vld [vmem:[#allocation13 + $0x128] sm:$0xff] }
 0x44c   :  { %3397 = vmatprep.mubr.f32.mxu0 %v8868_v38  ;;  %3558 = vmatprep.mubr.f32.mxu1 %v8868_v38 }
 0x44f   :  { %5212 = vmatmul.mubr.msk.f32.gmra.mrb[180].mxu0 %vm354_vm0, %v7932_v0  ;;  %5228 = vmatmul.mubr.msk.f32.gmra.mrb[212].mxu1 %vm354_vm0, %v7932_v0  ;;  %v311_v0 = vld [vmem:[#allocation13 + $0x168] sm:$0xff] }
 0x450   :  { %3403 = vmatprep.mubr.f32.mxu0 %v8868_v38  ;;  %3564 = vmatprep.mubr.f32.mxu1 %v8868_v38 }
 0x451   :  { %5855 = vmatpush1.bf16.xpose.msra.mxu0 %v9033_v24  ;;  %5863 = vmatpush1.bf16.xpose.msra.mxu1 %v5862_v61  ;;  %v9043_v24 = vld [vmem:[#allocation82_spill] sm:$0xff] }
 0x453   :  { %5213 = vmatmul.mubr.msk.f32.gmra.mrb[182].mxu0 %vm354_vm0, %v7947_v17  ;;  %5229 = vmatmul.mubr.msk.f32.gmra.mrb[214].mxu1 %vm354_vm0, %v7947_v17  ;;  %v5864_v17 = vpack.c.bf16 %v311_v0, %v303_v57 }
 0x454   :  { %3409 = vmatprep.mubr.f32.mxu0 %v8868_v38  ;;  %3570 = vmatprep.mubr.f32.mxu1 %v8868_v38 }
 0x455   :  { %5865 = vmatprep.subr.bf16.mxu0 %v5864_v17 }
 0x457   :  { %5214 = vmatmul.mubr.msk.f32.gmra.mrb[184].mxu0 %vm354_vm0, %v7962_v9  ;;  %5230 = vmatmul.mubr.msk.f32.gmra.mrb[216].mxu1 %vm354_vm0, %v7962_v9  ;;  %v305_v9 = vld [vmem:[#allocation13 + $0x138] sm:$0xff] }
 0x458   :  { %3415 = vmatprep.mubr.f32.mxu0 %v8868_v38  ;;  %3576 = vmatprep.mubr.f32.mxu1 %v8868_v38 }
 0x45b   :  { %5215 = vmatmul.mubr.msk.f32.gmra.mrb[186].mxu0 %vm354_vm0, %v7977_v41  ;;  %5231 = vmatmul.mubr.msk.f32.gmra.mrb[218].mxu1 %vm354_vm0, %v7977_v41  ;;  %v5872_v41 = vpack.c.bf16 %v313_v16, %v305_v9  ;;  %v9044_v16 = vld [vmem:[#allocation55_spill] sm:$0xff] }
 0x45c   :  { %3421 = vmatprep.mubr.f32.mxu0 %v8868_v38  ;;  %3582 = vmatprep.mubr.f32.mxu1 %v8868_v38 }
 0x45d   :  { %5873 = vmatprep.subr.bf16.mxu1 %v5872_v41 }
 0x45f   :  { %5216 = vmatmul.mubr.msk.f32.gmra.mrb[188].mxu0 %vm354_vm0, %v7992_v44  ;;  %5232 = vmatmul.mubr.msk.f32.gmra.mrb[220].mxu1 %vm354_vm0, %v7992_v44  ;;  %v8198_v44 = vsub.s32 0, %v6734_v22 }
 0x460   :  { %3427 = vmatprep.mubr.f32.mxu0 %v8868_v38  ;;  %3588 = vmatprep.mubr.f32.mxu1 %v8868_v38 }
 0x461   :  { %v8201_v43 = vrot.slane %v6115_v7, %v8198_v44  ;;  %v8205_v34 = vrot.slane %v7818_v26, %v8198_v44  ;;  %v8208_v32 = vrot.slane %v6116_v25, %v8198_v44  ;;  %v9037_v26 = vld [vmem:[#allocation75_spill] sm:$0xff] }
 0x462   :  { %v9045_v25 = vld [vmem:[#allocation83_spill] sm:$0xff] }
 0x463   :  { %5217 = vmatmul.mubr.msk.f32.gmra.mrb[190].mxu0 %vm354_vm0, %v8007_v21  ;;  %5233 = vmatmul.mubr.msk.f32.gmra.mrb[222].mxu1 %vm354_vm0, %v8007_v21  ;;  %v6117_v21 = vld [vmem:[#allocation14 + $0x8] sm:$0xff]  ;;  %v1472_v33 = vadd.f32 %v9034_v56, %v8201_v43  ;;  %v1474_v2 = vadd.f32 %v9035_v62, %v8205_v34  ;;  %v1480_v30 = vadd.f32 %v9040_v63, %v8205_v34  ;;  %v9046_v62 = vld [vmem:[#allocation56_spill] sm:$0xff] }
 0x464   :  { %3433 = vmatprep.mubr.f32.mxu0 %v8868_v38  ;;  %3594 = vmatprep.mubr.f32.mxu1 %v8868_v38  ;;  %v8211_v35 = vrot.slane %v6117_v21, %v8198_v44  ;;  %v1484_v45 = vadd.f32 %v9042_v10, %v8201_v43  ;;  %v1323_v57 = vadd.f32 %v9043_v24, %v8208_v32 }
 0x465   :  { %v1890_v3 = vand.u32 2147483647, %v1472_v33  ;;  %v1891_v4 = vand.u32 2147483647, %v1474_v2  ;;  %v1899_v9 = vand.u32 2147483647, %v1480_v30  ;;  %v1486_v41 = vadd.f32 %v9044_v16, %v8205_v34 }
 0x466   :  { %v1313_v53 = vadd.f32 %v9037_v26, %v8211_v35  ;;  %v1325_v21 = vadd.f32 %v9045_v25, %v8211_v35  ;;  %v1490_v2 = vadd.f32 %v9046_v62, %v8201_v43  ;;  %v9049_v30 = vld [vmem:[#allocation88_spill] sm:$0xff] }
 0x467   :  { %5218 = vmatmul.mubr.msk.f32.gmra.mrb[192].mxu0 %vm354_vm0, %v8022_v49  ;;  %5234 = vmatmul.mubr.msk.f32.gmra.mrb[224].mxu1 %vm354_vm0, %v8022_v49  ;;  %v9036_v49 = vld [vmem:[#allocation74_spill] sm:$0xff] }
 0x468   :  { %3439 = vmatprep.mubr.f32.mxu0 %v8868_v38  ;;  %3600 = vmatprep.mubr.f32.mxu1 %v8868_v38  ;;  %v1311_v28 = vadd.f32 %v9036_v49, %v8208_v32  ;;  %v1889_v47 = vand.u32 2147483647, %v1313_v53  ;;  %v1905_v63 = vand.u32 2147483647, %v1325_v21 }
 0x46a   :  { %v1888_v6 = vand.u32 2147483647, %v1311_v28 }
 0x46b   :  { %5219 = vmatmul.mubr.msk.f32.gmra.mrb[194].mxu0 %vm354_vm0, %v8033_v19  ;;  %5235 = vmatmul.mubr.msk.f32.gmra.mrb[226].mxu1 %vm354_vm0, %v8033_v19  ;;  %v1478_v19 = vadd.f32 %v9038_v48, %v8201_v43 }
 0x46c   :  { %3445 = vmatprep.mubr.f32.mxu0 %v8868_v38  ;;  %3606 = vmatprep.mubr.f32.mxu1 %v8868_v38 }
 0x46d   :  { %v1898_v5 = vand.u32 2147483647, %v1478_v19 }
 0x46f   :  { %5220 = vmatmul.mubr.msk.f32.gmra.mrb[196].mxu0 %vm354_vm0, %v8043_v29  ;;  %5236 = vmatmul.mubr.msk.f32.gmra.mrb[228].mxu1 %vm354_vm0, %v8043_v29  ;;  %v310_v29 = vld [vmem:[#allocation13 + $0x160] sm:$0xff] }
 0x470   :  { %3451 = vmatprep.mubr.f32.mxu0 %v8868_v38  ;;  %3612 = vmatprep.mubr.f32.mxu1 %v8868_v38  ;;  %v5866_v11 = vpack.c.bf16 %v310_v29, %v302_v37  ;;  %v1904_v29 = vand.u32 2147483647, %v1323_v57 }
 0x473   :  { %5221 = vmatmul.mubr.msk.f32.gmra.mrb[198].mxu0 %vm354_vm0, %v8053_v40  ;;  %5237 = vmatmul.mubr.msk.f32.gmra.mrb[230].mxu1 %vm354_vm0, %v8053_v40  ;;  %v1317_v40 = vadd.f32 %v9039_v8, %v8208_v32 }
 0x474   :  { %3457 = vmatprep.mubr.f32.mxu0 %v8868_v38  ;;  %3618 = vmatprep.mubr.f32.mxu1 %v8868_v38 }
 0x475   :  { %v1896_v61 = vand.u32 2147483647, %v1317_v40  ;;  %v326_v40 = vld [vmem:[#allocation13 + $0x1e0] sm:$0xff] }
 0x477   :  { %5222 = vmatmul.mubr.msk.f32.gmra.mrb[200].mxu0 %vm354_vm0, %v8063_v20  ;;  %5238 = vmatmul.mubr.msk.f32.gmra.mrb[232].mxu1 %vm354_vm0, %v8063_v20  ;;  %v319_v20 = vld [vmem:[#allocation13 + $0x1a8] sm:$0xff] }
 0x478   :  { %3463 = vmatprep.mubr.f32.mxu0 %v8868_v38  ;;  %3624 = vmatprep.mubr.f32.mxu1 %v8868_v38  ;;  %v5868_v0 = vpack.c.bf16 %v327_v23, %v319_v20  ;;  %v1907_v20 = vand.u32 2147483647, %v1486_v41 }
 0x47b   :  { %5223 = vmatmul.mubr.msk.f32.gmra.mrb[202].mxu0 %vm354_vm0, %v8073_v60  ;;  %5239 = vmatmul.mubr.msk.f32.gmra.mrb[234].mxu1 %vm354_vm0, %v8073_v60  ;;  %v9041_v60 = vld [vmem:[#allocation79_spill] sm:$0xff] }
 0x47c   :  { %3469 = vmatprep.mubr.f32.mxu0 %v8868_v38  ;;  %3630 = vmatprep.mubr.f32.mxu1 %v8868_v38  ;;  %v1319_v12 = vadd.f32 %v9041_v60, %v8211_v35  ;;  %v1331_v60 = vadd.f32 %v9049_v30, %v8211_v35 }
 0x47e   :  { %v1897_v7 = vand.u32 2147483647, %v1319_v12  ;;  %v1913_v57 = vand.u32 2147483647, %v1331_v60 }
 0x47f   :  { %5224 = vmatmul.mubr.msk.f32.gmra.mrb[204].mxu0 %vm354_vm0, %v8083_v27  ;;  %5240 = vmatmul.mubr.msk.f32.gmra.mrb[236].mxu1 %vm354_vm0, %v8083_v27 }
 0x480   :  { %3475 = vmatprep.mubr.f32.mxu0 %v8868_v38  ;;  %3636 = vmatprep.mubr.f32.mxu1 %v8868_v38 }
 0x483   :  { %5225 = vmatmul.mubr.msk.f32.gmra.mrb[206].mxu0 %vm354_vm0, %v8093_v39  ;;  %5241 = vmatmul.mubr.msk.f32.gmra.mrb[238].mxu1 %vm354_vm0, %v8093_v39  ;;  %v321_v39 = vld [vmem:[#allocation13 + $0x1b8] sm:$0xff] }
 0x484   :  { %v5876_v17 = vpack.c.bf16 %v329_v42, %v321_v39 }
 0x4da   :  { %v3065_v36 = vpop.f32.mrb[144].mxu0  ;;  %v3226_v27 = vpop.f32.mrb[176].mxu1 }
 0x4db   :  { %v3643_v18 = vmul.f32 %v3065_v36, %v1888_v6  ;;  %v3645_v1 = vmul.f32 %v3226_v27, %v1890_v3  ;;  %v3067_v58 = vpop.f32.mrb[145].mxu0  ;;  %v3228_v52 = vpop.f32.mrb[177].mxu1  ;;  %v1906_v3 = vand.u32 2147483647, %v1484_v45  ;;  %v9047_v6 = vld [vmem:[#allocation57_spill] sm:$0xff] }
 0x4dc   :  { %v3644_v31 = vmul.f32 %v3067_v58, %v1889_v47  ;;  %v3646_v13 = vmul.f32 %v3228_v52, %v1891_v4  ;;  %v318_v4 = vld [vmem:[#allocation13 + $0x1a0] sm:$0xff]  ;;  %v1492_v37 = vadd.f32 %v9047_v6, %v8205_v34  ;;  %v9048_v47 = vld [vmem:[#allocation87_spill] sm:$0xff]  ;;  %v1914_v27 = vand.u32 2147483647, %v1490_v2  ;;  %v9050_v52 = vld [vmem:[#allocation58_spill] sm:$0xff] }
 0x4dd   :  { %v1329_v8 = vadd.f32 %v9048_v47, %v8208_v32  ;;  %v9054_v2 = vld [vmem:[#allocation60_spill] sm:$0xff] }
 0x4de   :  { %v3071_v56 = vpop.f32.mrb[146].mxu0  ;;  %v3232_v33 = vpop.f32.mrb[178].mxu1  ;;  %3835 = vmatprep.mubr.f32.mxu0 %v3644_v31  ;;  %3980 = vmatprep.mubr.f32.mxu1 %v3646_v13  ;;  %v1915_v58 = vand.u32 2147483647, %v1492_v37  ;;  %v1496_v31 = vadd.f32 %v9050_v52, %v8201_v43  ;;  %v9057_v37 = vld [vmem:[#allocation96_spill] sm:$0xff] }
 0x4df   :  { %v3651_v49 = vmul.f32 %v3071_v56, %v1896_v61  ;;  %v3653_v28 = vmul.f32 %v3232_v33, %v1898_v5  ;;  %v3073_v26 = vpop.f32.mrb[147].mxu0  ;;  %v3234_v53 = vpop.f32.mrb[179].mxu1  ;;  %3836 = vmatmul.mubr.f32.vlgmr.msra.gmra.mrb[208].mxu0 %v3643_v18  ;;  %3981 = vmatmul.mubr.f32.vlgmr.msra.gmra.mrb[240].mxu1 %v3645_v1  ;;  %v5870_v18 = vpack.c.bf16 %v326_v40, %v318_v4  ;;  %v1912_v13 = vand.u32 2147483647, %v1329_v8  ;;  %v9052_v61 = vld [vmem:[#allocation59_spill] sm:$0xff] }
 0x4e0   :  { %v3652_v48 = vmul.f32 %v3073_v26, %v1897_v7  ;;  %v3654_v19 = vmul.f32 %v3234_v53, %v1899_v9  ;;  %5867 = vmatpush1.bf16.xpose.msra.mxu0 %v5866_v11  ;;  %5875 = vmatpush1.bf16.xpose.msra.mxu1 %v5874_v50  ;;  %v5878_v1 = vpack.c.bf16 %v328_v46, %v320_v51  ;;  %v9051_v11 = vld [vmem:[#allocation91_spill] sm:$0xff]  ;;  %v1922_v62 = vand.u32 2147483647, %v1496_v31 }
 0x4e1   :  { %5869 = vmatprep.subr.bf16.mxu0 %v5868_v0  ;;  %5877 = vmatprep.subr.bf16.mxu1 %v5876_v17  ;;  %v1335_v50 = vadd.f32 %v9051_v11, %v8208_v32  ;;  %v1498_v24 = vadd.f32 %v9052_v61, %v8205_v34  ;;  %v9053_v0 = vld [vmem:[#allocation92_spill] sm:$0xff]  ;;  %v9055_v26 = vld [vmem:[#allocation95_spill] sm:$0xff] }
 0x4e2   :  { %v3077_v12 = vpop.f32.mrb[148].mxu0  ;;  %v3238_v36 = vpop.f32.mrb[180].mxu1  ;;  %3840 = vmatprep.mubr.f32.mxu0 %v3652_v48  ;;  %3985 = vmatprep.mubr.f32.mxu1 %v3654_v19  ;;  %v1337_v17 = vadd.f32 %v9053_v0, %v8211_v35  ;;  %v1341_v53 = vadd.f32 %v9055_v26, %v8208_v32  ;;  %v9056_v19 = vld [vmem:[#allocation61_spill] sm:$0xff]  ;;  %v9062_v0 = vld [vmem:[#allocation64_spill] sm:$0xff] }
 0x4e3   :  { %v3659_v23 = vmul.f32 %v3077_v12, %v1904_v29  ;;  %v3661_v39 = vmul.f32 %v3238_v36, %v1906_v3  ;;  %v3079_v42 = vpop.f32.mrb[149].mxu0  ;;  %v3240_v5 = vpop.f32.mrb[181].mxu1  ;;  %3841 = vmatmul.mubr.f32.gmra.mrb[210].mxu0 %v3651_v49  ;;  %3986 = vmatmul.mubr.f32.gmra.mrb[242].mxu1 %v3653_v28  ;;  %v1502_v49 = vadd.f32 %v9054_v2, %v8201_v43  ;;  %v1920_v28 = vand.u32 2147483647, %v1335_v50  ;;  %v9058_v12 = vld [vmem:[#allocation62_spill] sm:$0xff] }
 0x4e4   :  { %v3660_v10 = vmul.f32 %v3079_v42, %v1905_v63  ;;  %v3662_v45 = vmul.f32 %v3240_v5, %v1907_v20  ;;  %v6356_v3 = vmov 0.0|0.0   ;;  %v1923_v48 = vand.u32 2147483647, %v1498_v24  ;;  %v9060_v5 = vld [vmem:[#allocation63_spill] sm:$0xff] }
 0x4e5   :  { %v1504_v4 = vadd.f32 %v9056_v19, %v8205_v34  ;;  %v1921_v6 = vand.u32 2147483647, %v1337_v17  ;;  %v1343_v29 = vadd.f32 %v9057_v37, %v8211_v35  ;;  %v1930_v60 = vand.u32 2147483647, %v1502_v49  ;;  %v9066_v37 = vld [vmem:[#allocation66_spill] sm:$0xff] }
 0x4e6   :  { %v3083_v9 = vpop.f32.mrb[150].mxu0  ;;  %v3244_v16 = vpop.f32.mrb[182].mxu1  ;;  %3845 = vmatprep.mubr.f32.mxu0 %v3660_v10  ;;  %3990 = vmatprep.mubr.f32.mxu1 %v3662_v45  ;;  %v1508_v36 = vadd.f32 %v9058_v12, %v8201_v43  ;;  %v1510_v10 = vadd.f32 %v9060_v5, %v8205_v34  ;;  %v1514_v17 = vadd.f32 %v9062_v0, %v8201_v43 }
 0x4e7   :  { %v3667_v41 = vmul.f32 %v3083_v9, %v1912_v13  ;;  %v3669_v7 = vmul.f32 %v3244_v16, %v1914_v27  ;;  %v3085_v25 = vpop.f32.mrb[151].mxu0  ;;  %v3246_v21 = vpop.f32.mrb[183].mxu1  ;;  %3846 = vmatmul.mubr.f32.gmra.mrb[212].mxu0 %v3659_v23  ;;  %3991 = vmatmul.mubr.f32.gmra.mrb[244].mxu1 %v3661_v39  ;;  %v1928_v27 = vand.u32 2147483647, %v1341_v53  ;;  %v9059_v23 = vld [vmem:[#allocation99_spill] sm:$0xff]  ;;  %v9063_v16 = vld [vmem:[#allocation104_spill] sm:$0xff] }
 0x4e8   :  { %v3668_v56 = vmul.f32 %v3085_v25, %v1913_v57  ;;  %v3670_v33 = vmul.f32 %v3246_v21, %v1915_v58  ;;  %5871 = vmatpush1.bf16.xpose.msra.mxu0 %v5870_v18  ;;  %5879 = vmatpush1.bf16.xpose.msra.mxu1 %v5878_v1  ;;  %v1347_v39 = vadd.f32 %v9059_v23, %v8208_v32  ;;  %v1931_v42 = vand.u32 2147483647, %v1504_v4  ;;  %v9061_v18 = vld [vmem:[#allocation100_spill] sm:$0xff]  ;;  %v9064_v25 = vld [vmem:[#allocation65_spill] sm:$0xff] }
 0x4e9   :  { %5880 = vmatprep.subr.bf16.mxu0 %v6356_v3  ;;  %5912 = vmatprep.subr.bf16.mxu1 %v6356_v3  ;;  %v1929_v45 = vand.u32 2147483647, %v1343_v29  ;;  %v1349_v1 = vadd.f32 %v9061_v18, %v8211_v35  ;;  %v1938_v57 = vand.u32 2147483647, %v1508_v36  ;;  %v1516_v21 = vadd.f32 %v9064_v25, %v8205_v34  ;;  %v9070_v18 = vld [vmem:[#allocation68_spill] sm:$0xff] }
 0x4ea   :  { %v3089_v47 = vpop.f32.mrb[152].mxu0  ;;  %v3250_v8 = vpop.f32.mrb[184].mxu1  ;;  %3850 = vmatprep.mubr.f32.mxu0 %v3668_v56  ;;  %3995 = vmatprep.mubr.f32.mxu1 %v3670_v33  ;;  %v1936_v9 = vand.u32 2147483647, %v1347_v39  ;;  %v9065_v33 = vld [vmem:[#allocation105_spill] sm:$0xff]  ;;  %v1520_v29 = vadd.f32 %v9066_v37, %v8201_v43 }
 0x4eb   :  { %v3675_v40 = vmul.f32 %v3089_v47, %v1920_v28  ;;  %v3677_v51 = vmul.f32 %v3250_v8, %v1922_v62  ;;  %v3091_v46 = vpop.f32.mrb[153].mxu0  ;;  %v3252_v20 = vpop.f32.mrb[185].mxu1  ;;  %3851 = vmatmul.mubr.f32.gmra.mrb[214].mxu0 %v3667_v41  ;;  %3996 = vmatmul.mubr.f32.gmra.mrb[246].mxu1 %v3669_v7  ;;  %v1353_v41 = vadd.f32 %v9063_v16, %v8208_v32  ;;  %v1939_v7 = vand.u32 2147483647, %v1510_v10  ;;  %v9067_v8 = vld [vmem:[#allocation108_spill] sm:$0xff] }
 0x4ec   :  { %v3676_v63 = vmul.f32 %v3091_v46, %v1921_v6  ;;  %v3678_v30 = vmul.f32 %v3252_v20, %v1923_v48  ;;  %v1937_v56 = vand.u32 2147483647, %v1349_v1  ;;  %v1355_v62 = vadd.f32 %v9065_v33, %v8211_v35  ;;  %v9068_v46 = vld [vmem:[#allocation67_spill] sm:$0xff]  ;;  %v9074_v33 = vld [vmem:[#allocation70_spill] sm:$0xff] }
 0x4ed   :  { %v1946_v6 = vand.u32 2147483647, %v1514_v17  ;;  %v1944_v47 = vand.u32 2147483647, %v1353_v41  ;;  %v1522_v20 = vadd.f32 %v9068_v46, %v8205_v34  ;;  %v1526_v1 = vadd.f32 %v9070_v18, %v8201_v43 }
 0x4ee   :  { %v3095_v58 = vpop.f32.mrb[154].mxu0  ;;  %v3256_v52 = vpop.f32.mrb[186].mxu1  ;;  %3855 = vmatprep.mubr.f32.mxu0 %v3676_v63  ;;  %4000 = vmatprep.mubr.f32.mxu1 %v3678_v30  ;;  %v1945_v63 = vand.u32 2147483647, %v1355_v62  ;;  %v9069_v30 = vld [vmem:[#allocation109_spill] sm:$0xff]  ;;  %v1532_v62 = vadd.f32 %v9074_v33, %v8201_v43 }
 0x4ef   :  { %v3683_v31 = vmul.f32 %v3095_v58, %v1928_v27  ;;  %v3685_v13 = vmul.f32 %v3256_v52, %v1930_v60  ;;  %v3097_v11 = vpop.f32.mrb[155].mxu0  ;;  %v3258_v50 = vpop.f32.mrb[187].mxu1  ;;  %3856 = vmatmul.mubr.f32.gmra.mrb[216].mxu0 %v3675_v40  ;;  %4001 = vmatmul.mubr.f32.gmra.mrb[248].mxu1 %v3677_v51  ;;  %v1359_v40 = vadd.f32 %v9067_v8, %v8208_v32  ;;  %v1947_v51 = vand.u32 2147483647, %v1516_v21  ;;  %v9071_v52 = vld [vmem:[#allocation112_spill] sm:$0xff] }
 0x4f0   :  { %v3684_v61 = vmul.f32 %v3097_v11, %v1929_v45  ;;  %v3686_v24 = vmul.f32 %v3258_v50, %v1931_v42  ;;  %v1361_v60 = vadd.f32 %v9069_v30, %v8211_v35  ;;  %v1954_v45 = vand.u32 2147483647, %v1520_v29  ;;  %v9072_v11 = vld [vmem:[#allocation69_spill] sm:$0xff]  ;;  %v9078_v30 = vld [vmem:[#allocation72_spill] sm:$0xff] }
 0x4f1   :  { %v1952_v58 = vand.u32 2147483647, %v1359_v40  ;;  %v1528_v50 = vadd.f32 %v9072_v11, %v8205_v34 }
 0x4f2   :  { %v3101_v2 = vpop.f32.mrb[156].mxu0  ;;  %v3262_v49 = vpop.f32.mrb[188].mxu1  ;;  %3860 = vmatprep.mubr.f32.mxu0 %v3684_v61  ;;  %4005 = vmatprep.mubr.f32.mxu1 %v3686_v24  ;;  %v1953_v61 = vand.u32 2147483647, %v1361_v60  ;;  %v9073_v24 = vld [vmem:[#allocation113_spill] sm:$0xff]  ;;  %v1538_v60 = vadd.f32 %v9078_v30, %v8201_v43 }
 0x4f3   :  { %v3691_v28 = vmul.f32 %v3101_v2, %v1936_v9  ;;  %v3693_v26 = vmul.f32 %v3262_v49, %v1938_v57  ;;  %v3103_v53 = vpop.f32.mrb[157].mxu0  ;;  %v3264_v48 = vpop.f32.mrb[189].mxu1  ;;  %3861 = vmatmul.mubr.f32.gmra.mrb[218].mxu0 %v3683_v31  ;;  %4006 = vmatmul.mubr.f32.gmra.mrb[250].mxu1 %v3685_v13  ;;  %v1365_v31 = vadd.f32 %v9071_v52, %v8208_v32  ;;  %v1955_v13 = vand.u32 2147483647, %v1522_v20  ;;  %v9075_v49 = vld [vmem:[#allocation116_spill] sm:$0xff] }
 0x4f4   :  { %v3692_v19 = vmul.f32 %v3103_v53, %v1937_v56  ;;  %v3694_v4 = vmul.f32 %v3264_v48, %v1939_v7  ;;  %v1367_v57 = vadd.f32 %v9073_v24, %v8211_v35  ;;  %v1962_v56 = vand.u32 2147483647, %v1526_v1  ;;  %v9076_v53 = vld [vmem:[#allocation71_spill] sm:$0xff]  ;;  %v9082_v24 = vld [vmem:[#allocation76_spill] sm:$0xff] }
 0x4f5   :  { %v1960_v2 = vand.u32 2147483647, %v1365_v31  ;;  %v1534_v48 = vadd.f32 %v9076_v53, %v8205_v34 }
 0x4f6   :  { %v3107_v12 = vpop.f32.mrb[158].mxu0  ;;  %v3268_v36 = vpop.f32.mrb[190].mxu1  ;;  %3865 = vmatprep.mubr.f32.mxu0 %v3692_v19  ;;  %4010 = vmatprep.mubr.f32.mxu1 %v3694_v4  ;;  %v1961_v19 = vand.u32 2147483647, %v1367_v57  ;;  %v9077_v4 = vld [vmem:[#allocation117_spill] sm:$0xff]  ;;  %v1544_v57 = vadd.f32 %v9082_v24, %v8201_v43 }
 0x4f7   :  { %v3699_v27 = vmul.f32 %v3107_v12, %v1944_v47  ;;  %v3701_v23 = vmul.f32 %v3268_v36, %v1946_v6  ;;  %v3109_v39 = vpop.f32.mrb[159].mxu0  ;;  %v3270_v42 = vpop.f32.mrb[191].mxu1  ;;  %3866 = vmatmul.mubr.f32.gmra.mrb[220].mxu0 %v3691_v28  ;;  %4011 = vmatmul.mubr.f32.gmra.mrb[252].mxu1 %v3693_v26  ;;  %v1371_v28 = vadd.f32 %v9075_v49, %v8208_v32  ;;  %v1963_v26 = vand.u32 2147483647, %v1528_v50  ;;  %v9079_v36 = vld [vmem:[#allocation120_spill] sm:$0xff] }
 0x4f8   :  { %v3700_v5 = vmul.f32 %v3109_v39, %v1945_v63  ;;  %v3702_v10 = vmul.f32 %v3270_v42, %v1947_v51  ;;  %v1373_v6 = vadd.f32 %v9077_v4, %v8211_v35  ;;  %v1970_v63 = vand.u32 2147483647, %v1532_v62  ;;  %v9080_v39 = vld [vmem:[#allocation73_spill] sm:$0xff]  ;;  %v9086_v4 = vld [vmem:[#allocation80_spill] sm:$0xff] }
 0x4f9   :  { %v1968_v12 = vand.u32 2147483647, %v1371_v28  ;;  %v1540_v42 = vadd.f32 %v9080_v39, %v8205_v34 }
 0x4fa   :  { %v3113_v0 = vpop.f32.mrb[160].mxu0  ;;  %v3274_v17 = vpop.f32.mrb[192].mxu1  ;;  %3870 = vmatprep.mubr.f32.mxu0 %v3700_v5  ;;  %4015 = vmatprep.mubr.f32.mxu1 %v3702_v10  ;;  %v1969_v5 = vand.u32 2147483647, %v1373_v6  ;;  %v9081_v10 = vld [vmem:[#allocation121_spill] sm:$0xff]  ;;  %v1550_v6 = vadd.f32 %v9086_v4, %v8201_v43  ;;  %v9095_v4 = vld [vmem:[#allocation136_spill] sm:$0xff] }
 0x4fb   :  { %v3707_v9 = vmul.f32 %v3113_v0, %v1952_v58  ;;  %v3709_v16 = vmul.f32 %v3274_v17, %v1954_v45  ;;  %v3115_v41 = vpop.f32.mrb[161].mxu0  ;;  %v3276_v7 = vpop.f32.mrb[193].mxu1  ;;  %3871 = vmatmul.mubr.f32.gmra.mrb[222].mxu0 %v3699_v27  ;;  %4016 = vmatmul.mubr.f32.gmra.mrb[254].mxu1 %v3701_v23  ;;  %v1377_v27 = vadd.f32 %v9079_v36, %v8208_v32  ;;  %v1971_v23 = vand.u32 2147483647, %v1534_v48  ;;  %v9083_v17 = vld [vmem:[#allocation124_spill] sm:$0xff] }
 0x4fc   :  { %v3708_v25 = vmul.f32 %v3115_v41, %v1953_v61  ;;  %v3710_v21 = vmul.f32 %v3276_v7, %v1955_v13  ;;  %v1379_v45 = vadd.f32 %v9081_v10, %v8211_v35  ;;  %v1978_v61 = vand.u32 2147483647, %v1538_v60  ;;  %v9084_v41 = vld [vmem:[#allocation77_spill] sm:$0xff] }
 0x4fd   :  { %v1976_v0 = vand.u32 2147483647, %v1377_v27  ;;  %v1546_v7 = vadd.f32 %v9084_v41, %v8205_v34 }
 0x4fe   :  { %v3119_v37 = vpop.f32.mrb[162].mxu0  ;;  %v3280_v29 = vpop.f32.mrb[194].mxu1  ;;  %3875 = vmatprep.mubr.f32.mxu0 %v3708_v25  ;;  %4020 = vmatprep.mubr.f32.mxu1 %v3710_v21  ;;  %v1977_v25 = vand.u32 2147483647, %v1379_v45  ;;  %v9085_v21 = vld [vmem:[#allocation125_spill] sm:$0xff] }
 0x4ff   :  { %v3715_v47 = vmul.f32 %v3119_v37, %v1960_v2  ;;  %v3717_v8 = vmul.f32 %v3280_v29, %v1962_v56  ;;  %v3121_v40 = vpop.f32.mrb[163].mxu0  ;;  %v3282_v51 = vpop.f32.mrb[195].mxu1  ;;  %3876 = vmatmul.mubr.f32.gmra.mrb[224].mxu0 %v3707_v9  ;;  %4021 = vmatmul.mubr.f32.gmra.mrb[0].mxu1 %v3709_v16  ;;  %v1383_v9 = vadd.f32 %v9083_v17, %v8208_v32  ;;  %v1979_v16 = vand.u32 2147483647, %v1540_v42  ;;  %v157_v37 = vld [vmem:[#allocation14 + $0x30] sm:$0xff] }
 0x500   :  { %v3716_v46 = vmul.f32 %v3121_v40, %v1961_v19  ;;  %v3718_v20 = vmul.f32 %v3282_v51, %v1963_v26  ;;  %v1385_v56 = vadd.f32 %v9085_v21, %v8211_v35  ;;  %v1986_v19 = vand.u32 2147483647, %v1544_v57  ;;  %v9088_v51 = vld [vmem:[#allocation81_spill] sm:$0xff] }
 0x501   :  { %v1984_v29 = vand.u32 2147483647, %v1383_v9  ;;  %v1987_v40 = vand.u32 2147483647, %v1546_v7  ;;  %v8328_v42 = vrot.slane %v157_v37, %v8198_v44 }
 0x502   :  { %v3125_v18 = vpop.f32.mrb[164].mxu0  ;;  %v3286_v1 = vpop.f32.mrb[196].mxu1  ;;  %3880 = vmatprep.mubr.f32.mxu0 %v3716_v46  ;;  %4025 = vmatprep.mubr.f32.mxu1 %v3718_v20  ;;  %v1552_v46 = vadd.f32 %v9088_v51, %v8205_v34  ;;  %v1985_v20 = vand.u32 2147483647, %v1385_v56 }
 0x503   :  { %v3723_v58 = vmul.f32 %v3125_v18, %v1968_v12  ;;  %v3725_v52 = vmul.f32 %v3286_v1, %v1970_v63  ;;  %v3127_v31 = vpop.f32.mrb[165].mxu0  ;;  %v3288_v13 = vpop.f32.mrb[197].mxu1  ;;  %3881 = vmatmul.mubr.f32.gmra.mrb[226].mxu0 %v3715_v47  ;;  %4026 = vmatmul.mubr.f32.gmra.mrb[2].mxu1 %v3717_v8  ;;  %v9087_v47 = vld [vmem:[#allocation128_spill] sm:$0xff]  ;;  %v9089_v63 = vld [vmem:[#allocation129_spill] sm:$0xff]  ;;  %v1994_v1 = vand.u32 2147483647, %v1550_v6  ;;  %v1401_v6 = vadd.f32 %v9095_v4, %v8208_v32 }
 0x504   :  { %v3724_v11 = vmul.f32 %v3127_v31, %v1969_v5  ;;  %v3726_v50 = vmul.f32 %v3288_v13, %v1971_v23  ;;  %v1389_v8 = vadd.f32 %v9087_v47, %v8208_v32  ;;  %v1391_v30 = vadd.f32 %v9089_v63, %v8211_v35  ;;  %v158_v5 = vld [vmem:[#allocation14 + $0x38] sm:$0xff]  ;;  %v8330_v18 = vld [vmem:[#allocation14 + $0x20] sm:$0xff] }
 0x505   :  { %v9091_v13 = vld [vmem:[#allocation132_spill] sm:$0xff]  ;;  %v8341_v41 = vrot.slane %v158_v5, %v8198_v44  ;;  %v9100_v5 = vld [vmem:[#allocation94_spill] sm:$0xff] }
 0x506   :  { %v3131_v33 = vpop.f32.mrb[166].mxu0  ;;  %v3292_v62 = vpop.f32.mrb[198].mxu1  ;;  %3885 = vmatprep.mubr.f32.mxu0 %v3724_v11  ;;  %4030 = vmatprep.mubr.f32.mxu1 %v3726_v50  ;;  %v1992_v31 = vand.u32 2147483647, %v1389_v8  ;;  %v1395_v11 = vadd.f32 %v9091_v13, %v8208_v32  ;;  %v1995_v50 = vand.u32 2147483647, %v1552_v46 }
 0x507   :  { %v3731_v2 = vmul.f32 %v3131_v33, %v1976_v0  ;;  %v3733_v49 = vmul.f32 %v3292_v62, %v1978_v61  ;;  %v3133_v28 = vpop.f32.mrb[167].mxu0  ;;  %v3294_v26 = vpop.f32.mrb[199].mxu1  ;;  %3886 = vmatmul.mubr.f32.gmra.mrb[228].mxu0 %v3723_v58  ;;  %4031 = vmatmul.mubr.f32.gmra.mrb[4].mxu1 %v3725_v52  ;;  %v9090_v58 = vld [vmem:[#allocation84_spill] sm:$0xff]  ;;  %v9092_v61 = vld [vmem:[#allocation85_spill] sm:$0xff]  ;;  %v1993_v57 = vand.u32 2147483647, %v1391_v30  ;;  %v8345_v33 = vrot.slane %v8330_v18, %v8198_v44 }
 0x508   :  { %v3732_v53 = vmul.f32 %v3133_v28, %v1977_v25  ;;  %v3734_v48 = vmul.f32 %v3294_v26, %v1979_v16  ;;  %v1556_v52 = vadd.f32 %v9090_v58, %v8201_v43  ;;  %v1558_v24 = vadd.f32 %v9092_v61, %v8205_v34  ;;  %v9093_v0 = vld [vmem:[#allocation133_spill] sm:$0xff]  ;;  %v6118_v62 = vld [vmem:[#allocation14 + $0x28] sm:$0xff] }
 0x509   :  { %v1397_v17 = vadd.f32 %v9093_v0, %v8211_v35 }
 0x50a   :  { %v3137_v60 = vpop.f32.mrb[168].mxu0  ;;  %v3298_v12 = vpop.f32.mrb[200].mxu1  ;;  %3890 = vmatprep.mubr.f32.mxu0 %v3732_v53  ;;  %4035 = vmatprep.mubr.f32.mxu1 %v3734_v48  ;;  %v2002_v26 = vand.u32 2147483647, %v1556_v52  ;;  %v9094_v53 = vld [vmem:[#allocation89_spill] sm:$0xff] }
 0x50b   :  { %v3739_v36 = vmul.f32 %v3137_v60, %v1984_v29  ;;  %v3741_v27 = vmul.f32 %v3298_v12, %v1986_v19  ;;  %v3139_v23 = vpop.f32.mrb[169].mxu0  ;;  %v3300_v39 = vpop.f32.mrb[201].mxu1  ;;  %3891 = vmatmul.mubr.f32.gmra.mrb[230].mxu0 %v3731_v2  ;;  %4036 = vmatmul.mubr.f32.gmra.mrb[6].mxu1 %v3733_v49  ;;  %v8348_v2 = vrot.slane %v6118_v62, %v8198_v44  ;;  %v2000_v19 = vand.u32 2147483647, %v1395_v11  ;;  %v9096_v29 = vld [vmem:[#allocation90_spill] sm:$0xff] }
 0x50c   :  { %v3740_v10 = vmul.f32 %v3139_v23, %v1985_v20  ;;  %v3742_v45 = vmul.f32 %v3300_v39, %v1987_v40  ;;  %v1562_v48 = vadd.f32 %v9094_v53, %v8201_v43  ;;  %v2003_v37 = vand.u32 2147483647, %v1558_v24  ;;  %v9097_v40 = vld [vmem:[#allocation137_spill] sm:$0xff]  ;;  %v9099_v23 = vld [vmem:[#allocation140_spill] sm:$0xff] }
 0x50d   :  { %v1564_v47 = vadd.f32 %v9096_v29, %v8205_v34  ;;  %v2001_v8 = vand.u32 2147483647, %v1397_v17  ;;  %v1403_v51 = vadd.f32 %v9097_v40, %v8211_v35  ;;  %v1633_v35 = vadd.f32 %v9099_v23, %v8345_v33  ;;  %v9102_v17 = vld [vmem:[#allocation97_spill] sm:$0xff] }
 0x50e   :  { %v3143_v9 = vpop.f32.mrb[170].mxu0  ;;  %v3304_v16 = vpop.f32.mrb[202].mxu1  ;;  %3895 = vmatprep.mubr.f32.mxu0 %v3740_v10  ;;  %4040 = vmatprep.mubr.f32.mxu1 %v3742_v45  ;;  %v2010_v12 = vand.u32 2147483647, %v1562_v48  ;;  %v1796_v10 = vadd.f32 %v9100_v5, %v8341_v41  ;;  %v9106_v40 = vld [vmem:[#allocation101_spill] sm:$0xff] }
 0x50f   :  { %v3747_v7 = vmul.f32 %v3143_v9, %v1992_v31  ;;  %v3749_v25 = vmul.f32 %v3304_v16, %v1994_v1  ;;  %v3145_v21 = vpop.f32.mrb[171].mxu0  ;;  %v3306_v56 = vpop.f32.mrb[203].mxu1  ;;  %3896 = vmatmul.mubr.f32.gmra.mrb[232].mxu0 %v3739_v36  ;;  %4041 = vmatmul.mubr.f32.gmra.mrb[8].mxu1 %v3741_v27  ;;  %v9098_v36 = vld [vmem:[#allocation93_spill] sm:$0xff]  ;;  %v2008_v27 = vand.u32 2147483647, %v1401_v6  ;;  %v1800_v9 = vadd.f32 %v9102_v17, %v8328_v42 }
 0x510   :  { %v3748_v49 = vmul.f32 %v3145_v21, %v1993_v57  ;;  %v3750_v28 = vmul.f32 %v3306_v56, %v1995_v50  ;;  %v1794_v34 = vadd.f32 %v9098_v36, %v8328_v42  ;;  %v2011_v39 = vand.u32 2147483647, %v1564_v47  ;;  %v9101_v1 = vld [vmem:[#allocation141_spill] sm:$0xff]  ;;  %v9104_v56 = vld [vmem:[#allocation98_spill] sm:$0xff] }
 0x511   :  { %v2009_v45 = vand.u32 2147483647, %v1403_v51  ;;  %v1635_v58 = vadd.f32 %v9101_v1, %v8348_v2  ;;  %v1892_v16 = vand.u32 2147483647, %v1633_v35  ;;  %v1895_v21 = vand.u32 2147483647, %v1796_v10 }
 0x512   :  { %v3149_v44 = vpop.f32.mrb[172].mxu0  ;;  %v3310_v46 = vpop.f32.mrb[204].mxu1  ;;  %3900 = vmatprep.mubr.f32.mxu0 %v3748_v49  ;;  %4045 = vmatprep.mubr.f32.mxu1 %v3750_v28  ;;  %v1894_v0 = vand.u32 2147483647, %v1794_v34  ;;  %v1802_v62 = vadd.f32 %v9104_v56, %v8341_v41  ;;  %v9105_v28 = vld [vmem:[#allocation145_spill] sm:$0xff]  ;;  %v1806_v51 = vadd.f32 %v9106_v40, %v8328_v42  ;;  %v9112_v1 = vld [vmem:[#allocation27_spill] sm:$0xff] }
 0x513   :  { %v3755_v20 = vmul.f32 %v3149_v44, %v2000_v19  ;;  %v3757_v63 = vmul.f32 %v3310_v46, %v2002_v26  ;;  %v3151_v30 = vpop.f32.mrb[173].mxu0  ;;  %v3312_v43 = vpop.f32.mrb[205].mxu1  ;;  %3901 = vmatmul.mubr.f32.gmra.mrb[234].mxu0 %v3747_v7  ;;  %4046 = vmatmul.mubr.f32.gmra.mrb[10].mxu1 %v3749_v25  ;;  %v9103_v7 = vld [vmem:[#allocation144_spill] sm:$0xff]  ;;  %v1893_v49 = vand.u32 2147483647, %v1635_v58  ;;  %v1641_v26 = vadd.f32 %v9105_v28, %v8348_v2  ;;  %v9116_v17 = vld [vmem:[#allocation153_spill] sm:$0xff] }
 0x514   :  { %v3756_v60 = vmul.f32 %v3151_v30, %v2001_v8  ;;  %v3758_v32 = vmul.f32 %v3312_v43, %v2003_v37  ;;  %v1639_v25 = vadd.f32 %v9103_v7, %v8345_v33  ;;  %v1902_v8 = vand.u32 2147483647, %v1800_v9  ;;  %v9107_v46 = vld [vmem:[#allocation148_spill] sm:$0xff]  ;;  %v9110_v43 = vld [vmem:[#allocation102_spill] sm:$0xff]  ;;  %v9120_v40 = vld [vmem:[#allocation157_spill] sm:$0xff] }
 0x515   :  { %v1903_v30 = vand.u32 2147483647, %v1802_v62  ;;  %v1910_v58 = vand.u32 2147483647, %v1806_v51  ;;  %v1653_v9 = vadd.f32 %v9116_v17, %v8348_v2  ;;  %v1659_v51 = vadd.f32 %v9120_v40, %v8348_v2 }
 0x516   :  { %v3155_v52 = vpop.f32.mrb[174].mxu0  ;;  %v3316_v31 = vpop.f32.mrb[206].mxu1  ;;  %3905 = vmatprep.mubr.f32.mxu0 %v3756_v60  ;;  %4050 = vmatprep.mubr.f32.mxu1 %v3758_v32  ;;  %v1900_v44 = vand.u32 2147483647, %v1639_v25  ;;  %v1808_v60 = vadd.f32 %v9110_v43, %v8341_v41  ;;  %v1901_v32 = vand.u32 2147483647, %v1641_v26 }
 0x517   :  { %v3763_v13 = vmul.f32 %v3155_v52, %v2008_v27  ;;  %v3765_v11 = vmul.f32 %v3316_v31, %v2010_v12  ;;  %v3157_v50 = vpop.f32.mrb[175].mxu0  ;;  %v3318_v61 = vpop.f32.mrb[207].mxu1  ;;  %3906 = vmatmul.mubr.f32.gmra.mrb[236].mxu0 %v3755_v20  ;;  %4051 = vmatmul.mubr.f32.gmra.mrb[12].mxu1 %v3757_v63  ;;  %v1645_v20 = vadd.f32 %v9107_v46, %v8345_v33  ;;  %v9111_v12 = vld [vmem:[#allocation149_spill] sm:$0xff]  ;;  %v9113_v52 = vld [vmem:[#allocation106_spill] sm:$0xff] }
 0x518   :  { %v3764_v24 = vmul.f32 %v3157_v50, %v2009_v45  ;;  %v3766_v57 = vmul.f32 %v3318_v61, %v2011_v39  ;;  %v1647_v36 = vadd.f32 %v9111_v12, %v8348_v2  ;;  %v1812_v31 = vadd.f32 %v9113_v52, %v8328_v42  ;;  %v9125_v52 = vld [vmem:[#allocation159_spill] sm:$0xff] }
 0x519   :  { %v1911_v61 = vand.u32 2147483647, %v1808_v60 }
 0x51a   :  { %v3387_v53 = vpop.f32.mrb[176].mxu0  ;;  %v3548_v48 = vpop.f32.mrb[208].mxu1  ;;  %3910 = vmatprep.mubr.f32.mxu0 %v3764_v24  ;;  %4055 = vmatprep.mubr.f32.mxu1 %v3766_v57  ;;  %v9115_v24 = vld [vmem:[#allocation107_spill] sm:$0xff]  ;;  %v1918_v26 = vand.u32 2147483647, %v1812_v31  ;;  %v1665_v31 = vadd.f32 %v9125_v52, %v8348_v2 }
 0x51b   :  { %v3647_v19 = vmul.f32 %v3387_v53, %v1892_v16  ;;  %v3649_v4 = vmul.f32 %v3548_v48, %v1894_v0  ;;  %v3389_v6 = vpop.f32.mrb[177].mxu0  ;;  %v3550_v37 = vpop.f32.mrb[209].mxu1  ;;  %3911 = vmatmul.mubr.f32.gmra.mrb[238].mxu0 %v3763_v13  ;;  %4056 = vmatmul.mubr.f32.gmra.mrb[14].mxu1 %v3765_v11  ;;  %v1908_v13 = vand.u32 2147483647, %v1645_v20  ;;  %v9114_v11 = vld [vmem:[#allocation152_spill] sm:$0xff]  ;;  %v1814_v57 = vadd.f32 %v9115_v24, %v8341_v41  ;;  %v9117_v53 = vld [vmem:[#allocation110_spill] sm:$0xff] }
 0x51c   :  { %v3648_v29 = vmul.f32 %v3389_v6, %v1893_v49  ;;  %v3650_v47 = vmul.f32 %v3550_v37, %v1895_v21  ;;  %v1651_v50 = vadd.f32 %v9114_v11, %v8345_v33  ;;  %v1909_v0 = vand.u32 2147483647, %v1647_v36  ;;  %v9121_v36 = vld [vmem:[#allocation30_spill] sm:$0xff] }
 0x51d   :  { %v1818_v48 = vadd.f32 %v9117_v53, %v8328_v42  ;;  %v1919_v37 = vand.u32 2147483647, %v1814_v57  ;;  %v9129_v53 = vld [vmem:[#allocation161_spill] sm:$0xff] }
 0x51e   :  { %v3393_v34 = vpop.f32.mrb[178].mxu0  ;;  %v3554_v27 = vpop.f32.mrb[210].mxu1  ;;  %4125 = vmatprep.mubr.f32.mxu0 %v3648_v29  ;;  %4270 = vmatprep.mubr.f32.mxu1 %v3650_v47  ;;  %v9119_v29 = vld [vmem:[#allocation111_spill] sm:$0xff] }
 0x51f   :  { %v3655_v23 = vmul.f32 %v3393_v34, %v1900_v44  ;;  %v3657_v35 = vmul.f32 %v3554_v27, %v1902_v8  ;;  %v3395_v39 = vpop.f32.mrb[179].mxu0  ;;  %v3556_v5 = vpop.f32.mrb[211].mxu1  ;;  %4126 = vmatmul.mubr.f32.vlgmr.msra.gmra.mrb[240].mxu0 %v3647_v19  ;;  %4271 = vmatmul.mubr.f32.vlgmr.msra.gmra.mrb[16].mxu1 %v3649_v4  ;;  %v1916_v19 = vand.u32 2147483647, %v1651_v50  ;;  %v9118_v4 = vld [vmem:[#allocation156_spill] sm:$0xff]  ;;  %v1820_v47 = vadd.f32 %v9119_v29, %v8341_v41  ;;  %v9122_v27 = vld [vmem:[#allocation114_spill] sm:$0xff] }
 0x520   :  { %v3656_v10 = vmul.f32 %v3395_v39, %v1901_v32  ;;  %v3658_v45 = vmul.f32 %v3556_v5, %v1903_v30  ;;  %5883 = vmatpush3.bf16.xpose.msk.msra.mxu0 %vm8380_vm6, %v9112_v1  ;;  %v1657_v6 = vadd.f32 %v9118_v4, %v8345_v33  ;;  %v1917_v8 = vand.u32 2147483647, %v1653_v9  ;;  %v9123_v39 = vld [vmem:[#allocation158_spill] sm:$0xff] }
 0x521   :  { %5884 = vmatprep.subr.bf16.mxu0 %v6356_v3  ;;  %v1926_v34 = vand.u32 2147483647, %v1818_v48  ;;  %v1663_v5 = vadd.f32 %v9123_v39, %v8345_v33  ;;  %v1671_v48 = vadd.f32 %v9129_v53, %v8348_v2 }
 0x522   :  { %v3399_v16 = vpop.f32.mrb[180].mxu0  ;;  %v3560_v7 = vpop.f32.mrb[212].mxu1  ;;  %4130 = vmatprep.mubr.f32.mxu0 %v3656_v10  ;;  %4275 = vmatprep.mubr.f32.mxu1 %v3658_v45  ;;  %v1927_v10 = vand.u32 2147483647, %v1820_v47  ;;  %v9124_v45 = vld [vmem:[#allocation115_spill] sm:$0xff] }
 0x523   :  { %v3663_v25 = vmul.f32 %v3399_v16, %v1908_v13  ;;  %v3665_v21 = vmul.f32 %v3560_v7, %v1910_v58  ;;  %v3401_v56 = vpop.f32.mrb[181].mxu0  ;;  %v3562_v62 = vpop.f32.mrb[213].mxu1  ;;  %4131 = vmatmul.mubr.f32.gmra.mrb[242].mxu0 %v3655_v23  ;;  %4276 = vmatmul.mubr.f32.gmra.mrb[18].mxu1 %v3657_v35  ;;  %v1824_v23 = vadd.f32 %v9122_v27, %v8328_v42  ;;  %v1924_v35 = vand.u32 2147483647, %v1657_v6  ;;  %v9126_v16 = vld [vmem:[#allocation118_spill] sm:$0xff]  ;;  %v9134_v27 = vld [vmem:[#allocation163_spill] sm:$0xff] }
 0x524   :  { %v3664_v49 = vmul.f32 %v3401_v56, %v1909_v0  ;;  %v3666_v28 = vmul.f32 %v3562_v62, %v1911_v61  ;;  %v1826_v1 = vadd.f32 %v9124_v45, %v8341_v41  ;;  %v1925_v58 = vand.u32 2147483647, %v1659_v51  ;;  %v9130_v51 = vld [vmem:[#allocation33_spill] sm:$0xff] }
 0x525   :  { %v1934_v9 = vand.u32 2147483647, %v1824_v23  ;;  %v1830_v7 = vadd.f32 %v9126_v16, %v8328_v42  ;;  %v1677_v23 = vadd.f32 %v9134_v27, %v8348_v2  ;;  %v9138_v16 = vld [vmem:[#allocation165_spill] sm:$0xff] }
 0x526   :  { %v3405_v44 = vpop.f32.mrb[182].mxu0  ;;  %v3566_v46 = vpop.f32.mrb[214].mxu1  ;;  %4135 = vmatprep.mubr.f32.mxu0 %v3664_v49  ;;  %4280 = vmatprep.mubr.f32.mxu1 %v3666_v28  ;;  %v1935_v62 = vand.u32 2147483647, %v1826_v1  ;;  %v9128_v49 = vld [vmem:[#allocation119_spill] sm:$0xff] }
 0x527   :  { %v3671_v20 = vmul.f32 %v3405_v44, %v1916_v19  ;;  %v3673_v30 = vmul.f32 %v3566_v46, %v1918_v26  ;;  %v3407_v43 = vpop.f32.mrb[183].mxu0  ;;  %v3568_v60 = vpop.f32.mrb[215].mxu1  ;;  %4136 = vmatmul.mubr.f32.gmra.mrb[244].mxu0 %v3663_v25  ;;  %4281 = vmatmul.mubr.f32.gmra.mrb[20].mxu1 %v3665_v21  ;;  %v1932_v25 = vand.u32 2147483647, %v1663_v5  ;;  %v9127_v21 = vld [vmem:[#allocation160_spill] sm:$0xff]  ;;  %v1832_v28 = vadd.f32 %v9128_v49, %v8341_v41  ;;  %v9131_v46 = vld [vmem:[#allocation122_spill] sm:$0xff] }
 0x528   :  { %v3672_v32 = vmul.f32 %v3407_v43, %v1917_v8  ;;  %v3674_v12 = vmul.f32 %v3568_v60, %v1919_v37  ;;  %5887 = vmatpush3.bf16.xpose.msk.msra.mxu0 %vm8380_vm6, %v9121_v36  ;;  %v1669_v56 = vadd.f32 %v9127_v21, %v8345_v33  ;;  %v1933_v26 = vand.u32 2147483647, %v1665_v31  ;;  %v9132_v43 = vld [vmem:[#allocation162_spill] sm:$0xff] }
 0x529   :  { %5888 = vmatprep.subr.bf16.mxu0 %v6356_v3  ;;  %v1942_v44 = vand.u32 2147483647, %v1830_v7  ;;  %v1675_v60 = vadd.f32 %v9132_v43, %v8345_v33  ;;  %v1683_v7 = vadd.f32 %v9138_v16, %v8348_v2  ;;  %v9148_v16 = vld [vmem:[#allocation138_spill] sm:$0xff] }
 0x52a   :  { %v3411_v13 = vpop.f32.mrb[184].mxu0  ;;  %v3572_v11 = vpop.f32.mrb[216].mxu1  ;;  %4140 = vmatprep.mubr.f32.mxu0 %v3672_v32  ;;  %4285 = vmatprep.mubr.f32.mxu1 %v3674_v12  ;;  %v1943_v32 = vand.u32 2147483647, %v1832_v28  ;;  %v9133_v12 = vld [vmem:[#allocation123_spill] sm:$0xff] }
 0x52b   :  { %v3679_v50 = vmul.f32 %v3411_v13, %v1924_v35  ;;  %v3681_v61 = vmul.f32 %v3572_v11, %v1926_v34  ;;  %v3413_v24 = vpop.f32.mrb[185].mxu0  ;;  %v3574_v57 = vpop.f32.mrb[217].mxu1  ;;  %4141 = vmatmul.mubr.f32.gmra.mrb[246].mxu0 %v3671_v20  ;;  %4286 = vmatmul.mubr.f32.gmra.mrb[22].mxu1 %v3673_v30  ;;  %v1836_v20 = vadd.f32 %v9131_v46, %v8328_v42  ;;  %v1940_v30 = vand.u32 2147483647, %v1669_v56  ;;  %v9135_v13 = vld [vmem:[#allocation126_spill] sm:$0xff]  ;;  %v9143_v46 = vld [vmem:[#allocation167_spill] sm:$0xff] }
 0x52c   :  { %v3680_v0 = vmul.f32 %v3413_v24, %v1925_v58  ;;  %v3682_v17 = vmul.f32 %v3574_v57, %v1927_v10  ;;  %v1838_v36 = vadd.f32 %v9133_v12, %v8341_v41  ;;  %v1941_v34 = vand.u32 2147483647, %v1671_v48  ;;  %v9139_v56 = vld [vmem:[#allocation130_spill] sm:$0xff] }
 0x52d   :  { %v1950_v31 = vand.u32 2147483647, %v1836_v20  ;;  %v1842_v11 = vadd.f32 %v9135_v13, %v8328_v42  ;;  %v1689_v20 = vadd.f32 %v9143_v46, %v8348_v2 }
 0x52e   :  { %v3417_v19 = vpop.f32.mrb[186].mxu0  ;;  %v3578_v4 = vpop.f32.mrb[218].mxu1  ;;  %4145 = vmatprep.mubr.f32.mxu0 %v3680_v0  ;;  %4290 = vmatprep.mubr.f32.mxu1 %v3682_v17  ;;  %v1951_v57 = vand.u32 2147483647, %v1838_v36  ;;  %v9137_v0 = vld [vmem:[#allocation127_spill] sm:$0xff] }
 0x52f   :  { %v3687_v6 = vmul.f32 %v3417_v19, %v1932_v25  ;;  %v3689_v37 = vmul.f32 %v3578_v4, %v1934_v9  ;;  %v3419_v29 = vpop.f32.mrb[187].mxu0  ;;  %v3580_v47 = vpop.f32.mrb[219].mxu1  ;;  %4146 = vmatmul.mubr.f32.gmra.mrb[248].mxu0 %v3679_v50  ;;  %4291 = vmatmul.mubr.f32.gmra.mrb[24].mxu1 %v3681_v61  ;;  %v1948_v50 = vand.u32 2147483647, %v1675_v60  ;;  %v9136_v61 = vld [vmem:[#allocation164_spill] sm:$0xff]  ;;  %v1844_v17 = vadd.f32 %v9137_v0, %v8341_v41 }
 0x530   :  { %v3688_v8 = vmul.f32 %v3419_v29, %v1933_v26  ;;  %v3690_v40 = vmul.f32 %v3580_v47, %v1935_v62  ;;  %5891 = vmatpush3.bf16.xpose.msk.msra.mxu0 %vm8380_vm6, %v9130_v51  ;;  %v1681_v24 = vadd.f32 %v9136_v61, %v8345_v33  ;;  %v1949_v9 = vand.u32 2147483647, %v1677_v23  ;;  %v9140_v4 = vld [vmem:[#allocation36_spill] sm:$0xff] }
 0x531   :  { %5892 = vmatprep.subr.bf16.mxu0 %v6356_v3  ;;  %v1848_v62 = vadd.f32 %v9139_v56, %v8328_v42  ;;  %v1959_v51 = vand.u32 2147483647, %v1844_v17  ;;  %v1965_v61 = vand.u32 2147483647, %v1689_v20 }
 0x532   :  { %v3423_v35 = vpop.f32.mrb[188].mxu0  ;;  %v3584_v39 = vpop.f32.mrb[220].mxu1  ;;  %4150 = vmatprep.mubr.f32.mxu0 %v3688_v8  ;;  %4295 = vmatprep.mubr.f32.mxu1 %v3690_v40  ;;  %v1956_v47 = vand.u32 2147483647, %v1681_v24  ;;  %v9142_v8 = vld [vmem:[#allocation166_spill] sm:$0xff]  ;;  %v9147_v24 = vld [vmem:[#allocation169_spill] sm:$0xff] }
 0x533   :  { %v3695_v5 = vmul.f32 %v3423_v35, %v1940_v30  ;;  %v3697_v10 = vmul.f32 %v3584_v39, %v1942_v44  ;;  %v3425_v45 = vpop.f32.mrb[189].mxu0  ;;  %v3586_v1 = vpop.f32.mrb[221].mxu1  ;;  %4151 = vmatmul.mubr.f32.gmra.mrb[250].mxu0 %v3687_v6  ;;  %4296 = vmatmul.mubr.f32.gmra.mrb[26].mxu1 %v3689_v37  ;;  %v1958_v6 = vand.u32 2147483647, %v1842_v11  ;;  %v9141_v37 = vld [vmem:[#allocation131_spill] sm:$0xff]  ;;  %v1687_v40 = vadd.f32 %v9142_v8, %v8345_v33 }
 0x534   :  { %v3696_v58 = vmul.f32 %v3425_v45, %v1941_v34  ;;  %v3698_v52 = vmul.f32 %v3586_v1, %v1943_v32  ;;  %v1850_v29 = vadd.f32 %v9141_v37, %v8341_v41  ;;  %v1957_v44 = vand.u32 2147483647, %v1683_v7  ;;  %v6119_v35 = vld [vmem:[#allocation2 + $0x40] sm:$0xff]  ;;  %v9144_v1 = vld [vmem:[#allocation134_spill] sm:$0xff] }
 0x535   :  { %v1966_v60 = vand.u32 2147483647, %v1848_v62  ;;  %v4674_v39 = vmul.f32 %v6119_v35, %v6119_v35  ;;  %v9146_v11 = vld [vmem:[#allocation135_spill] sm:$0xff]  ;;  %v1860_v7 = vadd.f32 %v9148_v16, %v8328_v42 }
 0x536   :  { %v3429_v25 = vpop.f32.mrb[190].mxu0  ;;  %v3590_v21 = vpop.f32.mrb[222].mxu1  ;;  %4155 = vmatprep.mubr.f32.mxu0 %v3696_v58  ;;  %4300 = vmatprep.mubr.f32.mxu1 %v3698_v52  ;;  %v1967_v45 = vand.u32 2147483647, %v1850_v29  ;;  %v1854_v58 = vadd.f32 %v9144_v1, %v8328_v42  ;;  %v1964_v52 = vand.u32 2147483647, %v1687_v40 }
 0x537   :  { %v3703_v49 = vmul.f32 %v3429_v25, %v1948_v50  ;;  %v3705_v28 = vmul.f32 %v3590_v21, %v1950_v31  ;;  %v3431_v26 = vpop.f32.mrb[191].mxu0  ;;  %v3592_v53 = vpop.f32.mrb[223].mxu1  ;;  %4156 = vmatmul.mubr.f32.gmra.mrb[252].mxu0 %v3695_v5  ;;  %4301 = vmatmul.mubr.f32.gmra.mrb[28].mxu1 %v3697_v10  ;;  %v6120_v5 = vld [vmem:[#allocation2 + $0x48] sm:$0xff]  ;;  %v1856_v50 = vadd.f32 %v9146_v11, %v8341_v41  ;;  %v9152_v8 = vld [vmem:[#allocation171_spill] sm:$0xff]  ;;  %v1982_v46 = vand.u32 2147483647, %v1860_v7 }
 0x538   :  { %v3704_v48 = vmul.f32 %v3431_v26, %v1949_v9  ;;  %v3706_v19 = vmul.f32 %v3592_v53, %v1951_v57  ;;  %5895 = vmatpush3.bf16.xpose.msk.msra.mxu0 %vm8380_vm6, %v9140_v4  ;;  %v4675_v10 = vmul.f32 %v6120_v5, %v6120_v5  ;;  %v9145_v31 = vld [vmem:[#allocation168_spill] sm:$0xff]  ;;  %v1695_v57 = vadd.f32 %v9147_v24, %v8348_v2  ;;  %v9149_v26 = vld [vmem:[#allocation39_spill] sm:$0xff] }
 0x539   :  { %5896 = vmatprep.subr.bf16.mxu0 %v6356_v3  ;;  %v1693_v13 = vadd.f32 %v9145_v31, %v8345_v33  ;;  %v1974_v53 = vand.u32 2147483647, %v1854_v58  ;;  %v1975_v29 = vand.u32 2147483647, %v1856_v50  ;;  %v1701_v40 = vadd.f32 %v9152_v8, %v8348_v2  ;;  %v9155_v58 = vld [vmem:[#allocation143_spill] sm:$0xff] }
 0x53a   :  { %v3435_v30 = vpop.f32.mrb[192].mxu0  ;;  %v3596_v43 = vpop.f32.mrb[224].mxu1  ;;  %4160 = vmatprep.mubr.f32.mxu0 %v3704_v48  ;;  %4305 = vmatprep.mubr.f32.mxu1 %v3706_v19  ;;  %v6021_v9 = vpack.i.bf16 %v4675_v10, %v4674_v39  ;;  %v9150_v48 = vld [vmem:[#allocation139_spill] sm:$0xff]  ;;  %v9153_v39 = vld [vmem:[#allocation142_spill] sm:$0xff] }
 0x53b   :  { %v3711_v32 = vmul.f32 %v3435_v30, %v1956_v47  ;;  %v3713_v12 = vmul.f32 %v3596_v43, %v1958_v6  ;;  %v3437_v36 = vpop.f32.mrb[193].mxu0  ;;  %v3598_v34 = vpop.f32.mrb[225].mxu1  ;;  %4161 = vmatmul.mubr.f32.gmra.mrb[254].mxu0 %v3703_v49  ;;  %4306 = vmatmul.mubr.f32.gmra.mrb[30].mxu1 %v3705_v28  ;;  %v1862_v19 = vadd.f32 %v9150_v48, %v8341_v41  ;;  %v1972_v4 = vand.u32 2147483647, %v1693_v13  ;;  %v9151_v6 = vld [vmem:[#allocation170_spill] sm:$0xff]  ;;  %v9156_v13 = vld [vmem:[#allocation173_spill] sm:$0xff] }
 0x53c   :  { %v3712_v27 = vmul.f32 %v3437_v36, %v1957_v44  ;;  %v3714_v23 = vmul.f32 %v3598_v34, %v1959_v51  ;;  %6022 = vrot.lane.b32.xlu1 %v6021_v9, %s6355_s7  ;;  %v1699_v37 = vadd.f32 %v9151_v6, %v8345_v33  ;;  %v1973_v47 = vand.u32 2147483647, %v1695_v57  ;;  %v6121_v36 = vld [vmem:[#allocation2 + $0x50] sm:$0xff]  ;;  %v9161_v6 = vld [vmem:[#allocation176_spill] sm:$0xff] }
 0x53d   :  { %v4676_v34 = vmul.f32 %v6121_v36, %v6121_v36  ;;  %v1983_v35 = vand.u32 2147483647, %v1862_v19  ;;  %v1866_v5 = vadd.f32 %v9153_v39, %v8328_v42  ;;  %v1981_v31 = vand.u32 2147483647, %v1701_v40  ;;  %v9157_v57 = vld [vmem:[#allocation146_spill] sm:$0xff] }
 0x53e   :  { %v3441_v0 = vpop.f32.mrb[194].mxu0  ;;  %v3602_v17 = vpop.f32.mrb[226].mxu1  ;;  %4165 = vmatprep.mubr.f32.mxu0 %v3712_v27  ;;  %4310 = vmatprep.mubr.f32.mxu1 %v3714_v23  ;;  %v6122_v27 = vld [vmem:[#allocation2 + $0x58] sm:$0xff]  ;;  %v1980_v10 = vand.u32 2147483647, %v1699_v37  ;;  %v1707_v11 = vadd.f32 %v9156_v13, %v8348_v2  ;;  %v1713_v37 = vadd.f32 %v9161_v6, %v8348_v2 }
 0x53f   :  { %v3719_v25 = vmul.f32 %v3441_v0, %v1964_v52  ;;  %v3721_v21 = vmul.f32 %v3602_v17, %v1966_v60  ;;  %v3443_v56 = vpop.f32.mrb[195].mxu0  ;;  %v3604_v62 = vpop.f32.mrb[227].mxu1  ;;  %4166 = vmatmul.mubr.f32.gmra.mrb[0].mxu0 %v3711_v32  ;;  %4311 = vmatmul.mubr.f32.gmra.mrb[32].mxu1 %v3713_v12  ;;  %v4677_v23 = vmul.f32 %v6122_v27, %v6122_v27 }
 0x540   :  { %v3720_v49 = vmul.f32 %v3443_v56, %v1965_v61  ;;  %v3722_v28 = vmul.f32 %v3604_v62, %v1967_v45  ;;  %5899 = vmatpush3.bf16.xpose.msk.msra.mxu0 %vm8380_vm6, %v9149_v26  ;;  %v9154_v45 = vld [vmem:[#allocation172_spill] sm:$0xff]  ;;  %v1868_v52 = vadd.f32 %v9155_v58, %v8341_v41  ;;  %v1872_v0 = vadd.f32 %v9157_v57, %v8328_v42  ;;  %v9158_v56 = vld [vmem:[#allocation43_spill] sm:$0xff] }
 0x541   :  { %5900 = vmatprep.subr.bf16.mxu0 %v6356_v3  ;;  %v1705_v1 = vadd.f32 %v9154_v45, %v8345_v33  ;;  %v6026_v24 = vpack.i.bf16 %v4677_v23, %v4676_v34  ;;  %v1990_v62 = vand.u32 2147483647, %v1866_v5  ;;  %v9162_v34 = vld [vmem:[#allocation150_spill] sm:$0xff]  ;;  %v9164_v5 = vld [vmem:[#allocation151_spill] sm:$0xff]  ;;  %v1997_v45 = vand.u32 2147483647, %v1713_v37 }
 0x542   :  { %v3447_v51 = vpop.f32.mrb[196].mxu0  ;;  %v3608_v44 = vpop.f32.mrb[228].mxu1  ;;  %4170 = vmatprep.mubr.f32.mxu0 %v3720_v49  ;;  %4315 = vmatprep.mubr.f32.mxu1 %v3722_v28  ;;  %v9159_v49 = vld [vmem:[#allocation147_spill] sm:$0xff]  ;;  %v1991_v19 = vand.u32 2147483647, %v1868_v52  ;;  %v1878_v27 = vadd.f32 %v9162_v34, %v8328_v42 }
 0x543   :  { %v3727_v20 = vmul.f32 %v3447_v51, %v1972_v4  ;;  %v3729_v30 = vmul.f32 %v3608_v44, %v1974_v53  ;;  %v3449_v43 = vpop.f32.mrb[197].mxu0  ;;  %v3610_v60 = vpop.f32.mrb[229].mxu1  ;;  %4171 = vmatmul.mubr.f32.gmra.mrb[2].mxu0 %v3719_v25  ;;  %4316 = vmatmul.mubr.f32.gmra.mrb[34].mxu1 %v3721_v21  ;;  %v1874_v28 = vadd.f32 %v9159_v49, %v8341_v41  ;;  %v1988_v26 = vand.u32 2147483647, %v1705_v1  ;;  %v9160_v53 = vld [vmem:[#allocation175_spill] sm:$0xff] }
 0x544   :  { %v3728_v32 = vmul.f32 %v3449_v43, %v1973_v47  ;;  %v3730_v12 = vmul.f32 %v3610_v60, %v1975_v29  ;;  %6027 = vrot.lane.b32.xlu0 %v6026_v24, %s6355_s7  ;;  %v1711_v48 = vadd.f32 %v9160_v53, %v8345_v33  ;;  %v1989_v4 = vand.u32 2147483647, %v1707_v11  ;;  %v6123_v43 = vld [vmem:[#allocation2 + $0x60] sm:$0xff]  ;;  %v9170_v53 = vld [vmem:[#allocation182_spill] sm:$0xff] }
 0x545   :  { %v1998_v8 = vand.u32 2147483647, %v1872_v0  ;;  %v4678_v60 = vmul.f32 %v6123_v43, %v6123_v43  ;;  %v1999_v36 = vand.u32 2147483647, %v1874_v28  ;;  %v9165_v1 = vld [vmem:[#allocation179_spill] sm:$0xff] }
 0x546   :  { %v3453_v50 = vpop.f32.mrb[198].mxu0  ;;  %v3614_v61 = vpop.f32.mrb[230].mxu1  ;;  %4175 = vmatprep.mubr.f32.mxu0 %v3728_v32  ;;  %4320 = vmatprep.mubr.f32.mxu1 %v3730_v12  ;;  %v6124_v32 = vld [vmem:[#allocation2 + $0x68] sm:$0xff]  ;;  %v1996_v23 = vand.u32 2147483647, %v1711_v48  ;;  %v1719_v58 = vadd.f32 %v9165_v1, %v8348_v2  ;;  %v9169_v49 = vld [vmem:[#allocation155_spill] sm:$0xff]  ;;  %v1725_v48 = vadd.f32 %v9170_v53, %v8348_v2 }
 0x547   :  { %v3735_v17 = vmul.f32 %v3453_v50, %v1980_v10  ;;  %v3737_v9 = vmul.f32 %v3614_v61, %v1982_v46  ;;  %v3455_v16 = vpop.f32.mrb[199].mxu0  ;;  %v3616_v7 = vpop.f32.mrb[231].mxu1  ;;  %4176 = vmatmul.mubr.f32.gmra.mrb[4].mxu0 %v3727_v20  ;;  %4321 = vmatmul.mubr.f32.gmra.mrb[36].mxu1 %v3729_v30  ;;  %v4679_v12 = vmul.f32 %v6124_v32, %v6124_v32 }
 0x548   :  { %v3736_v25 = vmul.f32 %v3455_v16, %v1981_v31  ;;  %v3738_v21 = vmul.f32 %v3616_v7, %v1983_v35  ;;  %5903 = vmatpush3.bf16.xpose.msk.msra.mxu0 %vm8380_vm6, %v9158_v56  ;;  %v9163_v35 = vld [vmem:[#allocation178_spill] sm:$0xff]  ;;  %v1880_v10 = vadd.f32 %v9164_v5, %v8341_v41  ;;  %v1886_v28 = vadd.f32 %v9169_v49, %v8341_v41  ;;  %v8529_v5 = vpop.permute.xlu0 %4367 }
 0x549   :  { %5904 = vmatprep.subr.bf16.mxu0 %v6356_v3  ;;  %v1717_v39 = vadd.f32 %v9163_v35, %v8345_v33  ;;  %v6031_v13 = vpack.i.bf16 %v4679_v12, %v4678_v60  ;;  %v9167_v16 = vld [vmem:[#allocation154_spill] sm:$0xff] }
 0x54a   :  { %v3459_v29 = vpop.f32.mrb[200].mxu0  ;;  %v3620_v47 = vpop.f32.mrb[232].mxu1  ;;  %4180 = vmatprep.mubr.f32.mxu0 %v3736_v25  ;;  %4325 = vmatprep.mubr.f32.mxu1 %v3738_v21  ;;  %v1884_v7 = vadd.f32 %v9167_v16, %v8328_v42  ;;  %v9168_v21 = vld [vmem:[#allocation181_spill] sm:$0xff] }
 0x54b   :  { %v3743_v40 = vmul.f32 %v3459_v29, %v1988_v26  ;;  %v3745_v51 = vmul.f32 %v3620_v47, %v1990_v62  ;;  %v3461_v44 = vpop.f32.mrb[201].mxu0  ;;  %v3622_v46 = vpop.f32.mrb[233].mxu1  ;;  %4181 = vmatmul.mubr.f32.gmra.mrb[6].mxu0 %v3735_v17  ;;  %4326 = vmatmul.mubr.f32.gmra.mrb[38].mxu1 %v3737_v9  ;;  %v9166_v17 = vld [vmem:[#allocation46_spill] sm:$0xff]  ;;  %v2006_v9 = vand.u32 2147483647, %v1878_v27  ;;  %v1723_v56 = vadd.f32 %v9168_v21, %v8345_v33  ;;  %v9184_v16 = vld [vmem:[#allocation37_spill] sm:$0xff] }
 0x54c   :  { %v3744_v20 = vmul.f32 %v3461_v44, %v1989_v4  ;;  %v3746_v30 = vmul.f32 %v3622_v46, %v1991_v19  ;;  %6032 = vrot.lane.b32.xlu1 %v6031_v13, %s6355_s7  ;;  %v2004_v25 = vand.u32 2147483647, %v1717_v39  ;;  %v2007_v62 = vand.u32 2147483647, %v1880_v10  ;;  %v6127_v44 = vld [vmem:[#allocation14 + $0x40] sm:$0xff]  ;;  %v8531_v10 = vpop.permute.xlu1 %4369 }
 0x54d   :  { %v2005_v26 = vand.u32 2147483647, %v1719_v58  ;;  %v2014_v2 = vand.u32 2147483647, %v1884_v7  ;;  %v2012_v46 = vand.u32 2147483647, %v1723_v56 }
 0x54e   :  { %v3465_v52 = vpop.f32.mrb[202].mxu0  ;;  %v3626_v31 = vpop.f32.mrb[234].mxu1  ;;  %4185 = vmatprep.mubr.f32.mxu0 %v3744_v20  ;;  %4330 = vmatprep.mubr.f32.mxu1 %v3746_v30  ;;  %v2015_v20 = vand.u32 2147483647, %v1886_v28  ;;  %v2013_v30 = vand.u32 2147483647, %v1725_v48 }
 0x54f   :  { %v3751_v11 = vmul.f32 %v3465_v52, %v1996_v23  ;;  %v3753_v50 = vmul.f32 %v3626_v31, %v1998_v8  ;;  %v3467_v61 = vpop.f32.mrb[203].mxu0  ;;  %v3628_v24 = vpop.f32.mrb[235].mxu1  ;;  %4186 = vmatmul.mubr.f32.gmra.mrb[8].mxu0 %v3743_v40  ;;  %4331 = vmatmul.mubr.f32.gmra.mrb[40].mxu1 %v3745_v51  ;;  %v6125_v8 = vld [vmem:[#allocation2 + $0x70] sm:$0xff]  ;;  %v6126_v51 = vld [vmem:[#allocation2 + $0x78] sm:$0xff] }
 0x550   :  { %v3752_v57 = vmul.f32 %v3467_v61, %v1997_v45  ;;  %v3754_v0 = vmul.f32 %v3628_v24, %v1999_v36  ;;  %5907 = vmatpush3.bf16.xpose.msk.msra.mxu0 %vm8380_vm6, %v9166_v17  ;;  %v4680_v40 = vmul.f32 %v6125_v8, %v6125_v8  ;;  %v4681_v41 = vmul.f32 %v6126_v51, %v6126_v51  ;;  %v9171_v39 = vld [vmem:[#allocation49_spill] sm:$0xff]  ;;  %v8533_v45 = vpop.permute.xlu0 %4371  ;;  %v8535_v1 = vpop.permute.xlu1 %4373 }
 0x551   :  { %5908 = vmatprep.subr.bf16.mxu0 %v6356_v3  ;;  %4682 = vrot.lane.b32.xlu1 %v6127_v44, %s6345_s28 }
 0x552   :  { %v3471_v19 = vpop.f32.mrb[204].mxu0  ;;  %v3632_v4 = vpop.f32.mrb[236].mxu1  ;;  %4190 = vmatprep.mubr.f32.mxu0 %v3752_v57  ;;  %4335 = vmatprep.mubr.f32.mxu1 %v3754_v0  ;;  %v6036_v32 = vpack.i.bf16 %v4681_v41, %v4680_v40 }
 0x553   :  { %v3759_v6 = vmul.f32 %v3471_v19, %v2004_v25  ;;  %v3761_v42 = vmul.f32 %v3632_v4, %v2006_v9  ;;  %v3473_v37 = vpop.f32.mrb[205].mxu0  ;;  %v3634_v29 = vpop.f32.mrb[237].mxu1  ;;  %4191 = vmatmul.mubr.f32.gmra.mrb[10].mxu0 %v3751_v11  ;;  %4336 = vmatmul.mubr.f32.gmra.mrb[42].mxu1 %v3753_v50 }
 0x554   :  { %v3760_v33 = vmul.f32 %v3473_v37, %v2005_v26  ;;  %v3762_v47 = vmul.f32 %v3634_v29, %v2007_v62  ;;  %6037 = vrot.lane.b32.xlu0 %v6036_v32, %s6355_s7  ;;  %v8537_v58 = vpop.permute.xlu0 %4375  ;;  %v8539_v52 = vpop.permute.xlu1 %4377  ;;  %v8578_v37 = vrot.slane %v8330_v18, %v6741_v14  ;;  %v9175_v14 = vld [vmem:[#allocation24_spill] sm:$0xff] }
 0x556   :  { %v3477_v43 = vpop.f32.mrb[206].mxu0  ;;  %v3638_v60 = vpop.f32.mrb[238].mxu1  ;;  %4195 = vmatprep.mubr.f32.mxu0 %v3760_v33  ;;  %4340 = vmatprep.mubr.f32.mxu1 %v3762_v47  ;;  %v9174_v33 = vld [vmem:[#allocation23_spill] sm:$0xff]  ;;  %v798_v18 = vadd.f32 %v9175_v14, %v8578_v37 }
 0x557   :  { %v3767_v12 = vmul.f32 %v3477_v43, %v2012_v46  ;;  %v3769_v36 = vmul.f32 %v3638_v60, %v2014_v2  ;;  %v3479_v34 = vpop.f32.mrb[207].mxu0  ;;  %v3640_v27 = vpop.f32.mrb[239].mxu1  ;;  %4196 = vmatmul.mubr.f32.gmra.mrb[12].mxu0 %v3759_v6  ;;  %4341 = vmatmul.mubr.f32.gmra.mrb[44].mxu1 %v3761_v42  ;;  %v792_v47 = vadd.f32 %v9174_v33, %v8578_v37  ;;  %v9178_v33 = vld [vmem:[#allocation28_spill] sm:$0xff] }
 0x558   :  { %v3768_v23 = vmul.f32 %v3479_v34, %v2013_v30  ;;  %v3770_v35 = vmul.f32 %v3640_v27, %v2015_v20  ;;  %5911 = vmatpush3.bf16.xpose.msk.msra.mxu0 %vm8380_vm6, %v9171_v39  ;;  %v4545_v31 = vpop.permute.xlu0 %4544  ;;  %v8541_v13 = vpop.permute.xlu1 %4381 }
 0x559   :  { %5944 = vmatprep.subr.bf16.mxu0 %v6356_v3 }
 0x55a   :  { %4200 = vmatprep.mubr.f32.mxu0 %v3768_v23  ;;  %4345 = vmatprep.mubr.f32.mxu1 %v3770_v35  ;;  %v9176_v23 = vld [vmem:[#allocation25_spill] sm:$0xff] }
 0x55b   :  { %4201 = vmatmul.mubr.f32.gmra.mrb[14].mxu0 %v3767_v12  ;;  %4346 = vmatmul.mubr.f32.gmra.mrb[46].mxu1 %v3769_v36  ;;  %v804_v35 = vadd.f32 %v9176_v23, %v8578_v37 }
 0x55c   :  { %v8543_v11 = vpop.permute.xlu0 %4379  ;;  %v6003_v50 = vpop.permute.xlu1 %6002  ;;  %5615 = vmatprep.mubr.msk.f32.mxu0 %vm6357_vm7, %v8868_v38  ;;  %5650 = vmatprep.mubr.msk.f32.mxu1 %vm6357_vm7, %v8868_v38 }
 0x55d   :  { %v6005_v61 = vunpack.i.h.bf16 %v6003_v50  ;;  %v6004_v24 = vunpack.i.l.bf16 %v6003_v50 }
 0x55f   :  { %5616 = vmatmul.mubr.msk.f32.vlgmr.msra.gmra.mrb[16].mxu0 %vm354_vm0, %v4545_v31  ;;  %v5913_v0 = vpack.c.bf16 %v6005_v61, %v6004_v24 }
 0x560   :  { %v8548_v57 = vpop.permute.xlu0 %4383  ;;  %5685 = vmatprep.mubr.msk.f32.mxu0 %vm6357_vm7, %v8868_v38  ;;  %v8551_v17 = vpop.permute.xlu1 %4385 }
 0x561   :  { %5915 = vmatpush3.bf16.xpose.msk.msra.mxu1 %vm8555_vm8, %v5913_v0 }
 0x562   :  { %5916 = vmatprep.subr.bf16.mxu1 %v6356_v3 }
 0x564   :  { %v6008_v9 = vpop.permute.xlu0 %6007  ;;  %v8561_v21 = vpop.permute.xlu1 %4387 }
 0x565   :  { %v6010_v7 = vunpack.i.h.bf16 %v6008_v9  ;;  %v6009_v25 = vunpack.i.l.bf16 %v6008_v9 }
 0x567   :  { %v5917_v38 = vpack.c.bf16 %v6010_v7, %v6009_v25  ;;  %v9177_v7 = vld [vmem:[#allocation26_spill] sm:$0xff] }
 0x568   :  { %v8564_v56 = vpop.permute.xlu0 %4389  ;;  %v6013_v62 = vpop.permute.xlu1 %6012  ;;  %v810_v25 = vadd.f32 %v9177_v7, %v8578_v37 }
 0x569   :  { %v6015_v49 = vunpack.i.h.bf16 %v6013_v62  ;;  %v6014_v28 = vunpack.i.l.bf16 %v6013_v62  ;;  %5919 = vmatpush3.bf16.xpose.msk.msra.mxu1 %vm8555_vm8, %v5917_v38 }
 0x56a   :  { %5920 = vmatprep.subr.bf16.mxu1 %v6356_v3 }
 0x56b   :  { %v5921_v53 = vpack.c.bf16 %v6015_v49, %v6014_v28 }
 0x56c   :  { %v8568_v26 = vpop.permute.xlu0 %4391  ;;  %v8574_v42 = vpop.permute.xlu1 %4393 }
 0x570   :  { %v6018_v48 = vpop.permute.xlu0 %6017  ;;  %v8582_v29 = vpop.permute.xlu1 %4395 }
 0x571   :  { %v6020_v19 = vunpack.i.h.bf16 %v6018_v48  ;;  %v6019_v4 = vunpack.i.l.bf16 %v6018_v48  ;;  %5923 = vmatpush3.bf16.xpose.msk.msra.mxu1 %vm8555_vm8, %v5921_v53 }
 0x572   :  { %5924 = vmatprep.subr.bf16.mxu1 %v6356_v3 }
 0x573   :  { %v5925_v6 = vpack.c.bf16 %v6020_v19, %v6019_v4 }
 0x574   :  { %v8591_v27 = vpop.permute.xlu0 %4397 }
 0x579   :  { %5927 = vmatpush3.bf16.xpose.msk.msra.mxu1 %vm8555_vm8, %v5925_v6 }
 0x57a   :  { %5928 = vmatprep.subr.bf16.mxu1 %v6356_v3 }
 0x5ae   :  { %v6023_v2 = vpop.permute.xlu1 %6022 }
 0x5af   :  { %v6025_v20 = vunpack.i.h.bf16 %v6023_v2  ;;  %v6024_v30 = vunpack.i.l.bf16 %v6023_v2 }
 0x5b1   :  { %v5929_v34 = vpack.c.bf16 %v6025_v20, %v6024_v30 }
 0x5b2   :  { %v3837_v8 = vpop.f32.mrb[208].mxu0  ;;  %v3982_v40 = vpop.f32.mrb[240].mxu1 }
 0x5b3   :  { %v3838_v51 = vadd.f32 %v3837_v8, %v792_v47  ;;  %v3839_v41 = vpop.f32.mrb[209].mxu0  ;;  %v3984_v44 = vpop.f32.mrb[241].mxu1  ;;  %5931 = vmatpush3.bf16.xpose.msk.msra.mxu1 %vm8555_vm8, %v5929_v34  ;;  %v816_v47 = vadd.f32 %v9178_v33, %v8578_v37 }
 0x5b4   :  { %5932 = vmatprep.subr.bf16.mxu1 %v6356_v3 }
 0x5b5   :  { %v8587_v46 = vadd.f32 %v3982_v40, %v3838_v51 }
 0x5b6   :  { %v3842_v43 = vpop.f32.mrb[210].mxu0  ;;  %v3987_v60 = vpop.f32.mrb[242].mxu1 }
 0x5b7   :  { %v3843_v32 = vadd.f32 %v3842_v43, %v798_v18  ;;  %v3844_v12 = vpop.f32.mrb[211].mxu0  ;;  %v3989_v36 = vpop.f32.mrb[243].mxu1  ;;  %v9179_v18 = vld [vmem:[#allocation29_spill] sm:$0xff] }
 0x5b8   :  { %v6028_v9 = vpop.permute.xlu0 %6027  ;;  %v822_v20 = vadd.f32 %v9179_v18, %v8578_v37 }
 0x5b9   :  { %v8595_v39 = vadd.f32 %v3987_v60, %v3843_v32  ;;  %v6030_v62 = vunpack.i.h.bf16 %v6028_v9  ;;  %v6029_v49 = vunpack.i.l.bf16 %v6028_v9 }
 0x5ba   :  { %v3847_v31 = vpop.f32.mrb[212].mxu0  ;;  %v3992_v50 = vpop.f32.mrb[244].mxu1 }
 0x5bb   :  { %v3848_v61 = vadd.f32 %v3847_v31, %v804_v35  ;;  %v3849_v24 = vpop.f32.mrb[213].mxu0  ;;  %v3994_v0 = vpop.f32.mrb[245].mxu1  ;;  %v5933_v6 = vpack.c.bf16 %v6030_v62, %v6029_v49  ;;  %v9180_v31 = vld [vmem:[#allocation31_spill] sm:$0xff]  ;;  %v9181_v49 = vld [vmem:[#allocation32_spill] sm:$0xff] }
 0x5bd   :  { %v8602_v38 = vadd.f32 %v3992_v50, %v3848_v61  ;;  %5935 = vmatpush3.bf16.xpose.msk.msra.mxu1 %vm8555_vm8, %v5933_v6  ;;  %v828_v50 = vadd.f32 %v9180_v31, %v8578_v37 }
 0x5be   :  { %v3852_v28 = vpop.f32.mrb[214].mxu0  ;;  %v3997_v53 = vpop.f32.mrb[246].mxu1  ;;  %5936 = vmatprep.subr.bf16.mxu1 %v6356_v3 }
 0x5bf   :  { %v3853_v48 = vadd.f32 %v3852_v28, %v810_v25  ;;  %v3854_v19 = vpop.f32.mrb[215].mxu0  ;;  %v3999_v4 = vpop.f32.mrb[247].mxu1  ;;  %v834_v28 = vadd.f32 %v9181_v49, %v8578_v37 }
 0x5c0   :  { %v6033_v14 = vpop.permute.xlu1 %6032 }
 0x5c1   :  { %v8606_v8 = vadd.f32 %v3997_v53, %v3853_v48  ;;  %v6035_v43 = vunpack.i.h.bf16 %v6033_v14  ;;  %v6034_v60 = vunpack.i.l.bf16 %v6033_v14 }
 0x5c2   :  { %v3857_v40 = vpop.f32.mrb[216].mxu0  ;;  %v4002_v51 = vpop.f32.mrb[248].mxu1 }
 0x5c3   :  { %v3858_v41 = vadd.f32 %v3857_v40, %v816_v47  ;;  %v3859_v44 = vpop.f32.mrb[217].mxu0  ;;  %v4004_v2 = vpop.f32.mrb[249].mxu1  ;;  %v5937_v35 = vpack.c.bf16 %v6035_v43, %v6034_v60 }
 0x5c5   :  { %v8613_v30 = vadd.f32 %v4002_v51, %v3858_v41  ;;  %5939 = vmatpush3.bf16.xpose.msk.msra.mxu1 %vm8555_vm8, %v5937_v35  ;;  %v9182_v41 = vld [vmem:[#allocation34_spill] sm:$0xff] }
 0x5c6   :  { %v3862_v32 = vpop.f32.mrb[218].mxu0  ;;  %v4007_v12 = vpop.f32.mrb[250].mxu1  ;;  %5940 = vmatprep.subr.bf16.mxu1 %v6356_v3  ;;  %v840_v44 = vadd.f32 %v9182_v41, %v8578_v37  ;;  %v9186_v41 = vld [vmem:[#allocation41_spill] sm:$0xff] }
 0x5c7   :  { %v3863_v36 = vadd.f32 %v3862_v32, %v822_v20  ;;  %v3864_v34 = vpop.f32.mrb[219].mxu0  ;;  %v4009_v23 = vpop.f32.mrb[251].mxu1  ;;  %v9183_v32 = vld [vmem:[#allocation35_spill] sm:$0xff] }
 0x5c8   :  { %v6038_v62 = vpop.permute.xlu0 %6037  ;;  %v4683_v34 = vpop.permute.xlu1 %4682 }
 0x5c9   :  { %v8617_v61 = vadd.f32 %v4007_v12, %v3863_v36  ;;  %v6040_v48 = vunpack.i.h.bf16 %v6038_v62  ;;  %v6039_v19 = vunpack.i.l.bf16 %v6038_v62  ;;  %v846_v12 = vadd.f32 %v9183_v32, %v8578_v37 }
 0x5ca   :  { %v3867_v24 = vpop.f32.mrb[220].mxu0  ;;  %v4012_v0 = vpop.f32.mrb[252].mxu1 }
 0x5cb   :  { %v3868_v9 = vadd.f32 %v3867_v24, %v828_v50  ;;  %v3869_v7 = vpop.f32.mrb[221].mxu0  ;;  %v4014_v25 = vpop.f32.mrb[253].mxu1  ;;  %v5941_v51 = vpack.c.bf16 %v6040_v48, %v6039_v19  ;;  %v9185_v48 = vld [vmem:[#allocation38_spill] sm:$0xff] }
 0x5cc   :  { %v858_v19 = vadd.f32 %v9185_v48, %v8578_v37 }
 0x5cd   :  { %v8624_v53 = vadd.f32 %v4012_v0, %v3868_v9  ;;  %5943 = vmatpush3.bf16.xpose.msk.msra.mxu1 %vm8555_vm8, %v5941_v51  ;;  %v852_v0 = vadd.f32 %v9184_v16, %v8578_v37 }
 0x5ce   :  { %v3872_v4 = vpop.f32.mrb[222].mxu0  ;;  %v4017_v6 = vpop.f32.mrb[254].mxu1 }
 0x5cf   :  { %v3873_v33 = vadd.f32 %v3872_v4, %v834_v28  ;;  %v3874_v47 = vpop.f32.mrb[223].mxu0  ;;  %v4019_v40 = vpop.f32.mrb[255].mxu1 }
 0x5d1   :  { %v8628_v2 = vadd.f32 %v4017_v6, %v3873_v33 }
 0x5d2   :  { %v3877_v14 = vpop.f32.mrb[224].mxu0  ;;  %v4022_v18 = vpop.f32.mrb[0].mxu1 }
 0x5d3   :  { %v3878_v20 = vadd.f32 %v3877_v14, %v840_v44  ;;  %v3879_v43 = vpop.f32.mrb[225].mxu0  ;;  %v4024_v60 = vpop.f32.mrb[1].mxu1  ;;  %v864_v44 = vadd.f32 %v9186_v41, %v8578_v37 }
 0x5d4   :  { %5651 = vmatmul.mubr.msk.f32.vlgmr.msra.gmra.mrb[48].mxu1 %vm2280_vm3, %v4683_v34 }
 0x5d5   :  { %v8634_v36 = vadd.f32 %v4022_v18, %v3878_v20 }
 0x5d6   :  { %v3882_v23 = vpop.f32.mrb[226].mxu0  ;;  %v4027_v35 = vpop.f32.mrb[2].mxu1 }
 0x5d7   :  { %v3883_v31 = vadd.f32 %v3882_v23, %v846_v12  ;;  %v3884_v50 = vpop.f32.mrb[227].mxu0  ;;  %v4029_v24 = vpop.f32.mrb[3].mxu1  ;;  %v6128_v12 = vld [vmem:[#allocation14] sm:$0xff]  ;;  %v9187_v23 = vld [vmem:[#allocation42_spill] sm:$0xff] }
 0x5d8   :  { %v4958_v34 = vrot.slane %v6128_v12, 5 }
 0x5d9   :  { %v8639_v9 = vadd.f32 %v4027_v35, %v3883_v31  ;;  %v870_v35 = vadd.f32 %v9187_v23, %v8578_v37 }
 0x5da   :  { %v3887_v7 = vpop.f32.mrb[228].mxu0  ;;  %v4032_v25 = vpop.f32.mrb[4].mxu1  ;;  %5980 = vpush %v4958_v34 }
 0x5db   :  { %v3888_v62 = vadd.f32 %v3887_v7, %v852_v0  ;;  %v3889_v49 = vpop.f32.mrb[229].mxu0  ;;  %v4034_v28 = vpop.f32.mrb[5].mxu1 }
 0x5dd   :  { %v8643_v4 = vadd.f32 %v4032_v25, %v3888_v62  ;;  %v9188_v25 = vld [vmem:[#allocation44_spill] sm:$0xff] }
 0x5de   :  { %v3892_v6 = vpop.f32.mrb[230].mxu0  ;;  %v4037_v33 = vpop.f32.mrb[6].mxu1  ;;  %v876_v62 = vadd.f32 %v9188_v25, %v8578_v37 }
 0x5df   :  { %v3893_v47 = vadd.f32 %v3892_v6, %v858_v19  ;;  %v3894_v40 = vpop.f32.mrb[231].mxu0  ;;  %v4039_v51 = vpop.f32.mrb[7].mxu1 }
 0x5e1   :  { %v8647_v14 = vadd.f32 %v4037_v33, %v3893_v47  ;;  %v9189_v47 = vld [vmem:[#allocation47_spill] sm:$0xff] }
 0x5e2   :  { %v3897_v18 = vpop.f32.mrb[232].mxu0  ;;  %v4042_v20 = vpop.f32.mrb[8].mxu1  ;;  %v882_v40 = vadd.f32 %v9189_v47, %v8578_v37 }
 0x5e3   :  { %v3898_v43 = vadd.f32 %v3897_v18, %v864_v44  ;;  %v3899_v60 = vpop.f32.mrb[233].mxu0  ;;  %v4044_v32 = vpop.f32.mrb[9].mxu1 }
 0x5e5   :  { %v8651_v31 = vadd.f32 %v4042_v20, %v3898_v43 }
 0x5e6   :  { %v3902_v50 = vpop.f32.mrb[234].mxu0  ;;  %v4047_v24 = vpop.f32.mrb[10].mxu1 }
 0x5e7   :  { %v3903_v16 = vadd.f32 %v3902_v50, %v870_v35  ;;  %v3904_v0 = vpop.f32.mrb[235].mxu0  ;;  %v4049_v7 = vpop.f32.mrb[11].mxu1 }
 0x5e9   :  { %v8655_v49 = vadd.f32 %v4047_v24, %v3903_v16 }
 0x5ea   :  { %v3907_v28 = vpop.f32.mrb[236].mxu0  ;;  %v4052_v48 = vpop.f32.mrb[12].mxu1 }
 0x5eb   :  { %v3908_v19 = vadd.f32 %v3907_v28, %v876_v62  ;;  %v3909_v6 = vpop.f32.mrb[237].mxu0  ;;  %v4054_v33 = vpop.f32.mrb[13].mxu1  ;;  %v2018_v28 = vsub.s32 3, %v6734_v22 }
 0x5ed   :  { %v8659_v51 = vadd.f32 %v4052_v48, %v3908_v19 }
 0x5ee   :  { %v3912_v41 = vpop.f32.mrb[238].mxu0  ;;  %v4057_v44 = vpop.f32.mrb[14].mxu1 }
 0x5ef   :  { %v3913_v18 = vadd.f32 %v3912_v41, %v882_v40  ;;  %v3914_v20 = vpop.f32.mrb[239].mxu0  ;;  %v4059_v43 = vpop.f32.mrb[15].mxu1 }
 0x5f1   :  { %v8661_v60 = vadd.f32 %v4057_v44, %v3913_v18  ;;  %v8671_v18 = vrot.slane %v6128_v12, %v2018_v28 }
 0x5f2   :  { %v4127_v32 = vpop.f32.mrb[240].mxu0  ;;  %v4272_v34 = vpop.f32.mrb[16].mxu1 }
 0x5f3   :  { %v4128_v23 = vadd.f32 %v4127_v32, %v8587_v46  ;;  %v4129_v35 = vpop.f32.mrb[241].mxu0  ;;  %v4274_v50 = vpop.f32.mrb[17].mxu1 }
 0x5f5   :  { %v4273_v24 = vadd.f32 %v4272_v34, %v4128_v23 }
 0x5f6   :  { %v4132_v16 = vpop.f32.mrb[242].mxu0  ;;  %v4277_v0 = vpop.f32.mrb[18].mxu1 }
 0x5f7   :  { %v4415_v37 = vadd.f32 %v8529_v5, %v4273_v24  ;;  %v4133_v7 = vadd.f32 %v4132_v16, %v8595_v39  ;;  %v4134_v25 = vpop.f32.mrb[243].mxu0  ;;  %v4279_v62 = vpop.f32.mrb[19].mxu1 }
 0x5f9   :  { %v4447_v48 = vmin.f32 %v4415_v37, 0.0  ;;  %v4278_v19 = vadd.f32 %v4277_v0, %v4133_v7  ;;  %vm4431_vm3 = vcmp.gt.f32.partialorder %v4415_v37, 0.0 }
 0x5fa   :  { %v4137_v6 = vpop.f32.mrb[244].mxu0  ;;  %v4282_v33 = vpop.f32.mrb[20].mxu1 }
 0x5fb   :  { %v4463_v47 = vmul.f32 1.442695, %v4447_v48  ;;  %v8668_v46 = vadd.f32 %v8531_v10, %v4278_v19  ;;  %v4138_v40 = vadd.f32 %v4137_v6, %v8602_v38  ;;  %v4139_v41 = vpop.f32.mrb[245].mxu0  ;;  %v4284_v44 = vpop.f32.mrb[21].mxu1  ;;  %v9190_v38 = vld [vmem:[#allocation185_spill] sm:$0xff] }
 0x5fc   :  { %v2135_v35 = vadd.f32 %v9190_v38, %v8671_v18 }
 0x5fd   :  { %6074 = vpow2.f32 %v4463_v47  ;;  %v4448_v5 = vmin.f32 %v8668_v46, 0.0  ;;  %v4283_v39 = vadd.f32 %v4282_v33, %v4138_v40  ;;  %vm4432_vm9 = vcmp.gt.f32.partialorder %v8668_v46, 0.0 }
 0x5fe   :  { %v4142_v20 = vpop.f32.mrb[246].mxu0  ;;  %v4287_v22 = vpop.f32.mrb[22].mxu1  ;;  %v2213_v48 = vand.u32 2147483647, %v2135_v35 }
 0x5ff   :  { %v4465_v43 = vmul.f32 1.442695, %v4448_v5  ;;  %v8675_v32 = vadd.f32 %v8533_v45, %v4283_v39  ;;  %v4143_v34 = vadd.f32 %v4142_v20, %v8606_v8  ;;  %v4144_v10 = vpop.f32.mrb[247].mxu0  ;;  %v4289_v23 = vpop.f32.mrb[23].mxu1  ;;  %v9191_v8 = vld [vmem:[#allocation184_spill] sm:$0xff] }
 0x600   :  { %v2140_v28 = vadd.f32 %v9191_v8, %v8671_v18  ;;  %v2229_v20 = vsub.f32 0.0, %v2213_v48 }
 0x601   :  { %6076 = vpow2.f32 %v4465_v43  ;;  %v4449_v12 = vmin.f32 %v8675_v32, 0.0  ;;  %v4288_v50 = vadd.f32 %v4287_v22, %v4143_v34  ;;  %v9192_v22 = vld [vmem:[#allocation188_spill] sm:$0xff]  ;;  %vm4433_vm10 = vcmp.gt.f32.partialorder %v8675_v32, 0.0 }
 0x602   :  { %v4147_v24 = vpop.f32.mrb[248].mxu0  ;;  %v4292_v16 = vpop.f32.mrb[24].mxu1  ;;  %v2214_v39 = vand.u32 2147483647, %v2140_v28  ;;  %v2145_v43 = vadd.f32 %v9192_v22, %v8671_v18  ;;  %v2155_v22 = vadd.f32 %v7741_v54, %v8671_v18 }
 0x603   :  { %v4467_v0 = vmul.f32 1.442695, %v4449_v12  ;;  %v8682_v7 = vadd.f32 %v8535_v1, %v4288_v50  ;;  %v4148_v45 = vadd.f32 %v4147_v24, %v8613_v30  ;;  %v4149_v25 = vpop.f32.mrb[249].mxu0  ;;  %v4294_v62 = vpop.f32.mrb[25].mxu1 }
 0x604   :  { %v2230_v25 = vsub.f32 0.0, %v2214_v39  ;;  %v9193_v62 = vld [vmem:[#allocation187_spill] sm:$0xff]  ;;  %v2215_v28 = vand.u32 2147483647, %v2145_v43 }
 0x605   :  { %6078 = vpow2.f32 %v4467_v0  ;;  %v4450_v19 = vmin.f32 %v8682_v7, 0.0  ;;  %v4293_v6 = vadd.f32 %v4292_v16, %v4148_v45  ;;  %v2150_v8 = vadd.f32 %v9193_v62, %v8671_v18 }
 0x606   :  { %v4152_v33 = vpop.f32.mrb[250].mxu0  ;;  %v4297_v47 = vpop.f32.mrb[26].mxu1  ;;  %vm4434_vm11 = vcmp.gt.f32.partialorder %v8682_v7, 0.0 }
 0x607   :  { %v6075_v40 = vpop.eup %6074  ;;  %v4469_v41 = vmul.f32 1.442695, %v4450_v19  ;;  %v8689_v44 = vadd.f32 %v8537_v58, %v4293_v6  ;;  %v4153_v1 = vadd.f32 %v4152_v33, %v8617_v61  ;;  %v4154_v30 = vpop.f32.mrb[251].mxu0  ;;  %v2216_v39 = vand.u32 2147483647, %v2150_v8 }
 0x608   :  { %v4299_v5 = vpop.f32.mrb[27].mxu1  ;;  %v5242_v34 = vadd.f32 -1.0, %v6075_v40 }
 0x609   :  { %6080 = vpow2.f32 %v4469_v41  ;;  %v4451_v10 = vmin.f32 %v8689_v44, 0.0  ;;  %v4298_v23 = vadd.f32 %v4297_v47, %v4153_v1  ;;  %vm4435_vm12 = vcmp.gt.f32.partialorder %v8689_v44, 0.0 }
 0x60a   :  { %v4511_v38 = vsel %vm4431_vm3, %v4415_v37, %v5242_v34  ;;  %v4157_v35 = vpop.f32.mrb[252].mxu0  ;;  %v4302_v12 = vpop.f32.mrb[28].mxu1 }
 0x60b   :  { %v6077_v58 = vpop.eup %6076  ;;  %v4527_v50 = vmul.f32 %v4511_v38, %v2229_v20  ;;  %v4471_v24 = vmul.f32 1.442695, %v4451_v10  ;;  %v8696_v61 = vadd.f32 %v8539_v52, %v4298_v23  ;;  %v4158_v16 = vadd.f32 %v4157_v35, %v8624_v53  ;;  %v4159_v0 = vpop.f32.mrb[253].mxu0  ;;  %v9194_v35 = vld [vmem:[#allocation189_spill] sm:$0xff]  ;;  %s5981_s28 = spop %5980 }
 0x60c   :  { %v4304_v45 = vpop.f32.mrb[29].mxu1  ;;  %v5243_v48 = vadd.f32 -1.0, %v6077_v58  ;;  %v2231_v20 = vsub.f32 0.0, %v2215_v28  ;;  %v2217_v0 = vand.u32 2147483647, %v2155_v22 }
 0x60d   :  { %6082 = vpow2.f32 %v4471_v24  ;;  %v4452_v37 = vmin.f32 %v8696_v61, 0.0  ;;  %v4303_v19 = vadd.f32 %v4302_v12, %v4158_v16  ;;  %v2160_v12 = vadd.f32 %v9194_v35, %v8671_v18 }
 0x60e   :  { %v4512_v6 = vsel %vm4432_vm9, %v8668_v46, %v5243_v48  ;;  %v4162_v52 = vpop.f32.mrb[254].mxu0  ;;  %v4307_v33 = vpop.f32.mrb[30].mxu1  ;;  %vm4436_vm13 = vcmp.gt.f32.partialorder %v8696_v61, 0.0 }
 0x60f   :  { %v6079_v47 = vpop.eup %6078  ;;  %v4528_v53 = vmul.f32 %v4512_v6, %v2230_v25  ;;  %v4473_v40 = vmul.f32 1.442695, %v4452_v37  ;;  %v8705_v41 = vadd.f32 %v8543_v11, %v4303_v19  ;;  %v4163_v1 = vadd.f32 %v4162_v52, %v8628_v2  ;;  %v4164_v30 = vpop.f32.mrb[255].mxu0 }
 0x610   :  { %v4309_v5 = vpop.f32.mrb[31].mxu1  ;;  %v5244_v43 = vadd.f32 -1.0, %v6079_v47  ;;  %v2232_v25 = vsub.f32 0.0, %v2216_v39  ;;  %v2218_v19 = vand.u32 2147483647, %v2160_v12 }
 0x611   :  { %v5945_v34 = vpack.c.bf16 %v4528_v53, %v4527_v50  ;;  %6084 = vpow2.f32 %v4473_v40  ;;  %v4453_v46 = vmin.f32 %v8705_v41, 0.0  ;;  %v4308_v11 = vadd.f32 %v4307_v33, %v4163_v1 }
 0x612   :  { %v4513_v10 = vsel %vm4433_vm10, %v8675_v32, %v5244_v43  ;;  %v4167_v23 = vpop.f32.mrb[0].mxu0  ;;  %v4312_v38 = vpop.f32.mrb[32].mxu1  ;;  %v2233_v53 = vsub.f32 0.0, %v2217_v0  ;;  %v2165_v40 = vadd.f32 %v7750_v55, %v8671_v18  ;;  %vm4437_vm14 = vcmp.gt.f32.partialorder %v8705_v41, 0.0 }
 0x613   :  { %v6081_v2 = vpop.eup %6080  ;;  %v4529_v58 = vmul.f32 %v4513_v10, %v2231_v20  ;;  %v4475_v24 = vmul.f32 1.442695, %v4453_v46  ;;  %v4168_v54 = vadd.f32 %v4167_v23, %v8634_v36  ;;  %v4169_v16 = vpop.f32.mrb[1].mxu0  ;;  %5947 = vmatpush3.bf16.xpose.msk.msra.mxu0 %vm8380_vm6, %v5945_v34  ;;  %v8719_v32 = vadd.f32 %v8541_v13, %v4308_v11 }
 0x614   :  { %v4314_v50 = vpop.f32.mrb[33].mxu1  ;;  %v5245_v45 = vadd.f32 -1.0, %v6081_v2  ;;  %5948 = vmatprep.subr.bf16.mxu0 %v6356_v3  ;;  %v2234_v23 = vsub.f32 0.0, %v2218_v19 }
 0x615   :  { %6086 = vpow2.f32 %v4475_v24  ;;  %v4313_v62 = vadd.f32 %v4312_v38, %v4168_v54  ;;  %v4454_v36 = vmin.f32 %v8719_v32, 0.0  ;;  %v2219_v38 = vand.u32 2147483647, %v2165_v40 }
 0x616   :  { %v4514_v8 = vsel %vm4434_vm11, %v8682_v7, %v5245_v45  ;;  %v4172_v28 = vpop.f32.mrb[2].mxu0  ;;  %v4317_v48 = vpop.f32.mrb[34].mxu1  ;;  %vm4438_vm15 = vcmp.gt.f32.partialorder %v8719_v32, 0.0 }
 0x617   :  { %v6083_v37 = vpop.eup %6082  ;;  %v4530_v6 = vmul.f32 %v4514_v8, %v2232_v25  ;;  %v8726_v52 = vadd.f32 %v8548_v57, %v4313_v62  ;;  %v4173_v13 = vadd.f32 %v4172_v28, %v8639_v9  ;;  %v4174_v33 = vpop.f32.mrb[3].mxu0  ;;  %v4477_v7 = vmul.f32 1.442695, %v4454_v36 }
 0x618   :  { %v4319_v47 = vpop.f32.mrb[35].mxu1  ;;  %v5246_v1 = vadd.f32 -1.0, %v6083_v37  ;;  %v2235_v62 = vsub.f32 0.0, %v2219_v38  ;;  %v2175_v8 = vadd.f32 %v7760_v15, %v8671_v18 }
 0x619   :  { %v5949_v30 = vpack.c.bf16 %v4530_v6, %v4529_v58  ;;  %v4455_v5 = vmin.f32 %v8726_v52, 0.0  ;;  %v4318_v39 = vadd.f32 %v4317_v48, %v4173_v13  ;;  %6088 = vpow2.f32 %v4477_v7 }
 0x61a   :  { %v4515_v20 = vsel %vm4435_vm12, %v8689_v44, %v5246_v1  ;;  %v4177_v57 = vpop.f32.mrb[4].mxu0  ;;  %v4322_v22 = vpop.f32.mrb[36].mxu1  ;;  %vm4439_vm1 = vcmp.gt.f32.partialorder %v8726_v52, 0.0 }
 0x61b   :  { %v6085_v9 = vpop.eup %6084  ;;  %v4531_v43 = vmul.f32 %v4515_v20, %v2233_v53  ;;  %v4479_v34 = vmul.f32 1.442695, %v4455_v5  ;;  %v8735_v46 = vadd.f32 %v8551_v17, %v4318_v39  ;;  %v4178_v55 = vadd.f32 %v4177_v57, %v8643_v4  ;;  %v4179_v10 = vpop.f32.mrb[5].mxu0  ;;  %5951 = vmatpush3.bf16.xpose.msk.msra.mxu0 %vm8380_vm6, %v5949_v30 }
 0x61c   :  { %v4324_v11 = vpop.f32.mrb[37].mxu1  ;;  %v5247_v2 = vadd.f32 -1.0, %v6085_v9  ;;  %5952 = vmatprep.subr.bf16.mxu0 %v6356_v3  ;;  %v2170_v17 = vadd.f32 %v7748_v59, %v8671_v18  ;;  %v9196_v10 = vld [vmem:[#allocation192_spill] sm:$0xff] }
 0x61d   :  { %6090 = vpow2.f32 %v4479_v34  ;;  %v4456_v44 = vmin.f32 %v8735_v46, 0.0  ;;  %v4323_v35 = vadd.f32 %v4322_v22, %v4178_v55  ;;  %v2185_v11 = vadd.f32 %v9196_v10, %v8671_v18 }
 0x61e   :  { %v4516_v4 = vsel %vm4436_vm13, %v8696_v61, %v5247_v2  ;;  %v4182_v12 = vpop.f32.mrb[6].mxu0  ;;  %v4327_v58 = vpop.f32.mrb[38].mxu1  ;;  %v2220_v28 = vand.u32 2147483647, %v2170_v17  ;;  %vm4440_vm2 = vcmp.gt.f32.partialorder %v8735_v46, 0.0 }
 0x61f   :  { %v6087_v24 = vpop.eup %6086  ;;  %v4532_v54 = vmul.f32 %v4516_v4, %v2234_v23  ;;  %v4481_v16 = vmul.f32 1.442695, %v4456_v44  ;;  %v8747_v50 = vadd.f32 %v8561_v21, %v4323_v35  ;;  %v4183_v0 = vadd.f32 %v4182_v12, %v8647_v14  ;;  %v4184_v45 = vpop.f32.mrb[7].mxu0  ;;  %v9195_v14 = vld [vmem:[#allocation190_spill] sm:$0xff] }
 0x620   :  { %v4329_v25 = vpop.f32.mrb[39].mxu1  ;;  %v5248_v36 = vadd.f32 -1.0, %v6087_v24  ;;  %v2180_v6 = vadd.f32 %v9195_v14, %v8671_v18  ;;  %v2236_v5 = vsub.f32 0.0, %v2220_v28 }
 0x621   :  { %v5953_v59 = vpack.c.bf16 %v4532_v54, %v4531_v43  ;;  %6092 = vpow2.f32 %v4481_v16  ;;  %v4457_v61 = vmin.f32 %v8747_v50, 0.0  ;;  %v4328_v21 = vadd.f32 %v4327_v58, %v4183_v0 }
 0x622   :  { %v4517_v48 = vsel %vm4437_vm14, %v8705_v41, %v5248_v36  ;;  %v4187_v37 = vpop.f32.mrb[8].mxu0  ;;  %v4332_v19 = vpop.f32.mrb[40].mxu1  ;;  %v2221_v41 = vand.u32 2147483647, %v2175_v8  ;;  %v2222_v22 = vand.u32 2147483647, %v2180_v6 }
 0x623   :  { %v4533_v13 = vmul.f32 %v4517_v48, %v2235_v62  ;;  %v4483_v33 = vmul.f32 1.442695, %v4457_v61  ;;  %v4188_v15 = vadd.f32 %v4187_v37, %v8651_v31  ;;  %v4189_v47 = vpop.f32.mrb[9].mxu0  ;;  %v4334_v53 = vpop.f32.mrb[41].mxu1  ;;  %5955 = vmatpush3.bf16.xpose.msk.msra.mxu0 %vm8380_vm6, %v5953_v59  ;;  %v8761_v1 = vadd.f32 %v8564_v56, %v4328_v21 }
 0x624   :  { %v6089_v40 = vpop.eup %6088  ;;  %5956 = vmatprep.subr.bf16.mxu0 %v6356_v3  ;;  %v2237_v44 = vsub.f32 0.0, %v2221_v41  ;;  %v2238_v25 = vsub.f32 0.0, %v2222_v22  ;;  %v2223_v62 = vand.u32 2147483647, %v2185_v11  ;;  %vm4441_vm4 = vcmp.gt.f32.partialorder %v8747_v50, 0.0 }
 0x625   :  { %v5249_v7 = vadd.f32 -1.0, %v6089_v40  ;;  %6094 = vpow2.f32 %v4483_v33  ;;  %v4333_v30 = vadd.f32 %v4332_v19, %v4188_v15  ;;  %v4458_v31 = vmin.f32 %v8761_v1, 0.0  ;;  %v9198_v15 = vld [vmem:[#allocation194_spill] sm:$0xff] }
 0x626   :  { %v4192_v39 = vpop.f32.mrb[10].mxu0  ;;  %v4337_v20 = vpop.f32.mrb[42].mxu1  ;;  %v2239_v33 = vsub.f32 0.0, %v2223_v62  ;;  %v2195_v47 = vadd.f32 %v9198_v15, %v8671_v18  ;;  %vm4442_vm5 = vcmp.gt.f32.partialorder %v8761_v1, 0.0 }
 0x627   :  { %v6091_v57 = vpop.eup %6090  ;;  %v4518_v9 = vsel %vm4438_vm15, %v8719_v32, %v5249_v7  ;;  %v8768_v56 = vadd.f32 %v8568_v26, %v4333_v30  ;;  %v4193_v43 = vadd.f32 %v4192_v39, %v8655_v49  ;;  %v4194_v34 = vpop.f32.mrb[11].mxu0  ;;  %v4485_v2 = vmul.f32 1.442695, %v4458_v31  ;;  %v9199_v39 = vld [vmem:[#allocation193_spill] sm:$0xff] }
 0x628   :  { %v4339_v55 = vpop.f32.mrb[43].mxu1  ;;  %v4534_v23 = vmul.f32 %v4518_v9, %v2236_v5  ;;  %v5250_v38 = vadd.f32 -1.0, %v6091_v57  ;;  %v2225_v57 = vand.u32 2147483647, %v2195_v47 }
 0x629   :  { %v4459_v35 = vmin.f32 %v8768_v56, 0.0  ;;  %v4338_v17 = vadd.f32 %v4337_v20, %v4193_v43  ;;  %6096 = vpow2.f32 %v4485_v2  ;;  %v2200_v20 = vadd.f32 %v9199_v39, %v8671_v18 }
 0x62a   :  { %v5957_v32 = vpack.c.bf16 %v4534_v23, %v4533_v13  ;;  %v4519_v26 = vsel %vm4439_vm1, %v8726_v52, %v5250_v38  ;;  %v4197_v4 = vpop.f32.mrb[12].mxu0  ;;  %v4342_v49 = vpop.f32.mrb[44].mxu1  ;;  %v2241_v23 = vsub.f32 0.0, %v2225_v57  ;;  %v9200_v38 = vld [vmem:[#allocation196_spill] sm:$0xff]  ;;  %vm4443_vm7 = vcmp.gt.f32.partialorder %v8768_v56, 0.0 }
 0x62b   :  { %v6093_v12 = vpop.eup %6092  ;;  %v4535_v58 = vmul.f32 %v4519_v26, %v2237_v44  ;;  %v4487_v24 = vmul.f32 1.442695, %v4459_v35  ;;  %v8777_v54 = vadd.f32 %v8574_v42, %v4338_v17  ;;  %v4198_v16 = vadd.f32 %v4197_v4, %v8659_v51  ;;  %v4199_v0 = vpop.f32.mrb[13].mxu0  ;;  %v9197_v42 = vld [vmem:[#allocation191_spill] sm:$0xff] }
 0x62c   :  { %v4344_v45 = vpop.f32.mrb[45].mxu1  ;;  %v5251_v8 = vadd.f32 -1.0, %v6093_v12  ;;  %5959 = vmatpush3.bf16.xpose.msk.msra.mxu0 %vm8380_vm6, %v5957_v32  ;;  %v2190_v59 = vadd.f32 %v9197_v42, %v8671_v18  ;;  %v2226_v11 = vand.u32 2147483647, %v2200_v20  ;;  %v2205_v2 = vadd.f32 %v9200_v38, %v8671_v18 }
 0x62d   :  { %6098 = vpow2.f32 %v4487_v24  ;;  %v4460_v52 = vmin.f32 %v8777_v54, 0.0  ;;  %v4343_v36 = vadd.f32 %v4342_v49, %v4198_v16  ;;  %5960 = vmatprep.subr.bf16.mxu0 %v6356_v3  ;;  %vm4444_vm8 = vcmp.gt.f32.partialorder %v8777_v54, 0.0  ;;  %v9201_v49 = vld [vmem:[#allocation195_spill] sm:$0xff] }
 0x62e   :  { %v4520_v51 = vsel %vm4440_vm2, %v8735_v46, %v5251_v8  ;;  %v4202_v61 = vpop.f32.mrb[14].mxu0  ;;  %v4347_v28 = vpop.f32.mrb[46].mxu1  ;;  %v2224_v41 = vand.u32 2147483647, %v2190_v59  ;;  %v2227_v4 = vand.u32 2147483647, %v2205_v2  ;;  %v2210_v12 = vadd.f32 %v9201_v49, %v8671_v18 }
 0x62f   :  { %v6095_v48 = vpop.eup %6094  ;;  %v4536_v21 = vmul.f32 %v4520_v51, %v2238_v25  ;;  %v4489_v37 = vmul.f32 1.442695, %v4460_v52  ;;  %v4429_v19 = vadd.f32 %v8582_v29, %v4343_v36  ;;  %v4203_v14 = vadd.f32 %v4202_v61, %v8661_v60  ;;  %v4204_v6 = vpop.f32.mrb[15].mxu0  ;;  %v6129_v51 = vld [vmem:[#allocation14 + $0x40] sm:$0xff] }
 0x630   :  { %v4349_v13 = vpop.f32.mrb[47].mxu1  ;;  %v5252_v53 = vadd.f32 -1.0, %v6095_v48  ;;  %v2240_v9 = vsub.f32 0.0, %v2224_v41  ;;  %v2243_v0 = vsub.f32 0.0, %v2227_v4  ;;  %v2228_v25 = vand.u32 2147483647, %v2210_v12 }
 0x631   :  { %v5961_v40 = vpack.c.bf16 %v4536_v21, %v4535_v58  ;;  %6100 = vpow2.f32 %v4489_v37  ;;  %v4461_v46 = vmin.f32 %v4429_v19, 0.0  ;;  %v4348_v30 = vadd.f32 %v4347_v28, %v4203_v14 }
 0x632   :  { %v4521_v7 = vsel %vm4441_vm4, %v8747_v50, %v5252_v53  ;;  %vm4445_vm3 = vcmp.gt.f32.partialorder %v4429_v19, 0.0  ;;  %v2244_v42 = vsub.f32 0.0, %v2228_v25  ;;  %v4662_v61 = vpop.f32.mrb[16].mxu0 }
 0x633   :  { %v4537_v5 = vmul.f32 %v4521_v7, %v2239_v33  ;;  %v4491_v29 = vmul.f32 1.442695, %v4461_v46  ;;  %v6097_v31 = vpop.eup %6096  ;;  %v4430_v60 = vadd.f32 %v8591_v27, %v4348_v30  ;;  %v5617_v28 = vpop.f32.mrb[17].mxu0 }
 0x634   :  { %5963 = vmatpush3.bf16.xpose.msk.msra.mxu0 %vm8380_vm6, %v5961_v40  ;;  %v5253_v22 = vadd.f32 -1.0, %v6097_v31 }
 0x635   :  { %6102 = vpow2.f32 %v4491_v29  ;;  %5964 = vmatprep.subr.bf16.mxu0 %v6356_v3  ;;  %v4462_v50 = vmin.f32 %v4430_v60, 0.0  ;;  %vm4446_vm9 = vcmp.gt.f32.partialorder %v4430_v60, 0.0 }
 0x636   :  { %v4522_v34 = vsel %vm4442_vm5, %v8761_v1, %v5253_v22  ;;  %v2242_v1 = vsub.f32 0.0, %v2226_v11 }
 0x637   :  { %v6099_v43 = vpop.eup %6098  ;;  %v4538_v55 = vmul.f32 %v4522_v34, %v2240_v9  ;;  %v4493_v10 = vmul.f32 1.442695, %v4462_v50 }
 0x638   :  { %v5254_v27 = vadd.f32 -1.0, %v6099_v43 }
 0x639   :  { %v5965_v44 = vpack.c.bf16 %v4538_v55, %v4537_v5  ;;  %6104 = vpow2.f32 %v4493_v10 }
 0x63a   :  { %v4523_v35 = vsel %vm4443_vm7, %v8768_v56, %v5254_v27 }
 0x63b   :  { %v6101_v17 = vpop.eup %6100  ;;  %v4539_v32 = vmul.f32 %v4523_v35, %v2241_v23 }
 0x63c   :  { %v5255_v26 = vadd.f32 -1.0, %v6101_v17  ;;  %5967 = vmatpush3.bf16.xpose.msk.msra.mxu0 %vm8380_vm6, %v5965_v44 }
 0x63d   :  { %5968 = vmatprep.subr.bf16.mxu0 %v6356_v3 }
 0x63e   :  { %v4524_v58 = vsel %vm4444_vm8, %v8777_v54, %v5255_v26 }
 0x63f   :  { %v6103_v24 = vpop.eup %6102  ;;  %v4540_v56 = vmul.f32 %v4524_v58, %v2242_v1 }
 0x640   :  { %v5256_v16 = vadd.f32 -1.0, %v6103_v24 }
 0x641   :  { %v5969_v45 = vpack.c.bf16 %v4540_v56, %v4539_v32 }
 0x642   :  { %v4525_v62 = vsel %vm4445_vm3, %v4429_v19, %v5256_v16 }
 0x643   :  { %v4541_v8 = vmul.f32 %v4525_v62, %v2243_v0  ;;  %v6105_v52 = vpop.eup %6104 }
 0x644   :  { %5971 = vmatpush3.bf16.xpose.msk.msra.mxu0 %vm8380_vm6, %v5969_v45  ;;  %v5257_v36 = vadd.f32 -1.0, %v6105_v52 }
 0x645   :  { %5972 = vmatprep.subr.bf16.mxu0 %v6356_v3  ;;  %v4960_v3 = vstv %s5981_s28 }
 0x646   :  { %v4526_v18 = vsel %vm4446_vm9, %v4430_v60, %v5257_v36 }
 0x647   :  { %v4542_v54 = vmul.f32 %v4526_v18, %v2244_v42 }
 0x649   :  { %v5973_v59 = vpack.c.bf16 %v4542_v54, %v4541_v8 }
 0x64c   :  { %5975 = vmatpush3.bf16.xpose.msk.msra.mxu0 %vm8380_vm6, %v5973_v59 }
 0x653   :  { %5686 = vmatmul.mubr.msk.f32.vlgmr.msra.gmra.mrb[18].mxu0 %vm354_vm0, %v6129_v51 }
 0x6a7   :  { %v4832_v48 = vpop.f32.mrb[48].mxu1 }
 0x6a8   :  { %v5652_v21 = vpop.f32.mrb[49].mxu1 }
 0x726   :  { %v4952_v37 = vpop.f32.mrb[18].mxu0 }
 0x727   :  { %v4953_v19 = vadd.f32 %v4952_v37, %v4662_v61  ;;  %v5687_v14 = vpop.f32.mrb[19].mxu0 }
 0x729   :  { %v4956_v6 = vadd.f32 %v4953_v19, %v4832_v48 }
 0x72b   :  { %v4962_v13 = vadd.f32 %v4960_v3, %v4956_v6 }
 0x72d   :  { %4963 = vst [vmem:[#allocation16] sm:$0xff] %v4962_v13 }
 0x72e   :  { %6317 = shalt.err (!%p6314_p12)
}
 0x72f   :  { %s6318_s16 = scalar_lea.hbm %s8839_s8, 128 }
 0x730   :  { %p6319_p13 = scmp.ne.s32.totalorder %s8839_s8, %s6318_s16  ;;  %p6322_p0 = scmp.lt.u32.totalorder %s6318_s16, %s8839_s8 }
 0x732   :  { %p6324_p1 = pnand %p6322_p0, %p6319_p13 }
 0x734   :  { %6327 = shalt.err (!%p6324_p1)
}
 0x735   :  { %4973 = dma.vmem_to_hbm [thread:$0]  %s4971_s12, 128, %s8839_s8, [#allocation4]  }
 0x736   :  { %6338 = dma.done.wait [#allocation4], 128  }
 0x737   :  { %6339 = vsyncadd [#allocation4], 4294967168 }
 0x738   :  { %4977 = vsyncpa [#allocation3], 1 }
 0x739   :  { %4978 = vsyncpa [#allocation6], 1 }
 0x73a   :  { %4979 = vsyncpa [#allocation9], 1 }
 0x73b   :  { %4980 = vsyncpa [#allocation12], 1 }
 0x73c   :  { %4981 = vsyncpa [#allocation15], 1 }
 0x73d   :  { %4982 = vsyncpa [#allocation4], 1 }

</bundles_post_ra>
